<compile_context>
chip_gen: v5e
topology: v5e:2x2
jax: 0.10.0
libtpu: 0.0.40
codegen_flags: <defaults>
</compile_context>

<pallas_src>
import jax
import jax.numpy as jnp
from jax import lax
from jax.experimental import pallas as pl
from jax.experimental.pallas import tpu as pltpu

# ----------------------------------------------------------------------------
# Static geometry (LeNet on 1x32x32 inputs: 32 -> 28 -> 14 -> 10 -> 5 -> 1)
# ----------------------------------------------------------------------------
KH = KW = 5
LANES = 128
P = 28                 # flat-row pitch of every in-kernel buffer (= conv1 width)
R_TAIL = 8             # rows carried through c5/f6/out (row 0 is the real output)

# Row counts, derived bottom-up so every read is in bounds.
W_P2 = 124             # pool2 rows written   (conv5 reads rows <= 4*P+4+7 = 123)
W_C3 = 276             # conv3 rows computed  (pool2 reads rows <= 2*123+P+1 = 275)
W_PK = 388             # dj-packed p1 rows    (conv3 reads rows <= 275+4*P   = 387)
W_P1 = 392             # pool1 rows written   (packing reads rows <= 387+4   = 391)
R_X = 816              # conv1 / xf rows      (pool1 reads rows <= 2*391+P+1 = 811)

# Static asserts tying buffer sizes to the read patterns (review request).
assert 4 * P + 4 + (R_TAIL - 1) < W_P2
assert 2 * (W_P2 - 1) + P + 1 < W_C3
assert (W_C3 - 1) + (KH - 1) * P < W_PK
assert (W_PK - 1) + (KW - 1) < W_P1
assert 2 * (W_P1 - 1) + P + 1 < R_X
assert P * P <= R_X and R_X % 16 == 0          # real image rows fit; bf16 tiles

_TAPS = [(i, j) for i in range(KH) for j in range(KW)]


# ----------------------------------------------------------------------------
# The fused Pallas kernel (one grid step == one image)
# ----------------------------------------------------------------------------
def _lenet_kernel(x_ref, w1_ref, w3_ref, w5_ref, w6_ref, wo_ref, b_ref, o_ref,
                  acc_ref, p1_ref, p1p_ref, p2_ref):

    def avgpool(n_rows):
        # pooled[q] = mean(acc[2q], acc[2q+1], acc[2q+P], acc[2q+P+1])
        total = None
        for off in (0, 1, P, P + 1):
            v = acc_ref[pl.ds(off, n_rows, stride=2), :]
            total = v if total is None else total + v
        return total * 0.25

    # ---- conv1: single matmul (im2col done on the host) + bias + relu ------
    a1 = jnp.dot(x_ref[...], w1_ref[...], preferred_element_type=jnp.float32)
    acc_ref[...] = jnp.maximum(a1 + b_ref[pl.ds(0, 1), :], 0.0)

    # ---- pool1 (stride-2 row reads, pitch preserved) ------------------------
    p1_ref[...] = avgpool(W_P1)

    # ---- fold conv3's 5 horizontal taps into lane blocks of 8 ---------------
    # packed[r, 8*dj + c] = p1[r + dj, c]; lanes >= 6 of p1 are exactly zero
    # (zero-padded weights/bias + relu), so the lane-rolled adds never collide.
    packed = None
    for dj in range(KW):
        slab = p1_ref[pl.ds(dj, W_PK), :]
        if dj:
            slab = pltpu.roll(slab, shift=8 * dj, axis=1)
        packed = slab if packed is None else packed + slab
    p1p_ref[pl.ds(0, W_PK), :] = packed.astype(jnp.bfloat16)

    # ---- conv3: 5 di-matmuls, chained f32 value accumulation ---------------
    a3 = None
    for di in range(KH):
        part = jnp.dot(p1p_ref[pl.ds(di * P, W_C3), :], w3_ref[di],
                       preferred_element_type=jnp.float32)
        a3 = part if a3 is None else a3 + part
    acc_ref[pl.ds(0, W_C3), :] = jnp.maximum(a3 + b_ref[pl.ds(1, 1), :], 0.0)

    # ---- pool2 ---------------------------------------------------------------
    p2_ref[pl.ds(0, W_P2), :] = avgpool(W_P2)

    # ---- conv5 (1x1 spatial) + relu, fc6 + relu, fc_out on an 8-row tail ----
    c5 = None
    for t, (di, dj) in enumerate(_TAPS):
        slab = p2_ref[pl.ds(di * P + dj, R_TAIL), :].astype(jnp.bfloat16)
        part = jnp.dot(slab, w5_ref[t], preferred_element_type=jnp.float32)
        c5 = part if c5 is None else c5 + part
    c5 = jnp.maximum(c5 + b_ref[pl.ds(2, 1), :], 0.0)
    h6 = jnp.dot(c5.astype(jnp.bfloat16), w6_ref[...],
                 preferred_element_type=jnp.float32)
    h6 = jnp.maximum(h6 + b_ref[pl.ds(3, 1), :], 0.0)
    lg = jnp.dot(h6.astype(jnp.bfloat16), wo_ref[...],
                 preferred_element_type=jnp.float32)
    o_ref[0, :, :] = lg + b_ref[pl.ds(4, 1), :]   # row 0 / lanes [:3] = logits


# ----------------------------------------------------------------------------
# One-time parameter packing (pad to lane width, cast MXU operands to bf16)
# ----------------------------------------------------------------------------
def _pack_conv1(w):                      # (6,1,5,5) -> (128,128): row di*5+dj
    o = w.shape[0]
    taps = w.reshape(o, KH * KW).T
    return (jnp.zeros((LANES, LANES), jnp.float32)
            .at[:KH * KW, :o].set(taps).astype(jnp.bfloat16))


def _pack_conv3(w):                      # (16,6,5,5) -> (5,128,128): row 8*dj+ci
    o, ci, kh, kw = w.shape
    full = jnp.zeros((kh, LANES, LANES), jnp.float32)
    for dj in range(kw):
        full = full.at[:, 8 * dj:8 * dj + ci, :o].set(
            jnp.transpose(w[:, :, :, dj], (2, 1, 0)))
    return full.astype(jnp.bfloat16)


def _pack_conv5(w):                      # (120,16,5,5) -> (25,128,128)
    o, ci, kh, kw = w.shape
    taps = jnp.transpose(w, (2, 3, 1, 0)).reshape(kh * kw, ci, o)
    return (jnp.zeros((kh * kw, LANES, LANES), jnp.float32)
            .at[:, :ci, :o].set(taps).astype(jnp.bfloat16))


def _pack_fc(w):
    o, i = w.shape
    return (jnp.zeros((LANES, LANES), jnp.float32)
            .at[:i, :o].set(w.T).astype(jnp.bfloat16))


def prepare_params(params):
    b = jnp.zeros((8, LANES), jnp.float32)
    for row, name in enumerate(("c1_b", "c3_b", "c5_b", "f6_b", "out_b")):
        v = params[name]
        b = b.at[row, : v.shape[0]].set(v)
    return {
        "w1": _pack_conv1(params["c1_w"]),
        "w3": _pack_conv3(params["c3_w"]),
        "w5": _pack_conv5(params["c5_w"]),
        "w6": _pack_fc(params["f6_w"]),
        "wo": _pack_fc(params["out_w"]),
        "b": b,
    }


# ----------------------------------------------------------------------------
# LeNet forward (single fused pallas_call)
# ----------------------------------------------------------------------------
def lenet_forward(packed, x):
    n, c, h, w = x.shape
    assert (c, h, w) == (1, 32, 32), "LeNet expects 1x32x32 inputs"
    oh = h - KH + 1                                           # 28

    # Host-side im2col for conv1: lane k = di*5+dj holds pixel (oh+di, ow+dj).
    cols = [x[:, 0, di:di + oh, dj:dj + oh] for di in range(KH) for dj in range(KW)]
    xf = jnp.stack(cols, axis=-1).reshape(n, oh * oh, KH * KW)
    xf = jnp.pad(xf, ((0, 0), (0, R_X - oh * oh), (0, LANES - KH * KW)))
    xf = xf.astype(jnp.bfloat16).reshape(n * R_X, LANES)

    out = pl.pallas_call(
        _lenet_kernel,
        out_shape=jax.ShapeDtypeStruct((n, 8, LANES), jnp.float32),
        grid=(n,),
        in_specs=[
            pl.BlockSpec((R_X, LANES), lambda i: (i, 0)),
            pl.BlockSpec((LANES, LANES), lambda i: (0, 0)),
            pl.BlockSpec((KH, LANES, LANES), lambda i: (0, 0, 0)),
            pl.BlockSpec((KH * KW, LANES, LANES), lambda i: (0, 0, 0)),
            pl.BlockSpec((LANES, LANES), lambda i: (0, 0)),
            pl.BlockSpec((LANES, LANES), lambda i: (0, 0)),
            pl.BlockSpec((8, LANES), lambda i: (0, 0)),
        ],
        out_specs=pl.BlockSpec((1, 8, LANES), lambda i: (i, 0, 0)),
        scratch_shapes=[
            pltpu.VMEM((R_X, LANES), jnp.float32),    # shared conv1/conv3 output
            pltpu.VMEM((W_P1, LANES), jnp.float32),   # pool1 output
            pltpu.VMEM((W_P1, LANES), jnp.bfloat16),  # dj-packed conv3 operand
            pltpu.VMEM((128, LANES), jnp.float32),    # pool2 output
        ],
        compiler_params=pltpu.CompilerParams(
            dimension_semantics=("parallel",),
            vmem_limit_bytes=32 * 1024 * 1024,
        ),
    )(xf, packed["w1"], packed["w3"], packed["w5"], packed["w6"], packed["wo"],
      packed["b"])
    return out[:, 0, :3]


# ----------------------------------------------------------------------------
# Pure-JAX reference (sanity check) and deterministic init
# ----------------------------------------------------------------------------
def lenet_reference(params, x):
    dn = ("NCHW", "OIHW", "NCHW")

    def conv(x, w, b):
        y = lax.conv_general_dilated(x, w, (1, 1), "VALID", dimension_numbers=dn)
        return y + b.reshape(1, -1, 1, 1)

    def pool(x):
        n, c, h, w = x.shape
        return x.reshape(n, c, h // 2, 2, w // 2, 2).mean(axis=(3, 5))

    x = jax.nn.relu(conv(x, params["c1_w"], params["c1_b"]))
    x = pool(x)
    x = jax.nn.relu(conv(x, params["c3_w"], params["c3_b"]))
    x = pool(x)
    x = jax.nn.relu(conv(x, params["c5_w"], params["c5_b"]))
    x = x.reshape(x.shape[0], -1)
    x = jax.nn.relu(x @ params["f6_w"].T + params["f6_b"])
    x = x @ params["out_w"].T + params["out_b"]
    return x


def init_params(key):
    ks = jax.random.split(key, 10)

    def u(k, shape, fan_in):
        bound = 1.0 / (fan_in ** 0.5)
        return jax.random.uniform(k, shape, jnp.float32, -bound, bound)

    return {
        "c1_w": u(ks[0], (6, 1, 5, 5), 1 * 5 * 5),
        "c1_b": u(ks[1], (6,), 1 * 5 * 5),
        "c3_w": u(ks[2], (16, 6, 5, 5), 6 * 5 * 5),
        "c3_b": u(ks[3], (16,), 6 * 5 * 5),
        "c5_w": u(ks[4], (120, 16, 5, 5), 16 * 5 * 5),
        "c5_b": u(ks[5], (120,), 16 * 5 * 5),
        "f6_w": u(ks[6], (84, 120), 120),
        "f6_b": u(ks[7], (84,), 120),
        "out_w": u(ks[8], (3, 84), 84),
        "out_b": u(ks[9], (3,), 84),
    }


if __name__ == "__main__":
    key = jax.random.PRNGKey(0)
    pkey, xkey = jax.random.split(key)
    params = init_params(pkey)
    packed = prepare_params(params)           # one-time pad / transpose / bf16 cast

    # c5 (5x5 conv -> 1x1 spatial) implies a 32x32 single-channel input.
    x = jax.random.normal(xkey, (2, 1, 32, 32), dtype=jnp.float32)

    out = jax.block_until_ready(jax.jit(lenet_forward)(packed, x))
    ref = jax.block_until_ready(jax.jit(lenet_reference)(params, x))

    assert out.shape == (2, 3), out.shape
    # bf16 MXU operands with f32 accumulation -> expect ~1e-2 absolute deviation.
    assert jnp.allclose(out, ref, rtol=2e-2, atol=2e-2), (out, ref)

    print("KERNEL_OK")
</pallas_src>

<mosaic_0001>
module attributes {stable_mosaic.version = 11 : i64} {
  func.func @_lenet_kernel(%arg0: i32, %arg1: memref<816x128xbf16, #tpu.memory_space<vmem>>, %arg2: memref<128x128xbf16, #tpu.memory_space<vmem>>, %arg3: memref<5x128x128xbf16, #tpu.memory_space<vmem>>, %arg4: memref<25x128x128xbf16, #tpu.memory_space<vmem>>, %arg5: memref<128x128xbf16, #tpu.memory_space<vmem>>, %arg6: memref<128x128xbf16, #tpu.memory_space<vmem>>, %arg7: memref<8x128xf32, #tpu.memory_space<vmem>>, %arg8: memref<1x8x128xf32, #tpu.memory_space<vmem>>, %arg9: memref<816x128xf32, #tpu.memory_space<vmem>>, %arg10: memref<392x128xf32, #tpu.memory_space<vmem>>, %arg11: memref<392x128xbf16, #tpu.memory_space<vmem>>, %arg12: memref<128x128xf32, #tpu.memory_space<vmem>>) attributes {dimension_semantics = [#tpu.dimension_semantics<parallel>], iteration_bounds = array<i64: 2>, scalar_prefetch = 0 : i64, scratch_operands = 4 : i64, tpu.core_type = #tpu.core_type<tc>, window_params = [{transform_indices = @transform_0, window_bounds = array<i64: 816, 128>}, {pipeline_mode = #tpu.pipeline_mode<synchronous>, transform_indices = @transform_1, window_bounds = array<i64: 128, 128>}, {pipeline_mode = #tpu.pipeline_mode<synchronous>, transform_indices = @transform_2, window_bounds = array<i64: 5, 128, 128>}, {pipeline_mode = #tpu.pipeline_mode<synchronous>, transform_indices = @transform_3, window_bounds = array<i64: 25, 128, 128>}, {pipeline_mode = #tpu.pipeline_mode<synchronous>, transform_indices = @transform_4, window_bounds = array<i64: 128, 128>}, {pipeline_mode = #tpu.pipeline_mode<synchronous>, transform_indices = @transform_5, window_bounds = array<i64: 128, 128>}, {pipeline_mode = #tpu.pipeline_mode<synchronous>, transform_indices = @transform_6, window_bounds = array<i64: 8, 128>}, {transform_indices = @transform_7, window_bounds = array<i64: 1, 8, 128>}]} {
    %c0 = arith.constant 0 : index
    %c0_0 = arith.constant 0 : index
    %0 = vector.load %arg1[%c0, %c0_0] : memref<816x128xbf16, #tpu.memory_space<vmem>>, vector<816x128xbf16>
    %c0_1 = arith.constant 0 : index
    %c0_2 = arith.constant 0 : index
    %1 = vector.load %arg2[%c0_1, %c0_2] : memref<128x128xbf16, #tpu.memory_space<vmem>>, vector<128x128xbf16>
    %cst = arith.constant dense<0.000000e+00> : vector<816x128xf32>
    %2 = tpu.matmul %0, %1, %cst {dimension_numbers = #tpu.dot_dimension_numbers<[1], [0], [0], [1], [0, 0, 1, 1], [], []>} : vector<816x128xbf16>, vector<128x128xbf16>, vector<816x128xf32> -> vector<816x128xf32>
    %c0_3 = arith.constant 0 : index
    %c0_4 = arith.constant 0 : index
    %3 = vector.load %arg7[%c0_3, %c0_4] : memref<8x128xf32, #tpu.memory_space<vmem>>, vector<1x128xf32>
    %4 = vector.broadcast %3 : vector<1x128xf32> to vector<816x128xf32>
    %5 = arith.addf %2, %4 : vector<816x128xf32>
    %cst_5 = arith.constant 0.000000e+00 : f32
    %6 = vector.broadcast %cst_5 : f32 to vector<816x128xf32>
    %7 = arith.maximumf %5, %6 : vector<816x128xf32>
    %c0_6 = arith.constant 0 : index
    %c0_7 = arith.constant 0 : index
    %8 = vector.load %arg9[%c0_6, %c0_7] : memref<816x128xf32, #tpu.memory_space<vmem>>, vector<816x128xf32>
    tpu.vector_store %arg9[%c0_6, %c0_7], %7 {strides = array<i32>} : memref<816x128xf32, #tpu.memory_space<vmem>>, vector<816x128xf32>,
    %c0_8 = arith.constant 0 : index
    %c0_9 = arith.constant 0 : index
    %9 = tpu.strided_load %arg9[%c0_8, %c0_9] {strides = array<i32: 2, 1>} : memref<816x128xf32, #tpu.memory_space<vmem>>, vector<392x128xf32>
    %c1 = arith.constant 1 : index
    %c0_10 = arith.constant 0 : index
    %10 = tpu.strided_load %arg9[%c1, %c0_10] {strides = array<i32: 2, 1>} : memref<816x128xf32, #tpu.memory_space<vmem>>, vector<392x128xf32>
    %11 = arith.addf %9, %10 : vector<392x128xf32>
    %c28 = arith.constant 28 : index
    %c0_11 = arith.constant 0 : index
    %12 = tpu.strided_load %arg9[%c28, %c0_11] {strides = array<i32: 2, 1>} : memref<816x128xf32, #tpu.memory_space<vmem>>, vector<392x128xf32>
    %13 = arith.addf %11, %12 : vector<392x128xf32>
    %c29 = arith.constant 29 : index
    %c0_12 = arith.constant 0 : index
    %14 = tpu.strided_load %arg9[%c29, %c0_12] {strides = array<i32: 2, 1>} : memref<816x128xf32, #tpu.memory_space<vmem>>, vector<392x128xf32>
    %15 = arith.addf %13, %14 : vector<392x128xf32>
    %cst_13 = arith.constant 2.500000e-01 : f32
    %16 = vector.broadcast %cst_13 : f32 to vector<392x128xf32>
    %17 = arith.mulf %15, %16 : vector<392x128xf32>
    %c0_14 = arith.constant 0 : index
    %c0_15 = arith.constant 0 : index
    %18 = vector.load %arg10[%c0_14, %c0_15] : memref<392x128xf32, #tpu.memory_space<vmem>>, vector<392x128xf32>
    tpu.vector_store %arg10[%c0_14, %c0_15], %17 {strides = array<i32>} : memref<392x128xf32, #tpu.memory_space<vmem>>, vector<392x128xf32>,
    %c0_16 = arith.constant 0 : index
    %c0_17 = arith.constant 0 : index
    %19 = vector.load %arg10[%c0_16, %c0_17] : memref<392x128xf32, #tpu.memory_space<vmem>>, vector<388x128xf32>
    %c1_18 = arith.constant 1 : index
    %c0_19 = arith.constant 0 : index
    %20 = vector.load %arg10[%c1_18, %c0_19] : memref<392x128xf32, #tpu.memory_space<vmem>>, vector<388x128xf32>
    %c8_i32 = arith.constant 8 : i32
    %21 = tpu.dynamic_rotate %20 by %c8_i32 dim 1 : vector<388x128xf32>, i32 -> vector<388x128xf32>
    %22 = arith.addf %19, %21 : vector<388x128xf32>
    %c2 = arith.constant 2 : index
    %c0_20 = arith.constant 0 : index
    %23 = vector.load %arg10[%c2, %c0_20] : memref<392x128xf32, #tpu.memory_space<vmem>>, vector<388x128xf32>
    %c16_i32 = arith.constant 16 : i32
    %24 = tpu.dynamic_rotate %23 by %c16_i32 dim 1 : vector<388x128xf32>, i32 -> vector<388x128xf32>
    %25 = arith.addf %22, %24 : vector<388x128xf32>
    %c3 = arith.constant 3 : index
    %c0_21 = arith.constant 0 : index
    %26 = vector.load %arg10[%c3, %c0_21] : memref<392x128xf32, #tpu.memory_space<vmem>>, vector<388x128xf32>
    %c24_i32 = arith.constant 24 : i32
    %27 = tpu.dynamic_rotate %26 by %c24_i32 dim 1 : vector<388x128xf32>, i32 -> vector<388x128xf32>
    %28 = arith.addf %25, %27 : vector<388x128xf32>
    %c4 = arith.constant 4 : index
    %c0_22 = arith.constant 0 : index
    %29 = vector.load %arg10[%c4, %c0_22] : memref<392x128xf32, #tpu.memory_space<vmem>>, vector<388x128xf32>
    %c32_i32 = arith.constant 32 : i32
    %30 = tpu.dynamic_rotate %29 by %c32_i32 dim 1 : vector<388x128xf32>, i32 -> vector<388x128xf32>
    %31 = arith.addf %28, %30 : vector<388x128xf32>
    %32 = arith.truncf %31 : vector<388x128xf32> to vector<388x128xbf16>
    %c0_23 = arith.constant 0 : index
    %c0_24 = arith.constant 0 : index
    %33 = vector.load %arg11[%c0_23, %c0_24] : memref<392x128xbf16, #tpu.memory_space<vmem>>, vector<388x128xbf16>
    tpu.vector_store %arg11[%c0_23, %c0_24], %32 {strides = array<i32>} : memref<392x128xbf16, #tpu.memory_space<vmem>>, vector<388x128xbf16>,
    %c0_25 = arith.constant 0 : index
    %c0_26 = arith.constant 0 : index
    %34 = vector.load %arg11[%c0_25, %c0_26] : memref<392x128xbf16, #tpu.memory_space<vmem>>, vector<276x128xbf16>
    %c0_27 = arith.constant 0 : index
    %c0_28 = arith.constant 0 : index
    %c0_29 = arith.constant 0 : index
    %35 = vector.load %arg3[%c0_27, %c0_28, %c0_29] : memref<5x128x128xbf16, #tpu.memory_space<vmem>>, vector<1x128x128xbf16>
    %36 = vector.shape_cast %35 : vector<1x128x128xbf16> to vector<128x128xbf16>
    %cst_30 = arith.constant dense<0.000000e+00> : vector<276x128xf32>
    %37 = tpu.matmul %34, %36, %cst_30 {dimension_numbers = #tpu.dot_dimension_numbers<[1], [0], [0], [1], [0, 0, 1, 1], [], []>} : vector<276x128xbf16>, vector<128x128xbf16>, vector<276x128xf32> -> vector<276x128xf32>
    %c28_31 = arith.constant 28 : index
    %c0_32 = arith.constant 0 : index
    %38 = vector.load %arg11[%c28_31, %c0_32] : memref<392x128xbf16, #tpu.memory_space<vmem>>, vector<276x128xbf16>
    %c1_33 = arith.constant 1 : index
    %c0_34 = arith.constant 0 : index
    %c0_35 = arith.constant 0 : index
    %39 = vector.load %arg3[%c1_33, %c0_34, %c0_35] : memref<5x128x128xbf16, #tpu.memory_space<vmem>>, vector<1x128x128xbf16>
    %40 = vector.shape_cast %39 : vector<1x128x128xbf16> to vector<128x128xbf16>
    %cst_36 = arith.constant dense<0.000000e+00> : vector<276x128xf32>
    %41 = tpu.matmul %38, %40, %cst_36 {dimension_numbers = #tpu.dot_dimension_numbers<[1], [0], [0], [1], [0, 0, 1, 1], [], []>} : vector<276x128xbf16>, vector<128x128xbf16>, vector<276x128xf32> -> vector<276x128xf32>
    %42 = arith.addf %37, %41 : vector<276x128xf32>
    %c56 = arith.constant 56 : index
    %c0_37 = arith.constant 0 : index
    %43 = vector.load %arg11[%c56, %c0_37] : memref<392x128xbf16, #tpu.memory_space<vmem>>, vector<276x128xbf16>
    %c2_38 = arith.constant 2 : index
    %c0_39 = arith.constant 0 : index
    %c0_40 = arith.constant 0 : index
    %44 = vector.load %arg3[%c2_38, %c0_39, %c0_40] : memref<5x128x128xbf16, #tpu.memory_space<vmem>>, vector<1x128x128xbf16>
    %45 = vector.shape_cast %44 : vector<1x128x128xbf16> to vector<128x128xbf16>
    %cst_41 = arith.constant dense<0.000000e+00> : vector<276x128xf32>
    %46 = tpu.matmul %43, %45, %cst_41 {dimension_numbers = #tpu.dot_dimension_numbers<[1], [0], [0], [1], [0, 0, 1, 1], [], []>} : vector<276x128xbf16>, vector<128x128xbf16>, vector<276x128xf32> -> vector<276x128xf32>
    %47 = arith.addf %42, %46 : vector<276x128xf32>
    %c84 = arith.constant 84 : index
    %c0_42 = arith.constant 0 : index
    %48 = vector.load %arg11[%c84, %c0_42] : memref<392x128xbf16, #tpu.memory_space<vmem>>, vector<276x128xbf16>
    %c3_43 = arith.constant 3 : index
    %c0_44 = arith.constant 0 : index
    %c0_45 = arith.constant 0 : index
    %49 = vector.load %arg3[%c3_43, %c0_44, %c0_45] : memref<5x128x128xbf16, #tpu.memory_space<vmem>>, vector<1x128x128xbf16>
    %50 = vector.shape_cast %49 : vector<1x128x128xbf16> to vector<128x128xbf16>
    %cst_46 = arith.constant dense<0.000000e+00> : vector<276x128xf32>
    %51 = tpu.matmul %48, %50, %cst_46 {dimension_numbers = #tpu.dot_dimension_numbers<[1], [0], [0], [1], [0, 0, 1, 1], [], []>} : vector<276x128xbf16>, vector<128x128xbf16>, vector<276x128xf32> -> vector<276x128xf32>
    %52 = arith.addf %47, %51 : vector<276x128xf32>
    %c112 = arith.constant 112 : index
    %c0_47 = arith.constant 0 : index
    %53 = vector.load %arg11[%c112, %c0_47] : memref<392x128xbf16, #tpu.memory_space<vmem>>, vector<276x128xbf16>
    %c4_48 = arith.constant 4 : index
    %c0_49 = arith.constant 0 : index
    %c0_50 = arith.constant 0 : index
    %54 = vector.load %arg3[%c4_48, %c0_49, %c0_50] : memref<5x128x128xbf16, #tpu.memory_space<vmem>>, vector<1x128x128xbf16>
    %55 = vector.shape_cast %54 : vector<1x128x128xbf16> to vector<128x128xbf16>
    %cst_51 = arith.constant dense<0.000000e+00> : vector<276x128xf32>
    %56 = tpu.matmul %53, %55, %cst_51 {dimension_numbers = #tpu.dot_dimension_numbers<[1], [0], [0], [1], [0, 0, 1, 1], [], []>} : vector<276x128xbf16>, vector<128x128xbf16>, vector<276x128xf32> -> vector<276x128xf32>
    %57 = arith.addf %52, %56 : vector<276x128xf32>
    %c1_52 = arith.constant 1 : index
    %c0_53 = arith.constant 0 : index
    %58 = vector.load %arg7[%c1_52, %c0_53] : memref<8x128xf32, #tpu.memory_space<vmem>>, vector<1x128xf32>
    %59 = vector.broadcast %58 : vector<1x128xf32> to vector<276x128xf32>
    %60 = arith.addf %57, %59 : vector<276x128xf32>
    %cst_54 = arith.constant 0.000000e+00 : f32
    %61 = vector.broadcast %cst_54 : f32 to vector<276x128xf32>
    %62 = arith.maximumf %60, %61 : vector<276x128xf32>
    %c0_55 = arith.constant 0 : index
    %c0_56 = arith.constant 0 : index
    %63 = vector.load %arg9[%c0_55, %c0_56] : memref<816x128xf32, #tpu.memory_space<vmem>>, vector<276x128xf32>
    tpu.vector_store %arg9[%c0_55, %c0_56], %62 {strides = array<i32>} : memref<816x128xf32, #tpu.memory_space<vmem>>, vector<276x128xf32>,
    %c0_57 = arith.constant 0 : index
    %c0_58 = arith.constant 0 : index
    %64 = tpu.strided_load %arg9[%c0_57, %c0_58] {strides = array<i32: 2, 1>} : memref<816x128xf32, #tpu.memory_space<vmem>>, vector<124x128xf32>
    %c1_59 = arith.constant 1 : index
    %c0_60 = arith.constant 0 : index
    %65 = tpu.strided_load %arg9[%c1_59, %c0_60] {strides = array<i32: 2, 1>} : memref<816x128xf32, #tpu.memory_space<vmem>>, vector<124x128xf32>
    %66 = arith.addf %64, %65 : vector<124x128xf32>
    %c28_61 = arith.constant 28 : index
    %c0_62 = arith.constant 0 : index
    %67 = tpu.strided_load %arg9[%c28_61, %c0_62] {strides = array<i32: 2, 1>} : memref<816x128xf32, #tpu.memory_space<vmem>>, vector<124x128xf32>
    %68 = arith.addf %66, %67 : vector<124x128xf32>
    %c29_63 = arith.constant 29 : index
    %c0_64 = arith.constant 0 : index
    %69 = tpu.strided_load %arg9[%c29_63, %c0_64] {strides = array<i32: 2, 1>} : memref<816x128xf32, #tpu.memory_space<vmem>>, vector<124x128xf32>
    %70 = arith.addf %68, %69 : vector<124x128xf32>
    %cst_65 = arith.constant 2.500000e-01 : f32
    %71 = vector.broadcast %cst_65 : f32 to vector<124x128xf32>
    %72 = arith.mulf %70, %71 : vector<124x128xf32>
    %c0_66 = arith.constant 0 : index
    %c0_67 = arith.constant 0 : index
    %73 = vector.load %arg12[%c0_66, %c0_67] : memref<128x128xf32, #tpu.memory_space<vmem>>, vector<124x128xf32>
    tpu.vector_store %arg12[%c0_66, %c0_67], %72 {strides = array<i32>} : memref<128x128xf32, #tpu.memory_space<vmem>>, vector<124x128xf32>,
    %c0_68 = arith.constant 0 : index
    %c0_69 = arith.constant 0 : index
    %74 = vector.load %arg12[%c0_68, %c0_69] : memref<128x128xf32, #tpu.memory_space<vmem>>, vector<8x128xf32>
    %75 = arith.truncf %74 : vector<8x128xf32> to vector<8x128xbf16>
    %c0_70 = arith.constant 0 : index
    %c0_71 = arith.constant 0 : index
    %c0_72 = arith.constant 0 : index
    %76 = vector.load %arg4[%c0_70, %c0_71, %c0_72] : memref<25x128x128xbf16, #tpu.memory_space<vmem>>, vector<1x128x128xbf16>
    %77 = vector.shape_cast %76 : vector<1x128x128xbf16> to vector<128x128xbf16>
    %cst_73 = arith.constant dense<0.000000e+00> : vector<8x128xf32>
    %78 = tpu.matmul %75, %77, %cst_73 {dimension_numbers = #tpu.dot_dimension_numbers<[1], [0], [0], [1], [0, 0, 1, 1], [], []>} : vector<8x128xbf16>, vector<128x128xbf16>, vector<8x128xf32> -> vector<8x128xf32>
    %c1_74 = arith.constant 1 : index
    %c0_75 = arith.constant 0 : index
    %79 = vector.load %arg12[%c1_74, %c0_75] : memref<128x128xf32, #tpu.memory_space<vmem>>, vector<8x128xf32>
    %80 = arith.truncf %79 : vector<8x128xf32> to vector<8x128xbf16>
    %c1_76 = arith.constant 1 : index
    %c0_77 = arith.constant 0 : index
    %c0_78 = arith.constant 0 : index
    %81 = vector.load %arg4[%c1_76, %c0_77, %c0_78] : memref<25x128x128xbf16, #tpu.memory_space<vmem>>, vector<1x128x128xbf16>
    %82 = vector.shape_cast %81 : vector<1x128x128xbf16> to vector<128x128xbf16>
    %cst_79 = arith.constant dense<0.000000e+00> : vector<8x128xf32>
    %83 = tpu.matmul %80, %82, %cst_79 {dimension_numbers = #tpu.dot_dimension_numbers<[1], [0], [0], [1], [0, 0, 1, 1], [], []>} : vector<8x128xbf16>, vector<128x128xbf16>, vector<8x128xf32> -> vector<8x128xf32>
    %84 = arith.addf %78, %83 : vector<8x128xf32>
    %c2_80 = arith.constant 2 : index
    %c0_81 = arith.constant 0 : index
    %85 = vector.load %arg12[%c2_80, %c0_81] : memref<128x128xf32, #tpu.memory_space<vmem>>, vector<8x128xf32>
    %86 = arith.truncf %85 : vector<8x128xf32> to vector<8x128xbf16>
    %c2_82 = arith.constant 2 : index
    %c0_83 = arith.constant 0 : index
    %c0_84 = arith.constant 0 : index
    %87 = vector.load %arg4[%c2_82, %c0_83, %c0_84] : memref<25x128x128xbf16, #tpu.memory_space<vmem>>, vector<1x128x128xbf16>
    %88 = vector.shape_cast %87 : vector<1x128x128xbf16> to vector<128x128xbf16>
    %cst_85 = arith.constant dense<0.000000e+00> : vector<8x128xf32>
    %89 = tpu.matmul %86, %88, %cst_85 {dimension_numbers = #tpu.dot_dimension_numbers<[1], [0], [0], [1], [0, 0, 1, 1], [], []>} : vector<8x128xbf16>, vector<128x128xbf16>, vector<8x128xf32> -> vector<8x128xf32>
    %90 = arith.addf %84, %89 : vector<8x128xf32>
    %c3_86 = arith.constant 3 : index
    %c0_87 = arith.constant 0 : index
    %91 = vector.load %arg12[%c3_86, %c0_87] : memref<128x128xf32, #tpu.memory_space<vmem>>, vector<8x128xf32>
    %92 = arith.truncf %91 : vector<8x128xf32> to vector<8x128xbf16>
    %c3_88 = arith.constant 3 : index
    %c0_89 = arith.constant 0 : index
    %c0_90 = arith.constant 0 : index
    %93 = vector.load %arg4[%c3_88, %c0_89, %c0_90] : memref<25x128x128xbf16, #tpu.memory_space<vmem>>, vector<1x128x128xbf16>
    %94 = vector.shape_cast %93 : vector<1x128x128xbf16> to vector<128x128xbf16>
    %cst_91 = arith.constant dense<0.000000e+00> : vector<8x128xf32>
    %95 = tpu.matmul %92, %94, %cst_91 {dimension_numbers = #tpu.dot_dimension_numbers<[1], [0], [0], [1], [0, 0, 1, 1], [], []>} : vector<8x128xbf16>, vector<128x128xbf16>, vector<8x128xf32> -> vector<8x128xf32>
    %96 = arith.addf %90, %95 : vector<8x128xf32>
    %c4_92 = arith.constant 4 : index
    %c0_93 = arith.constant 0 : index
    %97 = vector.load %arg12[%c4_92, %c0_93] : memref<128x128xf32, #tpu.memory_space<vmem>>, vector<8x128xf32>
    %98 = arith.truncf %97 : vector<8x128xf32> to vector<8x128xbf16>
    %c4_94 = arith.constant 4 : index
    %c0_95 = arith.constant 0 : index
    %c0_96 = arith.constant 0 : index
    %99 = vector.load %arg4[%c4_94, %c0_95, %c0_96] : memref<25x128x128xbf16, #tpu.memory_space<vmem>>, vector<1x128x128xbf16>
    %100 = vector.shape_cast %99 : vector<1x128x128xbf16> to vector<128x128xbf16>
    %cst_97 = arith.constant dense<0.000000e+00> : vector<8x128xf32>
    %101 = tpu.matmul %98, %100, %cst_97 {dimension_numbers = #tpu.dot_dimension_numbers<[1], [0], [0], [1], [0, 0, 1, 1], [], []>} : vector<8x128xbf16>, vector<128x128xbf16>, vector<8x128xf32> -> vector<8x128xf32>
    %102 = arith.addf %96, %101 : vector<8x128xf32>
    %c28_98 = arith.constant 28 : index
    %c0_99 = arith.constant 0 : index
    %103 = vector.load %arg12[%c28_98, %c0_99] : memref<128x128xf32, #tpu.memory_space<vmem>>, vector<8x128xf32>
    %104 = arith.truncf %103 : vector<8x128xf32> to vector<8x128xbf16>
    %c5 = arith.constant 5 : index
    %c0_100 = arith.constant 0 : index
    %c0_101 = arith.constant 0 : index
    %105 = vector.load %arg4[%c5, %c0_100, %c0_101] : memref<25x128x128xbf16, #tpu.memory_space<vmem>>, vector<1x128x128xbf16>
    %106 = vector.shape_cast %105 : vector<1x128x128xbf16> to vector<128x128xbf16>
    %cst_102 = arith.constant dense<0.000000e+00> : vector<8x128xf32>
    %107 = tpu.matmul %104, %106, %cst_102 {dimension_numbers = #tpu.dot_dimension_numbers<[1], [0], [0], [1], [0, 0, 1, 1], [], []>} : vector<8x128xbf16>, vector<128x128xbf16>, vector<8x128xf32> -> vector<8x128xf32>
    %108 = arith.addf %102, %107 : vector<8x128xf32>
    %c29_103 = arith.constant 29 : index
    %c0_104 = arith.constant 0 : index
    %109 = vector.load %arg12[%c29_103, %c0_104] : memref<128x128xf32, #tpu.memory_space<vmem>>, vector<8x128xf32>
    %110 = arith.truncf %109 : vector<8x128xf32> to vector<8x128xbf16>
    %c6 = arith.constant 6 : index
    %c0_105 = arith.constant 0 : index
    %c0_106 = arith.constant 0 : index
    %111 = vector.load %arg4[%c6, %c0_105, %c0_106] : memref<25x128x128xbf16, #tpu.memory_space<vmem>>, vector<1x128x128xbf16>
    %112 = vector.shape_cast %111 : vector<1x128x128xbf16> to vector<128x128xbf16>
    %cst_107 = arith.constant dense<0.000000e+00> : vector<8x128xf32>
    %113 = tpu.matmul %110, %112, %cst_107 {dimension_numbers = #tpu.dot_dimension_numbers<[1], [0], [0], [1], [0, 0, 1, 1], [], []>} : vector<8x128xbf16>, vector<128x128xbf16>, vector<8x128xf32> -> vector<8x128xf32>
    %114 = arith.addf %108, %113 : vector<8x128xf32>
    %c30 = arith.constant 30 : index
    %c0_108 = arith.constant 0 : index
    %115 = vector.load %arg12[%c30, %c0_108] : memref<128x128xf32, #tpu.memory_space<vmem>>, vector<8x128xf32>
    %116 = arith.truncf %115 : vector<8x128xf32> to vector<8x128xbf16>
    %c7 = arith.constant 7 : index
    %c0_109 = arith.constant 0 : index
    %c0_110 = arith.constant 0 : index
    %117 = vector.load %arg4[%c7, %c0_109, %c0_110] : memref<25x128x128xbf16, #tpu.memory_space<vmem>>, vector<1x128x128xbf16>
    %118 = vector.shape_cast %117 : vector<1x128x128xbf16> to vector<128x128xbf16>
    %cst_111 = arith.constant dense<0.000000e+00> : vector<8x128xf32>
    %119 = tpu.matmul %116, %118, %cst_111 {dimension_numbers = #tpu.dot_dimension_numbers<[1], [0], [0], [1], [0, 0, 1, 1], [], []>} : vector<8x128xbf16>, vector<128x128xbf16>, vector<8x128xf32> -> vector<8x128xf32>
    %120 = arith.addf %114, %119 : vector<8x128xf32>
    %c31 = arith.constant 31 : index
    %c0_112 = arith.constant 0 : index
    %121 = vector.load %arg12[%c31, %c0_112] : memref<128x128xf32, #tpu.memory_space<vmem>>, vector<8x128xf32>
    %122 = arith.truncf %121 : vector<8x128xf32> to vector<8x128xbf16>
    %c8 = arith.constant 8 : index
    %c0_113 = arith.constant 0 : index
    %c0_114 = arith.constant 0 : index
    %123 = vector.load %arg4[%c8, %c0_113, %c0_114] : memref<25x128x128xbf16, #tpu.memory_space<vmem>>, vector<1x128x128xbf16>
    %124 = vector.shape_cast %123 : vector<1x128x128xbf16> to vector<128x128xbf16>
    %cst_115 = arith.constant dense<0.000000e+00> : vector<8x128xf32>
    %125 = tpu.matmul %122, %124, %cst_115 {dimension_numbers = #tpu.dot_dimension_numbers<[1], [0], [0], [1], [0, 0, 1, 1], [], []>} : vector<8x128xbf16>, vector<128x128xbf16>, vector<8x128xf32> -> vector<8x128xf32>
    %126 = arith.addf %120, %125 : vector<8x128xf32>
    %c32 = arith.constant 32 : index
    %c0_116 = arith.constant 0 : index
    %127 = vector.load %arg12[%c32, %c0_116] : memref<128x128xf32, #tpu.memory_space<vmem>>, vector<8x128xf32>
    %128 = arith.truncf %127 : vector<8x128xf32> to vector<8x128xbf16>
    %c9 = arith.constant 9 : index
    %c0_117 = arith.constant 0 : index
    %c0_118 = arith.constant 0 : index
    %129 = vector.load %arg4[%c9, %c0_117, %c0_118] : memref<25x128x128xbf16, #tpu.memory_space<vmem>>, vector<1x128x128xbf16>
    %130 = vector.shape_cast %129 : vector<1x128x128xbf16> to vector<128x128xbf16>
    %cst_119 = arith.constant dense<0.000000e+00> : vector<8x128xf32>
    %131 = tpu.matmul %128, %130, %cst_119 {dimension_numbers = #tpu.dot_dimension_numbers<[1], [0], [0], [1], [0, 0, 1, 1], [], []>} : vector<8x128xbf16>, vector<128x128xbf16>, vector<8x128xf32> -> vector<8x128xf32>
    %132 = arith.addf %126, %131 : vector<8x128xf32>
    %c56_120 = arith.constant 56 : index
    %c0_121 = arith.constant 0 : index
    %133 = vector.load %arg12[%c56_120, %c0_121] : memref<128x128xf32, #tpu.memory_space<vmem>>, vector<8x128xf32>
    %134 = arith.truncf %133 : vector<8x128xf32> to vector<8x128xbf16>
    %c10 = arith.constant 10 : index
    %c0_122 = arith.constant 0 : index
    %c0_123 = arith.constant 0 : index
    %135 = vector.load %arg4[%c10, %c0_122, %c0_123] : memref<25x128x128xbf16, #tpu.memory_space<vmem>>, vector<1x128x128xbf16>
    %136 = vector.shape_cast %135 : vector<1x128x128xbf16> to vector<128x128xbf16>
    %cst_124 = arith.constant dense<0.000000e+00> : vector<8x128xf32>
    %137 = tpu.matmul %134, %136, %cst_124 {dimension_numbers = #tpu.dot_dimension_numbers<[1], [0], [0], [1], [0, 0, 1, 1], [], []>} : vector<8x128xbf16>, vector<128x128xbf16>, vector<8x128xf32> -> vector<8x128xf32>
    %138 = arith.addf %132, %137 : vector<8x128xf32>
    %c57 = arith.constant 57 : index
    %c0_125 = arith.constant 0 : index
    %139 = vector.load %arg12[%c57, %c0_125] : memref<128x128xf32, #tpu.memory_space<vmem>>, vector<8x128xf32>
    %140 = arith.truncf %139 : vector<8x128xf32> to vector<8x128xbf16>
    %c11 = arith.constant 11 : index
    %c0_126 = arith.constant 0 : index
    %c0_127 = arith.constant 0 : index
    %141 = vector.load %arg4[%c11, %c0_126, %c0_127] : memref<25x128x128xbf16, #tpu.memory_space<vmem>>, vector<1x128x128xbf16>
    %142 = vector.shape_cast %141 : vector<1x128x128xbf16> to vector<128x128xbf16>
    %cst_128 = arith.constant dense<0.000000e+00> : vector<8x128xf32>
    %143 = tpu.matmul %140, %142, %cst_128 {dimension_numbers = #tpu.dot_dimension_numbers<[1], [0], [0], [1], [0, 0, 1, 1], [], []>} : vector<8x128xbf16>, vector<128x128xbf16>, vector<8x128xf32> -> vector<8x128xf32>
    %144 = arith.addf %138, %143 : vector<8x128xf32>
    %c58 = arith.constant 58 : index
    %c0_129 = arith.constant 0 : index
    %145 = vector.load %arg12[%c58, %c0_129] : memref<128x128xf32, #tpu.memory_space<vmem>>, vector<8x128xf32>
    %146 = arith.truncf %145 : vector<8x128xf32> to vector<8x128xbf16>
    %c12 = arith.constant 12 : index
    %c0_130 = arith.constant 0 : index
    %c0_131 = arith.constant 0 : index
    %147 = vector.load %arg4[%c12, %c0_130, %c0_131] : memref<25x128x128xbf16, #tpu.memory_space<vmem>>, vector<1x128x128xbf16>
    %148 = vector.shape_cast %147 : vector<1x128x128xbf16> to vector<128x128xbf16>
    %cst_132 = arith.constant dense<0.000000e+00> : vector<8x128xf32>
    %149 = tpu.matmul %146, %148, %cst_132 {dimension_numbers = #tpu.dot_dimension_numbers<[1], [0], [0], [1], [0, 0, 1, 1], [], []>} : vector<8x128xbf16>, vector<128x128xbf16>, vector<8x128xf32> -> vector<8x128xf32>
    %150 = arith.addf %144, %149 : vector<8x128xf32>
    %c59 = arith.constant 59 : index
    %c0_133 = arith.constant 0 : index
    %151 = vector.load %arg12[%c59, %c0_133] : memref<128x128xf32, #tpu.memory_space<vmem>>, vector<8x128xf32>
    %152 = arith.truncf %151 : vector<8x128xf32> to vector<8x128xbf16>
    %c13 = arith.constant 13 : index
    %c0_134 = arith.constant 0 : index
    %c0_135 = arith.constant 0 : index
    %153 = vector.load %arg4[%c13, %c0_134, %c0_135] : memref<25x128x128xbf16, #tpu.memory_space<vmem>>, vector<1x128x128xbf16>
    %154 = vector.shape_cast %153 : vector<1x128x128xbf16> to vector<128x128xbf16>
    %cst_136 = arith.constant dense<0.000000e+00> : vector<8x128xf32>
    %155 = tpu.matmul %152, %154, %cst_136 {dimension_numbers = #tpu.dot_dimension_numbers<[1], [0], [0], [1], [0, 0, 1, 1], [], []>} : vector<8x128xbf16>, vector<128x128xbf16>, vector<8x128xf32> -> vector<8x128xf32>
    %156 = arith.addf %150, %155 : vector<8x128xf32>
    %c60 = arith.constant 60 : index
    %c0_137 = arith.constant 0 : index
    %157 = vector.load %arg12[%c60, %c0_137] : memref<128x128xf32, #tpu.memory_space<vmem>>, vector<8x128xf32>
    %158 = arith.truncf %157 : vector<8x128xf32> to vector<8x128xbf16>
    %c14 = arith.constant 14 : index
    %c0_138 = arith.constant 0 : index
    %c0_139 = arith.constant 0 : index
    %159 = vector.load %arg4[%c14, %c0_138, %c0_139] : memref<25x128x128xbf16, #tpu.memory_space<vmem>>, vector<1x128x128xbf16>
    %160 = vector.shape_cast %159 : vector<1x128x128xbf16> to vector<128x128xbf16>
    %cst_140 = arith.constant dense<0.000000e+00> : vector<8x128xf32>
    %161 = tpu.matmul %158, %160, %cst_140 {dimension_numbers = #tpu.dot_dimension_numbers<[1], [0], [0], [1], [0, 0, 1, 1], [], []>} : vector<8x128xbf16>, vector<128x128xbf16>, vector<8x128xf32> -> vector<8x128xf32>
    %162 = arith.addf %156, %161 : vector<8x128xf32>
    %c84_141 = arith.constant 84 : index
    %c0_142 = arith.constant 0 : index
    %163 = vector.load %arg12[%c84_141, %c0_142] : memref<128x128xf32, #tpu.memory_space<vmem>>, vector<8x128xf32>
    %164 = arith.truncf %163 : vector<8x128xf32> to vector<8x128xbf16>
    %c15 = arith.constant 15 : index
    %c0_143 = arith.constant 0 : index
    %c0_144 = arith.constant 0 : index
    %165 = vector.load %arg4[%c15, %c0_143, %c0_144] : memref<25x128x128xbf16, #tpu.memory_space<vmem>>, vector<1x128x128xbf16>
    %166 = vector.shape_cast %165 : vector<1x128x128xbf16> to vector<128x128xbf16>
    %cst_145 = arith.constant dense<0.000000e+00> : vector<8x128xf32>
    %167 = tpu.matmul %164, %166, %cst_145 {dimension_numbers = #tpu.dot_dimension_numbers<[1], [0], [0], [1], [0, 0, 1, 1], [], []>} : vector<8x128xbf16>, vector<128x128xbf16>, vector<8x128xf32> -> vector<8x128xf32>
    %168 = arith.addf %162, %167 : vector<8x128xf32>
    %c85 = arith.constant 85 : index
    %c0_146 = arith.constant 0 : index
    %169 = vector.load %arg12[%c85, %c0_146] : memref<128x128xf32, #tpu.memory_space<vmem>>, vector<8x128xf32>
    %170 = arith.truncf %169 : vector<8x128xf32> to vector<8x128xbf16>
    %c16 = arith.constant 16 : index
    %c0_147 = arith.constant 0 : index
    %c0_148 = arith.constant 0 : index
    %171 = vector.load %arg4[%c16, %c0_147, %c0_148] : memref<25x128x128xbf16, #tpu.memory_space<vmem>>, vector<1x128x128xbf16>
    %172 = vector.shape_cast %171 : vector<1x128x128xbf16> to vector<128x128xbf16>
    %cst_149 = arith.constant dense<0.000000e+00> : vector<8x128xf32>
    %173 = tpu.matmul %170, %172, %cst_149 {dimension_numbers = #tpu.dot_dimension_numbers<[1], [0], [0], [1], [0, 0, 1, 1], [], []>} : vector<8x128xbf16>, vector<128x128xbf16>, vector<8x128xf32> -> vector<8x128xf32>
    %174 = arith.addf %168, %173 : vector<8x128xf32>
    %c86 = arith.constant 86 : index
    %c0_150 = arith.constant 0 : index
    %175 = vector.load %arg12[%c86, %c0_150] : memref<128x128xf32, #tpu.memory_space<vmem>>, vector<8x128xf32>
    %176 = arith.truncf %175 : vector<8x128xf32> to vector<8x128xbf16>
    %c17 = arith.constant 17 : index
    %c0_151 = arith.constant 0 : index
    %c0_152 = arith.constant 0 : index
    %177 = vector.load %arg4[%c17, %c0_151, %c0_152] : memref<25x128x128xbf16, #tpu.memory_space<vmem>>, vector<1x128x128xbf16>
    %178 = vector.shape_cast %177 : vector<1x128x128xbf16> to vector<128x128xbf16>
    %cst_153 = arith.constant dense<0.000000e+00> : vector<8x128xf32>
    %179 = tpu.matmul %176, %178, %cst_153 {dimension_numbers = #tpu.dot_dimension_numbers<[1], [0], [0], [1], [0, 0, 1, 1], [], []>} : vector<8x128xbf16>, vector<128x128xbf16>, vector<8x128xf32> -> vector<8x128xf32>
    %180 = arith.addf %174, %179 : vector<8x128xf32>
    %c87 = arith.constant 87 : index
    %c0_154 = arith.constant 0 : index
    %181 = vector.load %arg12[%c87, %c0_154] : memref<128x128xf32, #tpu.memory_space<vmem>>, vector<8x128xf32>
    %182 = arith.truncf %181 : vector<8x128xf32> to vector<8x128xbf16>
    %c18 = arith.constant 18 : index
    %c0_155 = arith.constant 0 : index
    %c0_156 = arith.constant 0 : index
    %183 = vector.load %arg4[%c18, %c0_155, %c0_156] : memref<25x128x128xbf16, #tpu.memory_space<vmem>>, vector<1x128x128xbf16>
    %184 = vector.shape_cast %183 : vector<1x128x128xbf16> to vector<128x128xbf16>
    %cst_157 = arith.constant dense<0.000000e+00> : vector<8x128xf32>
    %185 = tpu.matmul %182, %184, %cst_157 {dimension_numbers = #tpu.dot_dimension_numbers<[1], [0], [0], [1], [0, 0, 1, 1], [], []>} : vector<8x128xbf16>, vector<128x128xbf16>, vector<8x128xf32> -> vector<8x128xf32>
    %186 = arith.addf %180, %185 : vector<8x128xf32>
    %c88 = arith.constant 88 : index
    %c0_158 = arith.constant 0 : index
    %187 = vector.load %arg12[%c88, %c0_158] : memref<128x128xf32, #tpu.memory_space<vmem>>, vector<8x128xf32>
    %188 = arith.truncf %187 : vector<8x128xf32> to vector<8x128xbf16>
    %c19 = arith.constant 19 : index
    %c0_159 = arith.constant 0 : index
    %c0_160 = arith.constant 0 : index
    %189 = vector.load %arg4[%c19, %c0_159, %c0_160] : memref<25x128x128xbf16, #tpu.memory_space<vmem>>, vector<1x128x128xbf16>
    %190 = vector.shape_cast %189 : vector<1x128x128xbf16> to vector<128x128xbf16>
    %cst_161 = arith.constant dense<0.000000e+00> : vector<8x128xf32>
    %191 = tpu.matmul %188, %190, %cst_161 {dimension_numbers = #tpu.dot_dimension_numbers<[1], [0], [0], [1], [0, 0, 1, 1], [], []>} : vector<8x128xbf16>, vector<128x128xbf16>, vector<8x128xf32> -> vector<8x128xf32>
    %192 = arith.addf %186, %191 : vector<8x128xf32>
    %c112_162 = arith.constant 112 : index
    %c0_163 = arith.constant 0 : index
    %193 = vector.load %arg12[%c112_162, %c0_163] : memref<128x128xf32, #tpu.memory_space<vmem>>, vector<8x128xf32>
    %194 = arith.truncf %193 : vector<8x128xf32> to vector<8x128xbf16>
    %c20 = arith.constant 20 : index
    %c0_164 = arith.constant 0 : index
    %c0_165 = arith.constant 0 : index
    %195 = vector.load %arg4[%c20, %c0_164, %c0_165] : memref<25x128x128xbf16, #tpu.memory_space<vmem>>, vector<1x128x128xbf16>
    %196 = vector.shape_cast %195 : vector<1x128x128xbf16> to vector<128x128xbf16>
    %cst_166 = arith.constant dense<0.000000e+00> : vector<8x128xf32>
    %197 = tpu.matmul %194, %196, %cst_166 {dimension_numbers = #tpu.dot_dimension_numbers<[1], [0], [0], [1], [0, 0, 1, 1], [], []>} : vector<8x128xbf16>, vector<128x128xbf16>, vector<8x128xf32> -> vector<8x128xf32>
    %198 = arith.addf %192, %197 : vector<8x128xf32>
    %c113 = arith.constant 113 : index
    %c0_167 = arith.constant 0 : index
    %199 = vector.load %arg12[%c113, %c0_167] : memref<128x128xf32, #tpu.memory_space<vmem>>, vector<8x128xf32>
    %200 = arith.truncf %199 : vector<8x128xf32> to vector<8x128xbf16>
    %c21 = arith.constant 21 : index
    %c0_168 = arith.constant 0 : index
    %c0_169 = arith.constant 0 : index
    %201 = vector.load %arg4[%c21, %c0_168, %c0_169] : memref<25x128x128xbf16, #tpu.memory_space<vmem>>, vector<1x128x128xbf16>
    %202 = vector.shape_cast %201 : vector<1x128x128xbf16> to vector<128x128xbf16>
    %cst_170 = arith.constant dense<0.000000e+00> : vector<8x128xf32>
    %203 = tpu.matmul %200, %202, %cst_170 {dimension_numbers = #tpu.dot_dimension_numbers<[1], [0], [0], [1], [0, 0, 1, 1], [], []>} : vector<8x128xbf16>, vector<128x128xbf16>, vector<8x128xf32> -> vector<8x128xf32>
    %204 = arith.addf %198, %203 : vector<8x128xf32>
    %c114 = arith.constant 114 : index
    %c0_171 = arith.constant 0 : index
    %205 = vector.load %arg12[%c114, %c0_171] : memref<128x128xf32, #tpu.memory_space<vmem>>, vector<8x128xf32>
    %206 = arith.truncf %205 : vector<8x128xf32> to vector<8x128xbf16>
    %c22 = arith.constant 22 : index
    %c0_172 = arith.constant 0 : index
    %c0_173 = arith.constant 0 : index
    %207 = vector.load %arg4[%c22, %c0_172, %c0_173] : memref<25x128x128xbf16, #tpu.memory_space<vmem>>, vector<1x128x128xbf16>
    %208 = vector.shape_cast %207 : vector<1x128x128xbf16> to vector<128x128xbf16>
    %cst_174 = arith.constant dense<0.000000e+00> : vector<8x128xf32>
    %209 = tpu.matmul %206, %208, %cst_174 {dimension_numbers = #tpu.dot_dimension_numbers<[1], [0], [0], [1], [0, 0, 1, 1], [], []>} : vector<8x128xbf16>, vector<128x128xbf16>, vector<8x128xf32> -> vector<8x128xf32>
    %210 = arith.addf %204, %209 : vector<8x128xf32>
    %c115 = arith.constant 115 : index
    %c0_175 = arith.constant 0 : index
    %211 = vector.load %arg12[%c115, %c0_175] : memref<128x128xf32, #tpu.memory_space<vmem>>, vector<8x128xf32>
    %212 = arith.truncf %211 : vector<8x128xf32> to vector<8x128xbf16>
    %c23 = arith.constant 23 : index
    %c0_176 = arith.constant 0 : index
    %c0_177 = arith.constant 0 : index
    %213 = vector.load %arg4[%c23, %c0_176, %c0_177] : memref<25x128x128xbf16, #tpu.memory_space<vmem>>, vector<1x128x128xbf16>
    %214 = vector.shape_cast %213 : vector<1x128x128xbf16> to vector<128x128xbf16>
    %cst_178 = arith.constant dense<0.000000e+00> : vector<8x128xf32>
    %215 = tpu.matmul %212, %214, %cst_178 {dimension_numbers = #tpu.dot_dimension_numbers<[1], [0], [0], [1], [0, 0, 1, 1], [], []>} : vector<8x128xbf16>, vector<128x128xbf16>, vector<8x128xf32> -> vector<8x128xf32>
    %216 = arith.addf %210, %215 : vector<8x128xf32>
    %c116 = arith.constant 116 : index
    %c0_179 = arith.constant 0 : index
    %217 = vector.load %arg12[%c116, %c0_179] : memref<128x128xf32, #tpu.memory_space<vmem>>, vector<8x128xf32>
    %218 = arith.truncf %217 : vector<8x128xf32> to vector<8x128xbf16>
    %c24 = arith.constant 24 : index
    %c0_180 = arith.constant 0 : index
    %c0_181 = arith.constant 0 : index
    %219 = vector.load %arg4[%c24, %c0_180, %c0_181] : memref<25x128x128xbf16, #tpu.memory_space<vmem>>, vector<1x128x128xbf16>
    %220 = vector.shape_cast %219 : vector<1x128x128xbf16> to vector<128x128xbf16>
    %cst_182 = arith.constant dense<0.000000e+00> : vector<8x128xf32>
    %221 = tpu.matmul %218, %220, %cst_182 {dimension_numbers = #tpu.dot_dimension_numbers<[1], [0], [0], [1], [0, 0, 1, 1], [], []>} : vector<8x128xbf16>, vector<128x128xbf16>, vector<8x128xf32> -> vector<8x128xf32>
    %222 = arith.addf %216, %221 : vector<8x128xf32>
    %c2_183 = arith.constant 2 : index
    %c0_184 = arith.constant 0 : index
    %223 = vector.load %arg7[%c2_183, %c0_184] : memref<8x128xf32, #tpu.memory_space<vmem>>, vector<1x128xf32>
    %224 = vector.broadcast %223 : vector<1x128xf32> to vector<8x128xf32>
    %225 = arith.addf %222, %224 : vector<8x128xf32>
    %cst_185 = arith.constant 0.000000e+00 : f32
    %226 = vector.broadcast %cst_185 : f32 to vector<8x128xf32>
    %227 = arith.maximumf %225, %226 : vector<8x128xf32>
    %228 = arith.truncf %227 : vector<8x128xf32> to vector<8x128xbf16>
    %c0_186 = arith.constant 0 : index
    %c0_187 = arith.constant 0 : index
    %229 = vector.load %arg5[%c0_186, %c0_187] : memref<128x128xbf16, #tpu.memory_space<vmem>>, vector<128x128xbf16>
    %cst_188 = arith.constant dense<0.000000e+00> : vector<8x128xf32>
    %230 = tpu.matmul %228, %229, %cst_188 {dimension_numbers = #tpu.dot_dimension_numbers<[1], [0], [0], [1], [0, 0, 1, 1], [], []>} : vector<8x128xbf16>, vector<128x128xbf16>, vector<8x128xf32> -> vector<8x128xf32>
    %c3_189 = arith.constant 3 : index
    %c0_190 = arith.constant 0 : index
    %231 = vector.load %arg7[%c3_189, %c0_190] : memref<8x128xf32, #tpu.memory_space<vmem>>, vector<1x128xf32>
    %232 = vector.broadcast %231 : vector<1x128xf32> to vector<8x128xf32>
    %233 = arith.addf %230, %232 : vector<8x128xf32>
    %cst_191 = arith.constant 0.000000e+00 : f32
    %234 = vector.broadcast %cst_191 : f32 to vector<8x128xf32>
    %235 = arith.maximumf %233, %234 : vector<8x128xf32>
    %236 = arith.truncf %235 : vector<8x128xf32> to vector<8x128xbf16>
    %c0_192 = arith.constant 0 : index
    %c0_193 = arith.constant 0 : index
    %237 = vector.load %arg6[%c0_192, %c0_193] : memref<128x128xbf16, #tpu.memory_space<vmem>>, vector<128x128xbf16>
    %cst_194 = arith.constant dense<0.000000e+00> : vector<8x128xf32>
    %238 = tpu.matmul %236, %237, %cst_194 {dimension_numbers = #tpu.dot_dimension_numbers<[1], [0], [0], [1], [0, 0, 1, 1], [], []>} : vector<8x128xbf16>, vector<128x128xbf16>, vector<8x128xf32> -> vector<8x128xf32>
    %c4_195 = arith.constant 4 : index
    %c0_196 = arith.constant 0 : index
    %239 = vector.load %arg7[%c4_195, %c0_196] : memref<8x128xf32, #tpu.memory_space<vmem>>, vector<1x128xf32>
    %240 = vector.broadcast %239 : vector<1x128xf32> to vector<8x128xf32>
    %241 = arith.addf %238, %240 : vector<8x128xf32>
    %c0_197 = arith.constant 0 : index
    %c0_198 = arith.constant 0 : index
    %c0_199 = arith.constant 0 : index
    %242 = vector.load %arg8[%c0_197, %c0_198, %c0_199] : memref<1x8x128xf32, #tpu.memory_space<vmem>>, vector<1x8x128xf32>
    %243 = vector.shape_cast %242 : vector<1x8x128xf32> to vector<8x128xf32>
    %244 = vector.shape_cast %241 : vector<8x128xf32> to vector<1x8x128xf32>
    tpu.vector_store %arg8[%c0_197, %c0_198, %c0_199], %244 {strides = array<i32>} : memref<1x8x128xf32, #tpu.memory_space<vmem>>, vector<1x8x128xf32>,
    return
  }
  func.func @transform_0(%arg0: i32) -> (i32, i32) {
    %c0_i32 = arith.constant 0 : i32
    %c0_i32_0 = arith.constant 0 : i32
    return %arg0, %c0_i32 : i32, i32
  }
  func.func @transform_1(%arg0: i32) -> (i32, i32) {
    %c0_i32 = arith.constant 0 : i32
    %c0_i32_0 = arith.constant 0 : i32
    %c0_i32_1 = arith.constant 0 : i32
    return %c0_i32, %c0_i32_0 : i32, i32
  }
  func.func @transform_2(%arg0: i32) -> (i32, i32, i32) {
    %c0_i32 = arith.constant 0 : i32
    %c0_i32_0 = arith.constant 0 : i32
    %c0_i32_1 = arith.constant 0 : i32
    %c0_i32_2 = arith.constant 0 : i32
    return %c0_i32, %c0_i32_0, %c0_i32_1 : i32, i32, i32
  }
  func.func @transform_3(%arg0: i32) -> (i32, i32, i32) {
    %c0_i32 = arith.constant 0 : i32
    %c0_i32_0 = arith.constant 0 : i32
    %c0_i32_1 = arith.constant 0 : i32
    %c0_i32_2 = arith.constant 0 : i32
    return %c0_i32, %c0_i32_0, %c0_i32_1 : i32, i32, i32
  }
  func.func @transform_4(%arg0: i32) -> (i32, i32) {
    %c0_i32 = arith.constant 0 : i32
    %c0_i32_0 = arith.constant 0 : i32
    %c0_i32_1 = arith.constant 0 : i32
    return %c0_i32, %c0_i32_0 : i32, i32
  }
  func.func @transform_5(%arg0: i32) -> (i32, i32) {
    %c0_i32 = arith.constant 0 : i32
    %c0_i32_0 = arith.constant 0 : i32
    %c0_i32_1 = arith.constant 0 : i32
    return %c0_i32, %c0_i32_0 : i32, i32
  }
  func.func @transform_6(%arg0: i32) -> (i32, i32) {
    %c0_i32 = arith.constant 0 : i32
    %c0_i32_0 = arith.constant 0 : i32
    %c0_i32_1 = arith.constant 0 : i32
    return %c0_i32, %c0_i32_0 : i32, i32
  }
  func.func @transform_7(%arg0: i32) -> (i32, i32, i32) {
    %c0_i32 = arith.constant 0 : i32
    %c0_i32_0 = arith.constant 0 : i32
    %c0_i32_1 = arith.constant 0 : i32
    return %arg0, %c0_i32, %c0_i32_0 : i32, i32, i32
  }
}

</mosaic_0001>

<bundles_post_ra>
// kernel: lenet_forward.1
= control target key start
LH: loop header
LB: loop body
LE: loop exit
PB: predicated region body
PF: predicated region fallthrough
CT: control target
= control target key end

     0   :  { %s9604_s24 = smov 0   ;;  %s11567_s0 = inlined_call_operand.vmem [shape: bf16[1632,128], index: 0, kind: input, shape index: {}]   ;;  %s11568_s1 = inlined_call_operand.vmem [shape: bf16[128,128], index: 1, kind: input, shape index: {}]   ;;  %s11569_s2 = inlined_call_operand.vmem [shape: bf16[5,128,128], index: 2, kind: input, shape index: {}]   ;;  %s11570_s3 = inlined_call_operand.vmem [shape: bf16[25,128,128], index: 3, kind: input, shape index: {}]   ;;  %s11571_s4 = inlined_call_operand.vmem [shape: bf16[128,128], index: 4, kind: input, shape index: {}]   ;;  %s11572_s5 = inlined_call_operand.vmem [shape: bf16[128,128], index: 5, kind: input, shape index: {}]   ;;  %s11573_s6 = inlined_call_operand.vmem [shape: f32[8,128], index: 6, kind: input, shape index: {}]   ;;  %s11574_s7 = inlined_call_operand.vmem [shape: f32[2,8,128], index: 7, kind: output, shape index: {}]  }
   0x1 LB: > { %s9610_s25 = sadd.s32 4294967295, %s9558_s24   ;;  %p6889_p0 = scmp.ge.s32.totalorder %s9558_s24, 1  ;;  %s9558_s24 = sphi %s9604_s24, %s17_s24  }
   0x2   : > { %p238_p1 = scmp.lt.s32.totalorder %s9558_s24, 3 }
   0x4   : > { %p239_p2 = pnand %p6889_p0, %p238_p1 }
   0x6   : > { %242 = sbr.rel (%p239_p2) target bundleno = 2051 (0x803), region = 48 }
   0xb   : > { %v8876_v0 = vld [vmem:[%s11568_s1 + $0x38] sm:$0xff]  ;;  %v8875_v1 = vld [vmem:[%s11568_s1 + $0x30] sm:$0xff]  ;;  %v8874_v2 = vld [vmem:[%s11568_s1 + $0x28] sm:$0xff]  ;;  %s269_s11 = smul.u32 102, %s9610_s25  ;;  %s9560_s28 = smov 24   ;;  %vm2949_vm0 = vcmask 1045504  }
   0xc   : > { %753 = vmatpush.bf16.msra.mxu0 %v8876_v0  ;;  %9485 = vmatpush.bf16.msra.mxu2 %v8876_v0  ;;  %v8873_v3 = vld [vmem:[%s11568_s1 + $0x20] sm:$0xff]  ;;  %v8872_v4 = vld [vmem:[%s11568_s1 + $0x18] sm:$0xff]  ;;  %v8871_v5 = vld [vmem:[%s11568_s1 + $0x10] sm:$0xff]  ;;  %s9561_s29 = smov 16   ;;  %s9562_s30 = smov 8  }
   0xd   : > { %9484 = vmatpush.bf16.msra.mxu1 %v8876_v0  ;;  %p270_p3 = scmp.lt.s32.totalorder %s269_s11, 203  ;;  %v8870_v6 = vld [vmem:[%s11568_s1 + $0x8] sm:$0xff]  ;;  %v8869_v7 = vld [vmem:[%s11568_s1] sm:$0xff]  ;;  %s9563_s8 = smov 32  }
   0xe   : > { %v9655_v16 = vld [vmem:[%s11573_s6] ss:$0 sm:$0xff]  ;;  %p275_p4 = scmp.lt.s32.totalorder %s9610_s25, 1 }
   0xf   : > { %s11630_s11 = smov (!%p270_p3, %s269_s11), 203 }
  0x10   : > { %754 = vmatpush.bf16.msra.mxu0 %v8875_v1  ;;  %9487 = vmatpush.bf16.msra.mxu2 %v8875_v1  ;;  %s6890_s18 = sshll.u32 %s11630_s11, 2  ;;  %s11632_s25 = smov (!%p275_p4, %s9610_s25), 1 }
  0x11   : > { %9486 = vmatpush.bf16.msra.mxu1 %v8875_v1  ;;  %s9642_s23 = scalar_lea.vmem %s11567_s0, %s6890_s18  ;;  %s6891_s12 = sshll.u32 %s11632_s25, 3 }
  0x12   : > { %v8818_v8 = vld [vmem:[%s9642_s23] sm:$0xff]  ;;  %v8819_v9 = vld [vmem:[%s9642_s23 + $0x8] sm:$0xff]  ;;  %v8820_v10 = vld [vmem:[%s9642_s23 + $0x10] sm:$0xff] }
  0x13   : > { %v8821_v11 = vld [vmem:[%s9642_s23 + $0x18] sm:$0xff]  ;;  %v8822_v12 = vld [vmem:[%s9642_s23 + $0x20] sm:$0xff]  ;;  %v8823_v13 = vld [vmem:[%s9642_s23 + $0x28] sm:$0xff] }
  0x14   : > { %755 = vmatpush.bf16.msra.mxu0 %v8874_v2  ;;  %9489 = vmatpush.bf16.msra.mxu2 %v8874_v2  ;;  %v8824_v14 = vld [vmem:[%s9642_s23 + $0x30] sm:$0xff]  ;;  %v8825_v15 = vld [vmem:[%s9642_s23 + $0x38] sm:$0xff]  ;;  %v8826_v17 = vld [vmem:[%s9642_s23 + $0x40] sm:$0xff] }
  0x15   : > { %9488 = vmatpush.bf16.msra.mxu1 %v8874_v2  ;;  %v8827_v24 = vld [vmem:[%s9642_s23 + $0x48] sm:$0xff]  ;;  %v8828_v31 = vld [vmem:[%s9642_s23 + $0x50] sm:$0xff]  ;;  %v8829_v38 = vld [vmem:[%s9642_s23 + $0x58] sm:$0xff] }
  0x16   : > { %v8830_v53 = vld [vmem:[%s9642_s23 + $0x60] sm:$0xff] }
  0x18   : > { %756 = vmatpush.bf16.msra.mxu0 %v8873_v3  ;;  %9491 = vmatpush.bf16.msra.mxu2 %v8873_v3 }
  0x19   : > { %9490 = vmatpush.bf16.msra.mxu1 %v8873_v3 }
  0x1c   : > { %757 = vmatpush.bf16.msra.mxu0 %v8872_v4  ;;  %9493 = vmatpush.bf16.msra.mxu2 %v8872_v4 }
  0x1d   : > { %9492 = vmatpush.bf16.msra.mxu1 %v8872_v4  ;;  %v8831_v4 = vld [vmem:[%s9642_s23 + $0x68] sm:$0xff] }
  0x20   : > { %758 = vmatpush.bf16.msra.mxu0 %v8871_v5  ;;  %9495 = vmatpush.bf16.msra.mxu2 %v8871_v5 }
  0x21   : > { %9494 = vmatpush.bf16.msra.mxu1 %v8871_v5 }
  0x24   : > { %759 = vmatpush.bf16.msra.mxu0 %v8870_v6  ;;  %9497 = vmatpush.bf16.msra.mxu2 %v8870_v6 }
  0x25   : > { %9496 = vmatpush.bf16.msra.mxu1 %v8870_v6 }
  0x28   : > { %760 = vmatpush.bf16.msra.mxu0 %v8869_v7  ;;  %9499 = vmatpush.bf16.msra.mxu2 %v8869_v7 }
  0x29   : > { %9498 = vmatpush.bf16.msra.mxu1 %v8869_v7 }
  0x2b   : > { %761 = vmatmul.bf16.vlgmr.msra.gmra.mxu0 %v8818_v8 }
  0x3b   : > { %766 = vmatmul.bf16.gmra.mxu0 %v8819_v9 }
  0x4b   : > { %771 = vmatmul.bf16.gmra.mxu0 %v8820_v10 }
  0x5b   : > { %776 = vmatmul.bf16.gmra.mxu0 %v8821_v11 }
  0x6b   : > { %781 = vmatmul.bf16.gmra.mxu0 %v8822_v12 }
  0x7b   : > { %786 = vmatmul.bf16.gmra.mxu0 %v8823_v13 }
  0x8b   : > { %791 = vmatmul.bf16.gmra.mxu0 %v8824_v14 }
  0x9b   : > { %796 = vmatmul.bf16.gmra.mxu0 %v8825_v15 }
  0xa8   : > { %v762_v18 = vpop.f32.mrf.mxu0 }
  0xa9   : > { %v763_v19 = vadd.f32 %v9655_v16, %v762_v18 }
  0xab   : > { %v1017_v20 = vmax.f32 %v763_v19, 0.0  ;;  %801 = vmatmul.bf16.gmra.mxu0 %v8826_v17 }
  0xad   : > { %1119 = vst [vmem:[#allocation2] sm:$0xff] %v1017_v20 }
  0xb0   : > { %v764_v21 = vpop.f32.mrf.mxu0 }
  0xb1   : > { %v765_v22 = vadd.f32 %v9655_v16, %v764_v21 }
  0xb3   : > { %v1018_v23 = vmax.f32 %v765_v22, 0.0 }
  0xb5   : > { %1120 = vst [vmem:[#allocation2 + $0x8] sm:$0xff] %v1018_v23 }
  0xb8   : > { %v767_v25 = vpop.f32.mrf.mxu0 }
  0xb9   : > { %v768_v26 = vadd.f32 %v9655_v16, %v767_v25 }
  0xbb   : > { %v1019_v27 = vmax.f32 %v768_v26, 0.0  ;;  %806 = vmatmul.bf16.gmra.mxu0 %v8827_v24  ;;  %v8832_v24 = vld [vmem:[%s9642_s23 + $0x70] sm:$0xff] }
  0xbc   : > { %v1221_v39 = vld [vmem:[#allocation2] ss:$2 sm:$0xff]  ;;  %v1319_v40 = vld [vmem:[#allocation2 + $0x1] ss:$2 sm:$0xff] }
  0xbd   : > { %1121 = vst [vmem:[#allocation2 + $0x10] sm:$0xff] %v1019_v27  ;;  %v1416_v43 = vadd.f32 %v1319_v40, %v1221_v39 }
  0xc0   : > { %v769_v28 = vpop.f32.mrf.mxu0 }
  0xc1   : > { %v770_v29 = vadd.f32 %v9655_v16, %v769_v28 }
  0xc3   : > { %v1020_v30 = vmax.f32 %v770_v29, 0.0 }
  0xc5   : > { %1122 = vst [vmem:[#allocation2 + $0x18] sm:$0xff] %v1020_v30 }
  0xc8   : > { %v772_v32 = vpop.f32.mrf.mxu0 }
  0xc9   : > { %v773_v33 = vadd.f32 %v9655_v16, %v772_v32 }
  0xcb   : > { %v1021_v34 = vmax.f32 %v773_v33, 0.0  ;;  %811 = vmatmul.bf16.gmra.mxu0 %v8828_v31 }
  0xcc   : > { %v1223_v54 = vld [vmem:[#allocation2 + $0x10] ss:$2 sm:$0xff]  ;;  %v1321_v55 = vld [vmem:[#allocation2 + $0x11] ss:$2 sm:$0xff] }
  0xcd   : > { %1123 = vst [vmem:[#allocation2 + $0x20] sm:$0xff] %v1021_v34  ;;  %v1417_v58 = vadd.f32 %v1321_v55, %v1223_v54 }
  0xd0   : > { %v774_v35 = vpop.f32.mrf.mxu0 }
  0xd1   : > { %v775_v36 = vadd.f32 %v9655_v16, %v774_v35 }
  0xd3   : > { %v1022_v37 = vmax.f32 %v775_v36, 0.0 }
  0xd5   : > { %1124 = vst [vmem:[#allocation2 + $0x28] sm:$0xff] %v1022_v37 }
  0xd8   : > { %v777_v41 = vpop.f32.mrf.mxu0 }
  0xd9   : > { %v778_v42 = vadd.f32 %v9655_v16, %v777_v41 }
  0xdb   : > { %v1023_v44 = vmax.f32 %v778_v42, 0.0  ;;  %816 = vmatmul.bf16.gmra.mxu0 %v8829_v38 }
  0xdc   : > { %v1466_v45 = vld [vmem:[#allocation2 + $0x1c] ss:$2 sm:$0xff]  ;;  %v1613_v47 = vld [vmem:[#allocation2 + $0x1d] ss:$2 sm:$0xff] }
  0xdd   : > { %1125 = vst [vmem:[#allocation2 + $0x30] sm:$0xff] %v1023_v44  ;;  %v1563_v46 = vadd.f32 %v1466_v45, %v1416_v43  ;;  %v1225_v5 = vld [vmem:[#allocation2 + $0x20] ss:$2 sm:$0xff]  ;;  %v1323_v6 = vld [vmem:[#allocation2 + $0x21] ss:$2 sm:$0xff]  ;;  %v8833_v43 = vld [vmem:[%s9642_s23 + $0x78] sm:$0xff] }
  0xde   : > { %v1418_v12 = vadd.f32 %v1323_v6, %v1225_v5 }
  0xdf   : > { %v1710_v48 = vadd.f32 %v1613_v47, %v1563_v46 }
  0xe0   : > { %v779_v49 = vpop.f32.mrf.mxu0 }
  0xe1   : > { %v780_v50 = vadd.f32 %v9655_v16, %v779_v49  ;;  %v9669_v51 = vmul.f32 0.25, %v1710_v48 }
  0xe3   : > { %v1024_v52 = vmax.f32 %v780_v50, 0.0  ;;  %1808 = vst [vmem:[#allocation3] sm:$0xff] %v9669_v51 }
  0xe5   : > { %1126 = vst [vmem:[#allocation2 + $0x38] sm:$0xff] %v1024_v52 }
  0xe8   : > { %v782_v56 = vpop.f32.mrf.mxu0 }
  0xe9   : > { %v783_v57 = vadd.f32 %v9655_v16, %v782_v56 }
  0xeb   : > { %v1025_v59 = vmax.f32 %v783_v57, 0.0  ;;  %821 = vmatmul.bf16.gmra.mxu0 %v8830_v53 }
  0xec   : > { %v1468_v60 = vld [vmem:[#allocation2 + $0x2c] ss:$2 sm:$0xff]  ;;  %v1615_v62 = vld [vmem:[#allocation2 + $0x2d] ss:$2 sm:$0xff] }
  0xed   : > { %1127 = vst [vmem:[#allocation2 + $0x40] sm:$0xff] %v1025_v59  ;;  %v1564_v61 = vadd.f32 %v1468_v60, %v1417_v58  ;;  %v1227_v25 = vld [vmem:[#allocation2 + $0x30] ss:$2 sm:$0xff]  ;;  %v1325_v26 = vld [vmem:[#allocation2 + $0x31] ss:$2 sm:$0xff] }
  0xee   : > { %v1419_v32 = vadd.f32 %v1325_v26, %v1227_v25 }
  0xef   : > { %v1711_v63 = vadd.f32 %v1615_v62, %v1564_v61 }
  0xf0   : > { %v784_v0 = vpop.f32.mrf.mxu0 }
  0xf1   : > { %v785_v1 = vadd.f32 %v9655_v16, %v784_v0  ;;  %v9675_v2 = vmul.f32 0.25, %v1711_v63  ;;  %v8834_v63 = vld [vmem:[%s9642_s23 + $0x80] sm:$0xff] }
  0xf3   : > { %v1026_v3 = vmax.f32 %v785_v1, 0.0  ;;  %1809 = vst [vmem:[#allocation3 + $0x8] sm:$0xff] %v9675_v2 }
  0xf5   : > { %1128 = vst [vmem:[#allocation2 + $0x48] sm:$0xff] %v1026_v3 }
  0xf8   : > { %v787_v7 = vpop.f32.mrf.mxu0 }
  0xf9   : > { %v788_v8 = vadd.f32 %v9655_v16, %v787_v7 }
  0xfa   : > { %v2298_v9 = vld [vmem:[#allocation3 + $0x3] sm:$0xff] }
  0xfb   : > { %v2102_v10 = vld [vmem:[#allocation3 + $0x2] sm:$0xff]  ;;  %v1027_v13 = vmax.f32 %v788_v8, 0.0  ;;  %826 = vmatmul.bf16.gmra.mxu0 %v8831_v4  ;;  %2347 = vrot.lane.b32.xlu1 %v2298_v9, %s9560_s28 }
  0xfc   : > { %v1906_v11 = vld [vmem:[#allocation3 + $0x1] sm:$0xff]  ;;  %v1470_v14 = vld [vmem:[#allocation2 + $0x3c] ss:$2 sm:$0xff]  ;;  %2151 = vrot.lane.b32.xlu2 %v2102_v10, %s9561_s29  ;;  %v1617_v17 = vld [vmem:[#allocation2 + $0x3d] ss:$2 sm:$0xff] }
  0xfd   : > { %1955 = vrot.lane.b32.xlu0 %v1906_v11, %s9562_s30  ;;  %1129 = vst [vmem:[#allocation2 + $0x50] sm:$0xff] %v1027_v13  ;;  %v1565_v15 = vadd.f32 %v1470_v14, %v1418_v12  ;;  %v2494_v23 = vld [vmem:[#allocation3 + $0x4] sm:$0xff]  ;;  %v1229_v44 = vld [vmem:[#allocation2 + $0x40] ss:$2 sm:$0xff]  ;;  %v1327_v45 = vld [vmem:[#allocation2 + $0x41] ss:$2 sm:$0xff] }
  0xfe   : > { %v1420_v52 = vadd.f32 %v1327_v45, %v1229_v44 }
  0xff   : > { %v1712_v18 = vadd.f32 %v1617_v17, %v1565_v15 }
 0x100   : > { %v789_v19 = vpop.f32.mrf.mxu0 }
 0x101   : > { %v790_v20 = vadd.f32 %v9655_v16, %v789_v19  ;;  %v9684_v21 = vmul.f32 0.25, %v1712_v18 }
 0x103   : > { %v1028_v22 = vmax.f32 %v790_v20, 0.0  ;;  %1810 = vst [vmem:[#allocation3 + $0x10] sm:$0xff] %v9684_v21  ;;  %v8835_v20 = vld [vmem:[%s9642_s23 + $0x88] sm:$0xff] }
 0x105   : > { %2543 = vrot.lane.b32.xlu0 %v2494_v23, %s9563_s8  ;;  %1130 = vst [vmem:[#allocation2 + $0x58] sm:$0xff] %v1028_v22 }
 0x108   : > { %v792_v27 = vpop.f32.mrf.mxu0 }
 0x109   : > { %v793_v28 = vadd.f32 %v9655_v16, %v792_v27 }
 0x10a   : > { %v2495_v29 = vld [vmem:[#allocation3 + $0xc] sm:$0xff] }
 0x10b   : > { %v2299_v30 = vld [vmem:[#allocation3 + $0xb] sm:$0xff]  ;;  %v1029_v33 = vmax.f32 %v793_v28, 0.0  ;;  %831 = vmatmul.bf16.gmra.mxu0 %v8832_v24  ;;  %2545 = vrot.lane.b32.xlu1 %v2495_v29, %s9563_s8 }
 0x10c   : > { %v1907_v31 = vld [vmem:[#allocation3 + $0x9] sm:$0xff]  ;;  %2349 = vrot.lane.b32.xlu2 %v2299_v30, %s9560_s28 }
 0x10d   : > { %v1472_v34 = vld [vmem:[#allocation2 + $0x4c] ss:$2 sm:$0xff]  ;;  %1957 = vrot.lane.b32.xlu0 %v1907_v31, %s9562_s30  ;;  %1131 = vst [vmem:[#allocation2 + $0x60] sm:$0xff] %v1029_v33  ;;  %v1619_v36 = vld [vmem:[#allocation2 + $0x4d] ss:$2 sm:$0xff] }
 0x10e   : > { %v1566_v35 = vadd.f32 %v1472_v34, %v1419_v32  ;;  %v2103_v42 = vld [vmem:[#allocation3 + $0xa] sm:$0xff] }
 0x10f   : > { %v1231_v0 = vld [vmem:[#allocation2 + $0x50] ss:$2 sm:$0xff]  ;;  %v1329_v1 = vld [vmem:[#allocation2 + $0x51] ss:$2 sm:$0xff] }
 0x110   : > { %v1713_v37 = vadd.f32 %v1619_v36, %v1566_v35  ;;  %v794_v38 = vpop.f32.mrf.mxu0  ;;  %v1421_v8 = vadd.f32 %v1329_v1, %v1231_v0 }
 0x111   : > { %v795_v39 = vadd.f32 %v9655_v16, %v794_v38 }
 0x112   : > { %v9694_v40 = vmul.f32 0.25, %v1713_v37 }
 0x113   : > { %v1030_v41 = vmax.f32 %v795_v39, 0.0 }
 0x114   : > { %1811 = vst [vmem:[#allocation3 + $0x18] sm:$0xff] %v9694_v40 }
 0x115   : > { %2153 = vrot.lane.b32.xlu0 %v2103_v42, %s9561_s29  ;;  %1132 = vst [vmem:[#allocation2 + $0x68] sm:$0xff] %v1030_v41  ;;  %v8836_v41 = vld [vmem:[%s9642_s23 + $0x90] sm:$0xff] }
 0x118   : > { %v797_v46 = vpop.f32.mrf.mxu0 }
 0x119   : > { %v798_v47 = vadd.f32 %v9655_v16, %v797_v46 }
 0x11b   : > { %v1908_v48 = vld [vmem:[#allocation3 + $0x11] sm:$0xff]  ;;  %v1031_v53 = vmax.f32 %v798_v47, 0.0  ;;  %836 = vmatmul.bf16.gmra.mxu0 %v8833_v43 }
 0x11c   : > { %v2496_v49 = vld [vmem:[#allocation3 + $0x14] sm:$0xff]  ;;  %1959 = vrot.lane.b32.xlu1 %v1908_v48, %s9562_s30 }
 0x11d   : > { %v2300_v50 = vld [vmem:[#allocation3 + $0x13] sm:$0xff]  ;;  %2547 = vrot.lane.b32.xlu2 %v2496_v49, %s9563_s8  ;;  %1133 = vst [vmem:[#allocation2 + $0x70] sm:$0xff] %v1031_v53 }
 0x11e   : > { %v1474_v54 = vld [vmem:[#allocation2 + $0x5c] ss:$2 sm:$0xff]  ;;  %2351 = vrot.lane.b32.xlu0 %v2300_v50, %s9560_s28  ;;  %v1621_v56 = vld [vmem:[#allocation2 + $0x5d] ss:$2 sm:$0xff] }
 0x11f   : > { %v1567_v55 = vadd.f32 %v1474_v54, %v1420_v52  ;;  %v2104_v61 = vld [vmem:[#allocation3 + $0x12] sm:$0xff] }
 0x120   : > { %v799_v58 = vpop.f32.mrf.mxu0  ;;  %v1233_v22 = vld [vmem:[#allocation2 + $0x60] ss:$2 sm:$0xff]  ;;  %v1331_v23 = vld [vmem:[#allocation2 + $0x61] ss:$2 sm:$0xff] }
 0x121   : > { %v1714_v57 = vadd.f32 %v1621_v56, %v1567_v55  ;;  %v800_v59 = vadd.f32 %v9655_v16, %v799_v58  ;;  %v1422_v29 = vadd.f32 %v1331_v23, %v1233_v22 }
 0x123   : > { %v9704_v60 = vmul.f32 0.25, %v1714_v57  ;;  %v1032_v62 = vmax.f32 %v800_v59, 0.0 }
 0x124   : > { %2155 = vrot.lane.b32.xlu1 %v2104_v61, %s9561_s29 }
 0x125   : > { %1812 = vst [vmem:[#allocation3 + $0x20] sm:$0xff] %v9704_v60 }
 0x126   : > { %1134 = vst [vmem:[#allocation2 + $0x78] sm:$0xff] %v1032_v62  ;;  %v8837_v62 = vld [vmem:[%s9642_s23 + $0x98] sm:$0xff] }
 0x128   : > { %v802_v3 = vpop.f32.mrf.mxu0 }
 0x129   : > { %v803_v4 = vadd.f32 %v9655_v16, %v802_v3 }
 0x12b   : > { %v1033_v9 = vmax.f32 %v803_v4, 0.0  ;;  %841 = vmatmul.bf16.gmra.mxu0 %v8834_v63  ;;  %v8886_v63 = vld [vmem:[%s11569_s2 + $0x38] sm:$0xff] }
 0x12c   : > { %v1909_v5 = vld [vmem:[#allocation3 + $0x19] sm:$0xff]  ;;  %3243 = vmatpush.bf16.msrb.mxu2 %v8886_v63 }
 0x12d   : > { %v2105_v6 = vld [vmem:[#allocation3 + $0x1a] sm:$0xff]  ;;  %1961 = vrot.lane.b32.xlu1 %v1909_v5, %s9562_s30  ;;  %1135 = vst [vmem:[#allocation2 + $0x80] sm:$0xff] %v1033_v9 }
 0x12e   : > { %v2497_v7 = vld [vmem:[#allocation3 + $0x1c] sm:$0xff]  ;;  %2157 = vrot.lane.b32.xlu2 %v2105_v6, %s9561_s29 }
 0x12f   : > { %v1476_v10 = vld [vmem:[#allocation2 + $0x6c] ss:$2 sm:$0xff]  ;;  %2549 = vrot.lane.b32.xlu0 %v2497_v7, %s9563_s8  ;;  %v1623_v12 = vld [vmem:[#allocation2 + $0x6d] ss:$2 sm:$0xff] }
 0x130   : > { %v1568_v11 = vadd.f32 %v1476_v10, %v1421_v8  ;;  %v804_v14 = vpop.f32.mrf.mxu0  ;;  %v2301_v18 = vld [vmem:[#allocation3 + $0x1b] sm:$0xff] }
 0x131   : > { %v805_v15 = vadd.f32 %v9655_v16, %v804_v14  ;;  %v1235_v42 = vld [vmem:[#allocation2 + $0x70] ss:$2 sm:$0xff]  ;;  %v1333_v43 = vld [vmem:[#allocation2 + $0x71] ss:$2 sm:$0xff] }
 0x132   : > { %v1715_v13 = vadd.f32 %v1623_v12, %v1568_v11  ;;  %v1423_v49 = vadd.f32 %v1333_v43, %v1235_v42  ;;  %v8885_v10 = vld [vmem:[%s11569_s2 + $0x30] sm:$0xff] }
 0x133   : > { %v1034_v19 = vmax.f32 %v805_v15, 0.0  ;;  %3244 = vmatpush.bf16.msrb.mxu2 %v8885_v10  ;;  %v8884_v15 = vld [vmem:[%s11569_s2 + $0x28] sm:$0xff] }
 0x134   : > { %v9714_v17 = vmul.f32 0.25, %v1715_v13 }
 0x135   : > { %2353 = vrot.lane.b32.xlu1 %v2301_v18, %s9560_s28  ;;  %1136 = vst [vmem:[#allocation2 + $0x88] sm:$0xff] %v1034_v19 }
 0x136   : > { %1813 = vst [vmem:[#allocation3 + $0x28] sm:$0xff] %v9714_v17 }
 0x137   : > { %3245 = vmatpush.bf16.msrb.mxu2 %v8884_v15 }
 0x138   : > { %v807_v24 = vpop.f32.mrf.mxu0 }
 0x139   : > { %v808_v25 = vadd.f32 %v9655_v16, %v807_v24  ;;  %v8883_v24 = vld [vmem:[%s11569_s2 + $0x20] sm:$0xff] }
 0x13b   : > { %v1035_v30 = vmax.f32 %v808_v25, 0.0  ;;  %846 = vmatmul.bf16.gmra.mxu0 %v8835_v20  ;;  %3246 = vmatpush.bf16.msrb.mxu2 %v8883_v24  ;;  %v8868_v25 = vld [vmem:[%s9642_s23 + $0x190] sm:$0xff] }
 0x13c   : > { %v1478_v31 = vld [vmem:[#allocation2 + $0x7c] ss:$2 sm:$0xff]  ;;  %v1625_v33 = vld [vmem:[#allocation2 + $0x7d] ss:$2 sm:$0xff]  ;;  %1011 = vmatmul.bf16.vlgmr.msra.gmra.mxu2 %v8868_v25  ;;  %v8840_v25 = vld [vmem:[%s9642_s23 + $0xb0] sm:$0xff] }
 0x13d   : > { %v2498_v26 = vld [vmem:[#allocation3 + $0x24] sm:$0xff]  ;;  %1137 = vst [vmem:[#allocation2 + $0x90] sm:$0xff] %v1035_v30  ;;  %v1569_v32 = vadd.f32 %v1478_v31, %v1422_v29  ;;  %v1237_v0 = vld [vmem:[#allocation2 + $0x80] ss:$2 sm:$0xff]  ;;  %v1335_v1 = vld [vmem:[#allocation2 + $0x81] ss:$2 sm:$0xff] }
 0x13e   : > { %v1910_v27 = vld [vmem:[#allocation3 + $0x21] sm:$0xff]  ;;  %2551 = vrot.lane.b32.xlu1 %v2498_v26, %s9563_s8  ;;  %v1424_v8 = vadd.f32 %v1335_v1, %v1237_v0  ;;  %v8838_v26 = vld [vmem:[%s9642_s23 + $0xa0] sm:$0xff] }
 0x13f   : > { %v2106_v28 = vld [vmem:[#allocation3 + $0x22] sm:$0xff]  ;;  %1963 = vrot.lane.b32.xlu2 %v1910_v27, %s9562_s30  ;;  %v1716_v34 = vadd.f32 %v1625_v33, %v1569_v32 }
 0x140   : > { %2159 = vrot.lane.b32.xlu0 %v2106_v28, %s9561_s29  ;;  %v809_v35 = vpop.f32.mrf.mxu0  ;;  %v2302_v39 = vld [vmem:[#allocation3 + $0x23] sm:$0xff] }
 0x141   : > { %v810_v36 = vadd.f32 %v9655_v16, %v809_v35  ;;  %v9724_v37 = vmul.f32 0.25, %v1716_v34  ;;  %v8882_v27 = vld [vmem:[%s11569_s2 + $0x18] sm:$0xff] }
 0x142   : > { %3247 = vmatpush.bf16.msrb.mxu2 %v8882_v27 }
 0x143   : > { %v1036_v38 = vmax.f32 %v810_v36, 0.0  ;;  %1814 = vst [vmem:[#allocation3 + $0x30] sm:$0xff] %v9724_v37 }
 0x145   : > { %1138 = vst [vmem:[#allocation2 + $0x98] sm:$0xff] %v1036_v38  ;;  %v8881_v38 = vld [vmem:[%s11569_s2 + $0x10] sm:$0xff] }
 0x146   : > { %3248 = vmatpush.bf16.msrb.mxu2 %v8881_v38 }
 0x147   : > { %2355 = vrot.lane.b32.xlu2 %v2302_v39, %s9560_s28 }
 0x148   : > { %v812_v44 = vpop.f32.mrf.mxu0 }
 0x149   : > { %v813_v45 = vadd.f32 %v9655_v16, %v812_v44 }
 0x14a   : > { %v2107_v46 = vld [vmem:[#allocation3 + $0x2a] sm:$0xff] }
 0x14b   : > { %v1911_v47 = vld [vmem:[#allocation3 + $0x29] sm:$0xff]  ;;  %v1037_v50 = vmax.f32 %v813_v45, 0.0  ;;  %851 = vmatmul.bf16.gmra.mxu0 %v8836_v41  ;;  %2161 = vrot.lane.b32.xlu1 %v2107_v46, %s9561_s29  ;;  %v8880_v45 = vld [vmem:[%s11569_s2 + $0x8] sm:$0xff] }
 0x14c   : > { %v2303_v48 = vld [vmem:[#allocation3 + $0x2b] sm:$0xff]  ;;  %v1480_v52 = vld [vmem:[#allocation2 + $0x8c] ss:$2 sm:$0xff]  ;;  %3249 = vmatpush.bf16.msrb.mxu2 %v8880_v45 }
 0x14d   : > { %2357 = vrot.lane.b32.xlu0 %v2303_v48, %s9560_s28  ;;  %1139 = vst [vmem:[#allocation2 + $0xa0] sm:$0xff] %v1037_v50  ;;  %v1570_v53 = vadd.f32 %v1480_v52, %v1423_v49  ;;  %v1627_v54 = vld [vmem:[#allocation2 + $0x8d] ss:$2 sm:$0xff]  ;;  %v2499_v61 = vld [vmem:[#allocation3 + $0x2c] sm:$0xff] }
 0x14e   : > { %v1239_v28 = vld [vmem:[#allocation2 + $0x90] ss:$2 sm:$0xff]  ;;  %v1337_v29 = vld [vmem:[#allocation2 + $0x91] ss:$2 sm:$0xff]  ;;  %v8879_v52 = vld [vmem:[%s11569_s2] sm:$0xff] }
 0x14f   : > { %1965 = vrot.lane.b32.xlu2 %v1911_v47, %s9562_s30  ;;  %v1717_v55 = vadd.f32 %v1627_v54, %v1570_v53  ;;  %v1425_v35 = vadd.f32 %v1337_v29, %v1239_v28  ;;  %v8839_v54 = vld [vmem:[%s9642_s23 + $0xa8] sm:$0xff] }
 0x150   : > { %v814_v56 = vpop.f32.mrf.mxu0  ;;  %3250 = vmatpush.bf16.msrb.mxu2 %v8879_v52 }
 0x151   : > { %v815_v57 = vadd.f32 %v9655_v16, %v814_v56  ;;  %v9734_v58 = vmul.f32 0.25, %v1717_v55 }
 0x153   : > { %v1038_v59 = vmax.f32 %v815_v57, 0.0  ;;  %1815 = vst [vmem:[#allocation3 + $0x38] sm:$0xff] %v9734_v58 }
 0x155   : > { %1140 = vst [vmem:[#allocation2 + $0xa8] sm:$0xff] %v1038_v59 }
 0x157   : > { %2553 = vrot.lane.b32.xlu2 %v2499_v61, %s9563_s8 }
 0x158   : > { %v817_v3 = vpop.f32.mrf.mxu0 }
 0x159   : > { %v818_v4 = vadd.f32 %v9655_v16, %v817_v3 }
 0x15a   : > { %v2304_v5 = vld [vmem:[#allocation3 + $0x33] sm:$0xff] }
 0x15b   : > { %v2108_v6 = vld [vmem:[#allocation3 + $0x32] sm:$0xff]  ;;  %v1039_v9 = vmax.f32 %v818_v4, 0.0  ;;  %856 = vmatmul.bf16.gmra.mxu0 %v8837_v62  ;;  %2359 = vrot.lane.b32.xlu1 %v2304_v5, %s9560_s28 }
 0x15c   : > { %v1912_v7 = vld [vmem:[#allocation3 + $0x31] sm:$0xff] }
 0x15d   : > { %v1482_v11 = vld [vmem:[#allocation2 + $0x9c] ss:$2 sm:$0xff]  ;;  %1967 = vrot.lane.b32.xlu0 %v1912_v7, %s9562_s30  ;;  %1141 = vst [vmem:[#allocation2 + $0xb0] sm:$0xff] %v1039_v9  ;;  %v1629_v13 = vld [vmem:[#allocation2 + $0x9d] ss:$2 sm:$0xff]  ;;  %v2152_v9 = vpop.permute.xlu2 %2151 }
 0x15e   : > { %v1571_v12 = vadd.f32 %v1482_v11, %v1424_v8  ;;  %v2500_v23 = vld [vmem:[#allocation3 + $0x34] sm:$0xff] }
 0x15f   : > { %2163 = vrot.lane.b32.xlu2 %v2108_v6, %s9561_s29  ;;  %v1241_v55 = vld [vmem:[#allocation2 + $0xa0] ss:$2 sm:$0xff]  ;;  %v1339_v56 = vld [vmem:[#allocation2 + $0xa1] ss:$2 sm:$0xff] }
 0x160   : > { %v1718_v14 = vadd.f32 %v1629_v13, %v1571_v12  ;;  %v819_v18 = vpop.f32.mrf.mxu0  ;;  %v1426_v0 = vadd.f32 %v1339_v56, %v1241_v55  ;;  %v8841_v56 = vld [vmem:[%s9642_s23 + $0xb8] sm:$0xff] }
 0x161   : > { %v820_v19 = vadd.f32 %v9655_v16, %v819_v18 }
 0x162   : > { %v9753_v20 = vmul.f32 0.25, %v1718_v14 }
 0x163   : > { %v1040_v22 = vmax.f32 %v820_v19, 0.0 }
 0x164   : > { %1816 = vst [vmem:[#allocation3 + $0x40] sm:$0xff] %v9753_v20 }
 0x165   : > { %2555 = vrot.lane.b32.xlu0 %v2500_v23, %s9563_s8  ;;  %1142 = vst [vmem:[#allocation2 + $0xb8] sm:$0xff] %v1040_v22 }
 0x166   : > { %v2350_v27 = vpop.permute.xlu2 %2349 }
 0x168   : > { %v822_v30 = vpop.f32.mrf.mxu0 }
 0x169   : > { %v823_v31 = vadd.f32 %v9655_v16, %v822_v30 }
 0x16b   : > { %v1913_v32 = vld [vmem:[#allocation3 + $0x39] sm:$0xff]  ;;  %v1041_v36 = vmax.f32 %v823_v31, 0.0  ;;  %861 = vmatmul.bf16.gmra.mxu0 %v8838_v26 }
 0x16c   : > { %v2305_v33 = vld [vmem:[#allocation3 + $0x3b] sm:$0xff]  ;;  %1969 = vrot.lane.b32.xlu1 %v1913_v32, %s9562_s30 }
 0x16d   : > { %v2109_v34 = vld [vmem:[#allocation3 + $0x3a] sm:$0xff]  ;;  %2361 = vrot.lane.b32.xlu2 %v2305_v33, %s9560_s28  ;;  %1143 = vst [vmem:[#allocation2 + $0xc0] sm:$0xff] %v1041_v36  ;;  %v2348_v4 = vpop.permute.xlu1 %2347 }
 0x16e   : > { %v1484_v39 = vld [vmem:[#allocation2 + $0xac] ss:$2 sm:$0xff]  ;;  %2165 = vrot.lane.b32.xlu0 %v2109_v34, %s9561_s29  ;;  %v1631_v42 = vld [vmem:[#allocation2 + $0xad] ss:$2 sm:$0xff] }
 0x16f   : > { %v1572_v41 = vadd.f32 %v1484_v39, %v1425_v35  ;;  %v1956_v43 = vpop.permute.xlu0 %1955  ;;  %v2501_v49 = vld [vmem:[#allocation3 + $0x3c] sm:$0xff] }
 0x170   : > { %v824_v46 = vpop.f32.mrf.mxu0  ;;  %v2053_v11 = vadd.f32 %v1956_v43, %v9669_v51  ;;  %v1243_v26 = vld [vmem:[#allocation2 + $0xb0] ss:$2 sm:$0xff]  ;;  %v1341_v51 = vld [vmem:[#allocation2 + $0xb1] ss:$2 sm:$0xff] }
 0x171   : > { %v1719_v44 = vadd.f32 %v1631_v42, %v1572_v41  ;;  %v825_v47 = vadd.f32 %v9655_v16, %v824_v46  ;;  %v1427_v35 = vadd.f32 %v1341_v51, %v1243_v26 }
 0x172   : > { %v2249_v18 = vadd.f32 %v2152_v9, %v2053_v11 }
 0x173   : > { %v9776_v48 = vmul.f32 0.25, %v1719_v44  ;;  %v1042_v50 = vmax.f32 %v825_v47, 0.0 }
 0x174   : > { %2557 = vrot.lane.b32.xlu1 %v2501_v49, %s9563_s8  ;;  %v2445_v29 = vadd.f32 %v2348_v4, %v2249_v18 }
 0x175   : > { %1817 = vst [vmem:[#allocation3 + $0x48] sm:$0xff] %v9776_v48 }
 0x176   : > { %1144 = vst [vmem:[#allocation2 + $0xc8] sm:$0xff] %v1042_v50 }
 0x177   : > { %v2544_v53 = vpop.permute.xlu0 %2543  ;;  %v2548_v50 = vpop.permute.xlu2 %2547 }
 0x178   : > { %v827_v57 = vpop.f32.mrf.mxu0  ;;  %v2641_v36 = vadd.f32 %v2544_v53, %v2445_v29  ;;  %v8842_v29 = vld [vmem:[%s9642_s23 + $0xc0] sm:$0xff] }
 0x179   : > { %v828_v59 = vadd.f32 %v9655_v16, %v827_v57 }
 0x17b   : > { %v1043_v1 = vmax.f32 %v828_v59, 0.0  ;;  %866 = vmatmul.bf16.gmra.mxu0 %v8839_v54 }
 0x17c   : > { %v2110_v61 = vld [vmem:[#allocation3 + $0x42] sm:$0xff] }
 0x17d   : > { %v1914_v62 = vld [vmem:[#allocation3 + $0x41] sm:$0xff]  ;;  %2167 = vrot.lane.b32.xlu1 %v2110_v61, %s9561_s29  ;;  %v1486_v3 = vld [vmem:[#allocation2 + $0xbc] ss:$2 sm:$0xff]  ;;  %1145 = vst [vmem:[#allocation2 + $0xd0] sm:$0xff] %v1043_v1  ;;  %v1633_v6 = vld [vmem:[#allocation2 + $0xbd] ss:$2 sm:$0xff]  ;;  %v2546_v19 = vpop.permute.xlu1 %2545 }
 0x17e   : > { %v2306_v63 = vld [vmem:[#allocation3 + $0x43] sm:$0xff]  ;;  %1971 = vrot.lane.b32.xlu2 %v1914_v62, %s9562_s30  ;;  %v1573_v5 = vadd.f32 %v1486_v3, %v1426_v0  ;;  %v1245_v57 = vld [vmem:[#allocation2 + $0xc0] ss:$2 sm:$0xff]  ;;  %v1343_v59 = vld [vmem:[#allocation2 + $0xc1] ss:$2 sm:$0xff] }
 0x17f   : > { %2363 = vrot.lane.b32.xlu0 %v2306_v63, %s9560_s28  ;;  %v1958_v7 = vpop.permute.xlu0 %1957  ;;  %v2502_v15 = vld [vmem:[#allocation3 + $0x44] sm:$0xff]  ;;  %v1428_v3 = vadd.f32 %v1343_v59, %v1245_v57  ;;  %v8866_v57 = vld [vmem:[%s9642_s23 + $0x180] sm:$0xff] }
 0x180   : > { %v1720_v8 = vadd.f32 %v1633_v6, %v1573_v5  ;;  %v829_v10 = vpop.f32.mrf.mxu0  ;;  %v2054_v22 = vadd.f32 %v1958_v7, %v9675_v2  ;;  %v8895_v59 = vld [vmem:[%s11569_s2 + $0x78] sm:$0xff]  ;;  %1001 = vmatmul.bf16.vlgmr.msra.gmra.mxu1 %v8866_v57  ;;  %v8889_v57 = vld [vmem:[%s11569_s2 + $0x48] sm:$0xff] }
 0x181   : > { %v830_v12 = vadd.f32 %v9655_v16, %v829_v10  ;;  %3051 = vmatpush.bf16.msrb.mxu1 %v8895_v59 }
 0x182   : > { %v9790_v13 = vmul.f32 0.25, %v1720_v8 }
 0x183   : > { %v1044_v14 = vmax.f32 %v830_v12, 0.0 }
 0x184   : > { %1818 = vst [vmem:[#allocation3 + $0x50] sm:$0xff] %v9790_v13 }
 0x185   : > { %1146 = vst [vmem:[#allocation2 + $0xd8] sm:$0xff] %v1044_v14 }
 0x186   : > { %2559 = vrot.lane.b32.xlu2 %v2502_v15, %s9563_s8 }
 0x187   : > { %v2154_v23 = vpop.permute.xlu0 %2153 }
 0x188   : > { %v2250_v24 = vadd.f32 %v2154_v23, %v2054_v22  ;;  %v832_v28 = vpop.f32.mrf.mxu0  ;;  %v2158_v4 = vpop.permute.xlu2 %2157 }
 0x189   : > { %v833_v31 = vadd.f32 %v9655_v16, %v832_v28 }
 0x18a   : > { %v2446_v30 = vadd.f32 %v2350_v27, %v2250_v24 }
 0x18b   : > { %v2307_v32 = vld [vmem:[#allocation3 + $0x4b] sm:$0xff]  ;;  %v1045_v39 = vmax.f32 %v833_v31, 0.0  ;;  %871 = vmatmul.bf16.gmra.mxu0 %v8840_v25 }
 0x18c   : > { %v2111_v33 = vld [vmem:[#allocation3 + $0x4a] sm:$0xff]  ;;  %v2642_v38 = vadd.f32 %v2546_v19, %v2446_v30  ;;  %2365 = vrot.lane.b32.xlu1 %v2307_v32, %s9560_s28 }
 0x18d   : > { %v1915_v34 = vld [vmem:[#allocation3 + $0x49] sm:$0xff]  ;;  %1147 = vst [vmem:[#allocation2 + $0xe0] sm:$0xff] %v1045_v39 }
 0x18e   : > { %v1488_v2 = vld [vmem:[#allocation2 + $0xcc] ss:$2 sm:$0xff]  ;;  %2169 = vrot.lane.b32.xlu2 %v2111_v33, %s9561_s29  ;;  %1973 = vrot.lane.b32.xlu0 %v1915_v34, %s9562_s30  ;;  %v9190_v41 = vpack.c.bf16 %v2642_v38, %v2641_v36  ;;  %v1960_v42 = vpop.permute.xlu1 %1959  ;;  %v1635_v44 = vld [vmem:[#allocation2 + $0xcd] ss:$2 sm:$0xff]  ;;  %v2503_v53 = vld [vmem:[#allocation3 + $0x4c] sm:$0xff] }
 0x18f   : > { %v1574_v43 = vadd.f32 %v1488_v2, %v1427_v35  ;;  %v2055_v9 = vadd.f32 %v1960_v42, %v9684_v21  ;;  %v1345_v30 = vld [vmem:[#allocation2 + $0xd1] ss:$2 sm:$0xff] }
 0x190   : > { %9191 = vst [vmem:[#allocation4] sm:$0xff] %v9190_v41   ;;  %v834_v46 = vpop.f32.mrf.mxu0  ;;  %v2352_v11 = vpop.permute.xlu0 %2351 }
 0x191   : > { %v1721_v45 = vadd.f32 %v1635_v44, %v1574_v43  ;;  %v835_v47 = vadd.f32 %v9655_v16, %v834_v46 }
 0x193   : > { %v9801_v49 = vmul.f32 0.25, %v1721_v45  ;;  %v1046_v52 = vmax.f32 %v835_v47, 0.0 }
 0x195   : > { %1819 = vst [vmem:[#allocation3 + $0x58] sm:$0xff] %v9801_v49 }
 0x196   : > { %2561 = vrot.lane.b32.xlu0 %v2503_v53, %s9563_s8  ;;  %1148 = vst [vmem:[#allocation2 + $0xe8] sm:$0xff] %v1046_v52  ;;  %v2156_v54 = vpop.permute.xlu1 %2155 }
 0x197   : > { %v8877_v55 = vld [vmem:[#allocation4] sm:$0xff]  ;;  %v2251_v14 = vadd.f32 %v2156_v54, %v2055_v9 }
 0x198   : > { %v837_v61 = vpop.f32.mrf.mxu0  ;;  %3251 = vmatmul.bf16.vlgmr.msrb.gmra.mxu2 %v8877_v55 }
 0x199   : > { %v838_v62 = vadd.f32 %v9655_v16, %v837_v61  ;;  %v1964_v24 = vpop.permute.xlu2 %1963  ;;  %v2447_v21 = vadd.f32 %v2352_v11, %v2251_v14 }
 0x19b   : > { %v1047_v5 = vmax.f32 %v838_v62, 0.0  ;;  %876 = vmatmul.bf16.gmra.mxu0 %v8841_v56  ;;  %v2643_v31 = vadd.f32 %v2548_v50, %v2447_v21 }
 0x19c   : > { %v1916_v63 = vld [vmem:[#allocation3 + $0x51] sm:$0xff] }
 0x19d   : > { %v2308_v0 = vld [vmem:[#allocation3 + $0x53] sm:$0xff]  ;;  %1975 = vrot.lane.b32.xlu1 %v1916_v63, %s9562_s30  ;;  %1149 = vst [vmem:[#allocation2 + $0xf0] sm:$0xff] %v1047_v5 }
 0x19e   : > { %v2112_v1 = vld [vmem:[#allocation3 + $0x52] sm:$0xff]  ;;  %2367 = vrot.lane.b32.xlu2 %v2308_v0, %s9560_s28 }
 0x19f   : > { %v1490_v6 = vld [vmem:[#allocation2 + $0xdc] ss:$2 sm:$0xff]  ;;  %2171 = vrot.lane.b32.xlu0 %v2112_v1, %s9561_s29  ;;  %v1962_v7 = vpop.permute.xlu1 %1961  ;;  %v1637_v10 = vld [vmem:[#allocation2 + $0xdd] ss:$2 sm:$0xff] }
 0x1a0   : > { %v1575_v8 = vadd.f32 %v1490_v6, %v1428_v3  ;;  %v2056_v15 = vadd.f32 %v1962_v7, %v9694_v40  ;;  %v839_v18 = vpop.f32.mrf.mxu0  ;;  %v2504_v23 = vld [vmem:[#allocation3 + $0x54] sm:$0xff]  ;;  %v1247_v40 = vld [vmem:[#allocation2 + $0xd0] ss:$2 sm:$0xff]  ;;  %v2057_v3 = vadd.f32 %v1964_v24, %v9704_v60 }
 0x1a1   : > { %v840_v19 = vadd.f32 %v9655_v16, %v839_v18  ;;  %v2550_v28 = vpop.permute.xlu0 %2549  ;;  %v1429_v2 = vadd.f32 %v1345_v30, %v1247_v40  ;;  %v2356_v43 = vpop.permute.xlu2 %2355  ;;  %v8843_v63 = vld [vmem:[%s9642_s23 + $0xc8] sm:$0xff] }
 0x1a2   : > { %v1722_v12 = vadd.f32 %v1637_v10, %v1575_v8  ;;  %v2252_v26 = vadd.f32 %v2158_v4, %v2056_v15  ;;  %v1249_v0 = vld [vmem:[#allocation2 + $0xe0] ss:$2 sm:$0xff]  ;;  %v1347_v1 = vld [vmem:[#allocation2 + $0xe1] ss:$2 sm:$0xff] }
 0x1a3   : > { %v1048_v25 = vmax.f32 %v840_v19, 0.0  ;;  %v1430_v10 = vadd.f32 %v1347_v1, %v1249_v0  ;;  %v8888_v1 = vld [vmem:[%s11569_s2 + $0x40] sm:$0xff] }
 0x1a4   : > { %v9813_v22 = vmul.f32 0.25, %v1722_v12  ;;  %v8894_v12 = vld [vmem:[%s11569_s2 + $0x70] sm:$0xff] }
 0x1a5   : > { %2563 = vrot.lane.b32.xlu1 %v2504_v23, %s9563_s8  ;;  %1150 = vst [vmem:[#allocation2 + $0xf8] sm:$0xff] %v1048_v25  ;;  %3052 = vmatpush.bf16.msrb.mxu1 %v8894_v12  ;;  %v8893_v25 = vld [vmem:[%s11569_s2 + $0x68] sm:$0xff] }
 0x1a6   : > { %1820 = vst [vmem:[#allocation3 + $0x60] sm:$0xff] %v9813_v22 }
 0x1a7   : > { %v2354_v51 = vpop.permute.xlu1 %2353 }
 0x1a8   : > { %v2448_v27 = vadd.f32 %v2354_v51, %v2252_v26  ;;  %v842_v33 = vpop.f32.mrf.mxu0 }
 0x1a9   : > { %v843_v34 = vadd.f32 %v9655_v16, %v842_v33  ;;  %v1966_v61 = vpop.permute.xlu2 %1965  ;;  %3053 = vmatpush.bf16.msrb.mxu1 %v8893_v25 }
 0x1aa   : > { %v2644_v32 = vadd.f32 %v2550_v28, %v2448_v27  ;;  %v2058_v14 = vadd.f32 %v1966_v61, %v9714_v17 }
 0x1ab   : > { %v1049_v41 = vmax.f32 %v843_v34, 0.0  ;;  %881 = vmatmul.bf16.gmra.mxu0 %v8842_v29 }
 0x1ac   : > { %v9195_v35 = vpack.c.bf16 %v2644_v32, %v2643_v31  ;;  %v1492_v42 = vld [vmem:[#allocation2 + $0xec] ss:$2 sm:$0xff]  ;;  %v1639_v45 = vld [vmem:[#allocation2 + $0xed] ss:$2 sm:$0xff]  ;;  %v8892_v31 = vld [vmem:[%s11569_s2 + $0x60] sm:$0xff] }
 0x1ad   : > { %v2113_v36 = vld [vmem:[#allocation3 + $0x5a] sm:$0xff]  ;;  %v1576_v44 = vadd.f32 %v1492_v42, %v1429_v2  ;;  %1151 = vst [vmem:[#allocation2 + $0x100] sm:$0xff] %v1049_v41  ;;  %3054 = vmatpush.bf16.msrb.mxu1 %v8892_v31  ;;  %v9860_v41 = vld [vmem:[%s11573_s6] ss:$0 sm:$0xff] }
 0x1ae   : > { %v1917_v38 = vld [vmem:[#allocation3 + $0x59] sm:$0xff]  ;;  %2173 = vrot.lane.b32.xlu1 %v2113_v36, %s9561_s29  ;;  %9367 = vst [vmem:[#allocation4 + $0x8] sm:$0xff] %v9195_v35   ;;  %v8891_v35 = vld [vmem:[%s11569_s2 + $0x58] sm:$0xff] }
 0x1af   : > { %v2309_v39 = vld [vmem:[#allocation3 + $0x5b] sm:$0xff]  ;;  %1977 = vrot.lane.b32.xlu2 %v1917_v38, %s9562_s30  ;;  %v1723_v46 = vadd.f32 %v1639_v45, %v1576_v44 }
 0x1b0   : > { %2369 = vrot.lane.b32.xlu0 %v2309_v39, %s9560_s28  ;;  %v844_v47 = vpop.f32.mrf.mxu0  ;;  %v2505_v54 = vld [vmem:[#allocation3 + $0x5c] sm:$0xff]  ;;  %v2552_v56 = vpop.permute.xlu1 %2551 }
 0x1b1   : > { %v845_v50 = vadd.f32 %v9655_v16, %v844_v47  ;;  %v9823_v52 = vmul.f32 0.25, %v1723_v46  ;;  %v2554_v27 = vpop.permute.xlu2 %2553  ;;  %v8844_v36 = vld [vmem:[%s9642_s23 + $0xd0] sm:$0xff]  ;;  %3055 = vmatpush.bf16.msrb.mxu1 %v8891_v35 }
 0x1b2   : > { %v2160_v62 = vpop.permute.xlu0 %2159  ;;  %v1251_v38 = vld [vmem:[#allocation2 + $0xf0] ss:$2 sm:$0xff]  ;;  %v1349_v39 = vld [vmem:[#allocation2 + $0xf1] ss:$2 sm:$0xff] }
 0x1b3   : > { %v1050_v53 = vmax.f32 %v845_v50, 0.0  ;;  %1821 = vst [vmem:[#allocation3 + $0x68] sm:$0xff] %v9823_v52  ;;  %v2253_v6 = vadd.f32 %v2160_v62, %v2057_v3  ;;  %v1431_v46 = vadd.f32 %v1349_v39, %v1251_v38  ;;  %v8890_v50 = vld [vmem:[%s11569_s2 + $0x50] sm:$0xff] }
 0x1b5   : > { %v8878_v55 = vld [vmem:[#allocation4 + $0x8] sm:$0xff]  ;;  %1152 = vst [vmem:[#allocation2 + $0x108] sm:$0xff] %v1050_v53  ;;  %v2449_v19 = vadd.f32 %v2356_v43, %v2253_v6  ;;  %3056 = vmatpush.bf16.msrb.mxu1 %v8890_v50 }
 0x1b6   : > { %3256 = vmatmul.bf16.gmra.mxu2 %v8878_v55 }
 0x1b7   : > { %2565 = vrot.lane.b32.xlu2 %v2505_v54, %s9563_s8  ;;  %v2645_v40 = vadd.f32 %v2552_v56, %v2449_v19 }
 0x1b8   : > { %v847_v4 = vpop.f32.mrf.mxu0 }
 0x1b9   : > { %v848_v5 = vadd.f32 %v9655_v16, %v847_v4  ;;  %3057 = vmatpush.bf16.msrb.mxu1 %v8889_v57  ;;  %v8920_v4 = vld [vmem:[%s11569_s2 + $0xb8] sm:$0xff]  ;;  %v2164_v19 = vpop.permute.xlu2 %2163 }
 0x1ba   : > { %v2310_v7 = vld [vmem:[#allocation3 + $0x63] sm:$0xff]  ;;  %3547 = vmatpush.bf16.msra.mxu3 %v8920_v4 }
 0x1bb   : > { %v2114_v8 = vld [vmem:[#allocation3 + $0x62] sm:$0xff]  ;;  %v1051_v11 = vmax.f32 %v848_v5, 0.0  ;;  %886 = vmatmul.bf16.gmra.mxu0 %v8843_v63  ;;  %2371 = vrot.lane.b32.xlu1 %v2310_v7, %s9560_s28 }
 0x1bc   : > { %v1918_v9 = vld [vmem:[#allocation3 + $0x61] sm:$0xff]  ;;  %v1494_v60 = vld [vmem:[#allocation2 + $0xfc] ss:$2 sm:$0xff]  ;;  %v1641_v23 = vld [vmem:[#allocation2 + $0xfd] ss:$2 sm:$0xff] }
 0x1bd   : > { %1979 = vrot.lane.b32.xlu0 %v1918_v9, %s9562_s30  ;;  %1153 = vst [vmem:[#allocation2 + $0x110] sm:$0xff] %v1051_v11  ;;  %v2162_v15 = vpop.permute.xlu1 %2161  ;;  %v1577_v18 = vadd.f32 %v1494_v60, %v1430_v10  ;;  %v2506_v33 = vld [vmem:[#allocation3 + $0x64] sm:$0xff]  ;;  %3058 = vmatpush.bf16.msrb.mxu1 %v8888_v1  ;;  %v1253_v9 = vld [vmem:[#allocation2 + $0x100] ss:$2 sm:$0xff]  ;;  %v1351_v10 = vld [vmem:[#allocation2 + $0x101] ss:$2 sm:$0xff] }
 0x1be   : > { %v2254_v24 = vadd.f32 %v2162_v15, %v2058_v14  ;;  %v8845_v7 = vld [vmem:[%s9642_s23 + $0xd8] sm:$0xff] }
 0x1bf   : > { %2175 = vrot.lane.b32.xlu2 %v2114_v8, %s9561_s29  ;;  %v2358_v21 = vpop.permute.xlu0 %2357  ;;  %v1724_v26 = vadd.f32 %v1641_v23, %v1577_v18  ;;  %v8919_v8 = vld [vmem:[%s11569_s2 + $0xb0] sm:$0xff]  ;;  %v1432_v18 = vadd.f32 %v1351_v10, %v1253_v9  ;;  %v1012_v4 = vpop.f32.mrf.mxu2 }
 0x1c0   : > { %v2450_v51 = vadd.f32 %v2358_v21, %v2254_v24  ;;  %v849_v17 = vpop.f32.mrf.mxu0  ;;  %3548 = vmatpush.bf16.msra.mxu3 %v8919_v8  ;;  %v8918_v24 = vld [vmem:[%s11569_s2 + $0xa8] sm:$0xff]  ;;  %v9407_v8 = vld [vmem:[#allocation4 + $0xc] sm:$0xc] }
 0x1c1   : > { %v850_v28 = vadd.f32 %v9655_v16, %v849_v17  ;;  %v9845_v29 = vmul.f32 0.25, %v1724_v26  ;;  %v8867_v16 = vld [vmem:[%s9642_s23 + $0x188] sm:$0xff] }
 0x1c2   : > { %v2646_v30 = vadd.f32 %v2554_v27, %v2450_v51  ;;  %1006 = vmatmul.bf16.gmra.mxu1 %v8867_v16 }
 0x1c3   : > { %v1052_v32 = vmax.f32 %v850_v28, 0.0  ;;  %1822 = vst [vmem:[#allocation3 + $0x70] sm:$0xff] %v9845_v29 }
 0x1c4   : > { %v9200_v34 = vpack.c.bf16 %v2646_v30, %v2645_v40  ;;  %3549 = vmatpush.bf16.msra.mxu3 %v8918_v24  ;;  %v8917_v30 = vld [vmem:[%s11569_s2 + $0xa0] sm:$0xff] }
 0x1c5   : > { %2567 = vrot.lane.b32.xlu0 %v2506_v33, %s9563_s8  ;;  %1154 = vst [vmem:[#allocation2 + $0x118] sm:$0xff] %v1052_v32 }
 0x1c6   : > { %9368 = vst [vmem:[#allocation4 + $0x10] sm:$0xff] %v9200_v34   ;;  %3261 = vmatmul.bf16.gmra.mxu2 %v9200_v34 }
 0x1c7   : > { %v2362_v16 = vpop.permute.xlu2 %2361 }
 0x1c8   : > { %v852_v2 = vpop.f32.mrf.mxu0  ;;  %3550 = vmatpush.bf16.msra.mxu3 %v8917_v30 }
 0x1c9   : > { %v853_v42 = vadd.f32 %v9860_v41, %v852_v2 }
 0x1ca   : > { %v1919_v43 = vld [vmem:[#allocation3 + $0x69] sm:$0xff] }
 0x1cb   : > { %v2311_v44 = vld [vmem:[#allocation3 + $0x6b] sm:$0xff]  ;;  %v1053_v47 = vmax.f32 %v853_v42, 0.0  ;;  %891 = vmatmul.bf16.gmra.mxu0 %v8844_v36  ;;  %1981 = vrot.lane.b32.xlu1 %v1919_v43, %s9562_s30 }
 0x1cc   : > { %v2115_v45 = vld [vmem:[#allocation3 + $0x6a] sm:$0xff]  ;;  %2373 = vrot.lane.b32.xlu2 %v2311_v44, %s9560_s28 }
 0x1cd   : > { %v1496_v53 = vld [vmem:[#allocation2 + $0x10c] ss:$2 sm:$0xff]  ;;  %2177 = vrot.lane.b32.xlu0 %v2115_v45, %s9561_s29  ;;  %1155 = vst [vmem:[#allocation2 + $0x120] sm:$0xff] %v1053_v47  ;;  %v1643_v55 = vld [vmem:[#allocation2 + $0x10d] ss:$2 sm:$0xff]  ;;  %v2507_v0 = vld [vmem:[#allocation3 + $0x6c] sm:$0xff]  ;;  %v2360_v5 = vpop.permute.xlu1 %2359 }
 0x1ce   : > { %v1578_v54 = vadd.f32 %v1496_v53, %v1431_v46  ;;  %v8846_v44 = vld [vmem:[%s9642_s23 + $0xe0] sm:$0xff]  ;;  %v8915_v45 = vld [vmem:[%s11569_s2 + $0x90] sm:$0xff] }
 0x1cf   : > { %v1968_v56 = vpop.permute.xlu0 %1967  ;;  %v1255_v46 = vld [vmem:[#allocation2 + $0x110] ss:$2 sm:$0xff]  ;;  %v1353_v47 = vld [vmem:[#allocation2 + $0x111] ss:$2 sm:$0xff] }
 0x1d0   : > { %v1725_v59 = vadd.f32 %v1643_v55, %v1578_v54  ;;  %v854_v61 = vpop.f32.mrf.mxu0  ;;  %v2059_v25 = vadd.f32 %v1968_v56, %v9724_v37 }
 0x1d1   : > { %v855_v62 = vadd.f32 %v9860_v41, %v854_v61 }
 0x1d2   : > { %v9873_v63 = vmul.f32 0.25, %v1725_v59  ;;  %v2255_v31 = vadd.f32 %v2164_v19, %v2059_v25  ;;  %v1433_v59 = vadd.f32 %v1353_v47, %v1255_v46 }
 0x1d3   : > { %v1054_v3 = vmax.f32 %v855_v62, 0.0  ;;  %2569 = vrot.lane.b32.xlu1 %v2507_v0, %s9563_s8  ;;  %v8914_v62 = vld [vmem:[%s11569_s2 + $0x88] sm:$0xff] }
 0x1d4   : > { %1823 = vst [vmem:[#allocation3 + $0x78] sm:$0xff] %v9873_v63  ;;  %v2451_v38 = vadd.f32 %v2360_v5, %v2255_v31 }
 0x1d5   : > { %1156 = vst [vmem:[#allocation2 + $0x128] sm:$0xff] %v1054_v3  ;;  %v9501_v3 = vld [vmem:[#allocation4 + $0xc] sm:$0xf0]  }
 0x1d6   : > { %v9408_v9 = vor.u32 %v9501_v3, %v9407_v8  ;;  %v8848_v3 = vld [vmem:[%s9642_s23 + $0xf0] sm:$0xff] }
 0x1d7   : > { %v2556_v6 = vpop.permute.xlu0 %2555 }
 0x1d8   : > { %v857_v11 = vpop.f32.mrf.mxu0  ;;  %v2647_v42 = vadd.f32 %v2556_v6, %v2451_v38  ;;  %v1972_v0 = vpop.permute.xlu2 %1971  ;;  %v1013_v6 = vadd.f32 %v9860_v41, %v1012_v4  ;;  %v2950_v24 = vrot.slane %v9408_v9, 2 }
 0x1d9   : > { %v858_v12 = vadd.f32 %v9860_v41, %v857_v11  ;;  %v2061_v38 = vadd.f32 %v1972_v0, %v9753_v20 }
 0x1da   : > { %v1117_v11 = vmax.f32 %v1013_v6, 0.0 }
 0x1db   : > { %v2116_v14 = vld [vmem:[#allocation3 + $0x72] sm:$0xff]  ;;  %v1055_v23 = vmax.f32 %v858_v12, 0.0  ;;  %896 = vmatmul.bf16.gmra.mxu0 %v8845_v7 }
 0x1dc   : > { %v1920_v60 = vld [vmem:[#allocation3 + $0x71] sm:$0xff]  ;;  %2179 = vrot.lane.b32.xlu1 %v2116_v14, %s9561_s29  ;;  %1219 = vst [vmem:[#allocation2 + $0x320] sm:$0xff] %v1117_v11 }
 0x1dd   : > { %v2312_v15 = vld [vmem:[#allocation3 + $0x73] sm:$0xff]  ;;  %1983 = vrot.lane.b32.xlu2 %v1920_v60, %s9562_s30  ;;  %1157 = vst [vmem:[#allocation2 + $0x130] sm:$0xff] %v1055_v23 }
 0x1de   : > { %v1498_v21 = vld [vmem:[#allocation2 + $0x11c] ss:$2 sm:$0xff]  ;;  %2375 = vrot.lane.b32.xlu0 %v2312_v15, %s9560_s28  ;;  %v1970_v51 = vpop.permute.xlu1 %1969  ;;  %v1645_v17 = vld [vmem:[#allocation2 + $0x11d] ss:$2 sm:$0xff] }
 0x1df   : > { %v1579_v26 = vadd.f32 %v1498_v21, %v1432_v18  ;;  %v2060_v27 = vadd.f32 %v1970_v51, %v9734_v58  ;;  %v2508_v36 = vld [vmem:[#allocation3 + $0x74] sm:$0xff]  ;;  %v8916_v58 = vld [vmem:[%s11569_s2 + $0x98] sm:$0xff] }
 0x1e0   : > { %v2166_v28 = vpop.permute.xlu0 %2165  ;;  %v859_v32 = vpop.f32.mrf.mxu0  ;;  %3551 = vmatpush.bf16.msra.mxu3 %v8916_v58  ;;  %v8913_v12 = vld [vmem:[%s11569_s2 + $0x80] sm:$0xff] }
 0x1e1   : > { %v1726_v40 = vadd.f32 %v1645_v17, %v1579_v26  ;;  %v2256_v37 = vadd.f32 %v2166_v28, %v2060_v27  ;;  %v860_v33 = vadd.f32 %v9860_v41, %v859_v32  ;;  %v2560_v26 = vpop.permute.xlu2 %2559  ;;  %v8847_v17 = vld [vmem:[%s9642_s23 + $0xe8] sm:$0xff]  ;;  %v1014_v58 = vpop.f32.mrf.mxu2 }
 0x1e2   : > { %v1257_v27 = vld [vmem:[#allocation2 + $0x120] ss:$2 sm:$0xff]  ;;  %v1355_v28 = vld [vmem:[#allocation2 + $0x121] ss:$2 sm:$0xff] }
 0x1e3   : > { %v9900_v34 = vmul.f32 0.25, %v1726_v40  ;;  %v1056_v35 = vmax.f32 %v860_v33, 0.0  ;;  %v2452_v39 = vadd.f32 %v2362_v16, %v2256_v37  ;;  %v1434_v33 = vadd.f32 %v1355_v28, %v1257_v27 }
 0x1e4   : > { %3552 = vmatpush.bf16.msra.mxu3 %v8915_v45 }
 0x1e5   : > { %1824 = vst [vmem:[#allocation3 + $0x80] sm:$0xff] %v9900_v34  ;;  %2571 = vrot.lane.b32.xlu2 %v2508_v36, %s9563_s8 }
 0x1e6   : > { %1158 = vst [vmem:[#allocation2 + $0x138] sm:$0xff] %v1056_v35  ;;  %v2558_v2 = vpop.permute.xlu1 %2557 }
 0x1e7   : > { %v2648_v43 = vadd.f32 %v2558_v2, %v2452_v39  ;;  %v1015_v2 = vadd.f32 %v9860_v41, %v1014_v58 }
 0x1e8   : > { %v862_v53 = vpop.f32.mrf.mxu0  ;;  %3553 = vmatpush.bf16.msra.mxu3 %v8914_v62 }
 0x1e9   : > { %v9205_v50 = vpack.c.bf16 %v2648_v43, %v2647_v42  ;;  %v863_v54 = vadd.f32 %v9860_v41, %v862_v53  ;;  %v1118_v47 = vmax.f32 %v1015_v2, 0.0 }
 0x1eb   : > { %9369 = vst [vmem:[#allocation4 + $0x18] sm:$0xff] %v9205_v50   ;;  %3266 = vmatmul.bf16.gmra.mxu2 %v9205_v50  ;;  %v1057_v61 = vmax.f32 %v863_v54, 0.0  ;;  %901 = vmatmul.bf16.gmra.mxu0 %v8846_v44  ;;  %v2170_v50 = vpop.permute.xlu2 %2169 }
 0x1ec   : > { %v2313_v55 = vld [vmem:[#allocation3 + $0x7b] sm:$0xff]  ;;  %3554 = vmatpush.bf16.msra.mxu3 %v8913_v12  ;;  %1220 = vst [vmem:[#allocation2 + $0x328] sm:$0xff] %v1118_v47 }
 0x1ed   : > { %v2117_v56 = vld [vmem:[#allocation3 + $0x7a] sm:$0xff]  ;;  %2377 = vrot.lane.b32.xlu1 %v2313_v55, %s9560_s28  ;;  %1159 = vst [vmem:[#allocation2 + $0x140] sm:$0xff] %v1057_v61 }
 0x1ee   : > { %v1921_v57 = vld [vmem:[#allocation3 + $0x79] sm:$0xff]  ;;  %2181 = vrot.lane.b32.xlu2 %v2117_v56, %s9561_s29 }
 0x1ef   : > { %v1500_v1 = vld [vmem:[#allocation2 + $0x12c] ss:$2 sm:$0xff]  ;;  %1985 = vrot.lane.b32.xlu0 %v1921_v57, %s9562_s30  ;;  %v1647_v7 = vld [vmem:[#allocation2 + $0x12d] ss:$2 sm:$0xff]  ;;  %v2168_v35 = vpop.permute.xlu1 %2167 }
 0x1f0   : > { %v1580_v5 = vadd.f32 %v1500_v1, %v1433_v59  ;;  %v864_v14 = vpop.f32.mrf.mxu0  ;;  %v2509_v23 = vld [vmem:[#allocation3 + $0x7c] sm:$0xff]  ;;  %v2257_v44 = vadd.f32 %v2168_v35, %v2061_v38 }
 0x1f1   : > { %v865_v60 = vadd.f32 %v9860_v41, %v864_v14  ;;  %v2364_v51 = vpop.permute.xlu0 %2363  ;;  %v1259_v4 = vld [vmem:[#allocation2 + $0x130] ss:$2 sm:$0xff] }
 0x1f2   : > { %v1727_v10 = vadd.f32 %v1647_v7, %v1580_v5  ;;  %v9923_v15 = vld [vmem:[#allocation4 + $0x14] sm:$0xff]   ;;  %v2453_v57 = vadd.f32 %v2364_v51, %v2257_v44 }
 0x1f3   : > { %v1058_v19 = vmax.f32 %v865_v60, 0.0  ;;  %v2951_v25 = vrot.slane %v9923_v15, 2  ;;  %v1357_v5 = vld [vmem:[#allocation2 + $0x131] ss:$2 sm:$0xff] }
 0x1f4   : > { %v9925_v18 = vmul.f32 0.25, %v1727_v10  ;;  %v2649_v0 = vadd.f32 %v2560_v26, %v2453_v57  ;;  %v1435_v12 = vadd.f32 %v1357_v5, %v1259_v4 }
 0x1f5   : > { %1160 = vst [vmem:[#allocation2 + $0x148] sm:$0xff] %v1058_v19  ;;  %v2952_v21 = vsel %vm2949_vm0, %v2950_v24, %v2951_v25 }
 0x1f6   : > { %1825 = vst [vmem:[#allocation3 + $0x88] sm:$0xff] %v9925_v18  ;;  %3059 = vmatmul.bf16.vlgmr.msrb.gmra.mxu1 %v2952_v21 }
 0x1f7   : > { %2573 = vrot.lane.b32.xlu0 %v2509_v23, %s9563_s8 }
 0x1f8   : > { %v867_v40 = vpop.f32.mrf.mxu0  ;;  %v2368_v21 = vpop.permute.xlu2 %2367 }
 0x1f9   : > { %v868_v30 = vadd.f32 %v9860_v41, %v867_v40 }
 0x1fb   : > { %v1059_v16 = vmax.f32 %v868_v30, 0.0  ;;  %906 = vmatmul.bf16.gmra.mxu0 %v8847_v17 }
 0x1fc   : > { %v1502_v36 = vld [vmem:[#allocation2 + $0x13c] ss:$2 sm:$0xff]  ;;  %v1649_v42 = vld [vmem:[#allocation2 + $0x13d] ss:$2 sm:$0xff] }
 0x1fd   : > { %v1922_v31 = vld [vmem:[#allocation3 + $0x81] sm:$0xff]  ;;  %v1581_v39 = vadd.f32 %v1502_v36, %v1434_v33  ;;  %1161 = vst [vmem:[#allocation2 + $0x150] sm:$0xff] %v1059_v16  ;;  %v1261_v58 = vld [vmem:[#allocation2 + $0x140] ss:$2 sm:$0xff]  ;;  %v1359_v38 = vld [vmem:[#allocation2 + $0x141] ss:$2 sm:$0xff] }
 0x1fe   : > { %v2314_v37 = vld [vmem:[#allocation3 + $0x83] sm:$0xff]  ;;  %1987 = vrot.lane.b32.xlu1 %v1922_v31, %s9562_s30  ;;  %v2366_v61 = vpop.permute.xlu1 %2365 }
 0x1ff   : > { %v2118_v32 = vld [vmem:[#allocation3 + $0x82] sm:$0xff]  ;;  %2379 = vrot.lane.b32.xlu2 %v2314_v37, %s9560_s28  ;;  %v1728_v46 = vadd.f32 %v1649_v42, %v1581_v39 }
 0x200   : > { %2183 = vrot.lane.b32.xlu0 %v2118_v32, %s9561_s29  ;;  %v1974_v43 = vpop.permute.xlu0 %1973  ;;  %v869_v53 = vpop.f32.mrf.mxu0  ;;  %v2510_v20 = vld [vmem:[#allocation3 + $0x84] sm:$0xff] }
 0x201   : > { %v2062_v45 = vadd.f32 %v1974_v43, %v9776_v48  ;;  %v870_v55 = vadd.f32 %v9860_v41, %v869_v53  ;;  %v9942_v56 = vmul.f32 0.25, %v1728_v46  ;;  %v8849_v36 = vld [vmem:[%s9642_s23 + $0xf8] sm:$0xff]  ;;  %v1436_v46 = vadd.f32 %v1359_v38, %v1261_v58 }
 0x203   : > { %v2258_v54 = vadd.f32 %v2170_v50, %v2062_v45  ;;  %v1060_v59 = vmax.f32 %v870_v55, 0.0  ;;  %1826 = vst [vmem:[#allocation3 + $0x90] sm:$0xff] %v9942_v56 }
 0x205   : > { %1162 = vst [vmem:[#allocation2 + $0x158] sm:$0xff] %v1060_v59  ;;  %v2454_v48 = vadd.f32 %v2366_v61, %v2258_v54 }
 0x206   : > { %2575 = vrot.lane.b32.xlu1 %v2510_v20, %s9563_s8 }
 0x208   : > { %v2562_v62 = vpop.permute.xlu0 %2561  ;;  %v872_v6 = vpop.f32.mrf.mxu0 }
 0x209   : > { %v2650_v1 = vadd.f32 %v2562_v62, %v2454_v48  ;;  %v873_v8 = vadd.f32 %v9860_v41, %v872_v6  ;;  %v1978_v16 = vpop.permute.xlu2 %1977 }
 0x20a   : > { %v2119_v9 = vld [vmem:[#allocation3 + $0x8a] sm:$0xff]  ;;  %v2064_v15 = vadd.f32 %v1978_v16, %v9801_v49 }
 0x20b   : > { %v9210_v7 = vpack.c.bf16 %v2650_v1, %v2649_v0  ;;  %v1923_v10 = vld [vmem:[#allocation3 + $0x89] sm:$0xff]  ;;  %v1061_v14 = vmax.f32 %v873_v8, 0.0  ;;  %911 = vmatmul.bf16.gmra.mxu0 %v8848_v3 }
 0x20c   : > { %v2315_v11 = vld [vmem:[#allocation3 + $0x8b] sm:$0xff]  ;;  %v1504_v60 = vld [vmem:[#allocation2 + $0x14c] ss:$2 sm:$0xff]  ;;  %1989 = vrot.lane.b32.xlu2 %v1923_v10, %s9562_s30 }
 0x20d   : > { %9370 = vst [vmem:[#allocation4 + $0x20] sm:$0xff] %v9210_v7   ;;  %2381 = vrot.lane.b32.xlu0 %v2315_v11, %s9560_s28  ;;  %v1582_v19 = vadd.f32 %v1504_v60, %v1435_v12  ;;  %3271 = vmatmul.bf16.gmra.mxu2 %v9210_v7  ;;  %v1651_v24 = vld [vmem:[#allocation2 + $0x14d] ss:$2 sm:$0xff]  ;;  %v2511_v31 = vld [vmem:[#allocation3 + $0x8c] sm:$0xff] }
 0x20e   : > { %2185 = vrot.lane.b32.xlu1 %v2119_v9, %s9561_s29  ;;  %1163 = vst [vmem:[#allocation2 + $0x160] sm:$0xff] %v1061_v14  ;;  %v8850_v7 = vld [vmem:[%s9642_s23 + $0x100] sm:$0xff]  ;;  %v1263_v8 = vld [vmem:[#allocation2 + $0x150] ss:$2 sm:$0xff]  ;;  %v1361_v9 = vld [vmem:[#allocation2 + $0x151] ss:$2 sm:$0xff] }
 0x20f   : > { %v1976_v23 = vpop.permute.xlu1 %1975  ;;  %v1729_v26 = vadd.f32 %v1651_v24, %v1582_v19  ;;  %v1437_v19 = vadd.f32 %v1361_v9, %v1263_v8 }
 0x210   : > { %v874_v51 = vpop.f32.mrf.mxu0  ;;  %v2063_v39 = vadd.f32 %v1976_v23, %v9790_v13 }
 0x211   : > { %v875_v17 = vadd.f32 %v9860_v41, %v874_v51  ;;  %v9952_v27 = vmul.f32 0.25, %v1729_v26  ;;  %v2172_v35 = vpop.permute.xlu0 %2171  ;;  %v2566_v62 = vpop.permute.xlu2 %2565 }
 0x213   : > { %v1062_v30 = vmax.f32 %v875_v17, 0.0  ;;  %1827 = vst [vmem:[#allocation3 + $0x98] sm:$0xff] %v9952_v27 }
 0x214   : > { %v8896_v28 = vld [vmem:[#allocation4 + $0x1c] sm:$0xff]  ;;  %2577 = vrot.lane.b32.xlu2 %v2511_v31, %s9563_s8 }
 0x215   : > { %v9954_v40 = vld [vmem:[#allocation4 + $0x1c] sm:$0xff]   ;;  %3555 = vmatmul.bf16.vlgmr.msra.gmra.mxu3 %v8896_v28  ;;  %1164 = vst [vmem:[#allocation2 + $0x168] sm:$0xff] %v1062_v30 }
 0x216   : > { %v2953_v37 = vrot.slane %v9954_v40, 2 }
 0x217   : > { %v2564_v32 = vpop.permute.xlu1 %2563 }
 0x218   : > { %v2954_v33 = vsel %vm2949_vm0, %v2951_v25, %v2953_v37  ;;  %v877_v2 = vpop.f32.mrf.mxu0  ;;  %v2259_v25 = vadd.f32 %v2172_v35, %v2063_v39 }
 0x219   : > { %3064 = vmatmul.bf16.gmra.mxu1 %v2954_v33  ;;  %v878_v42 = vadd.f32 %v9860_v41, %v877_v2  ;;  %v8851_v2 = vld [vmem:[%s9642_s23 + $0x108] sm:$0xff] }
 0x21a   : > { %v2316_v43 = vld [vmem:[#allocation3 + $0x93] sm:$0xff]  ;;  %v2455_v59 = vadd.f32 %v2368_v21, %v2259_v25  ;;  %v2176_v25 = vpop.permute.xlu2 %2175 }
 0x21b   : > { %v2120_v44 = vld [vmem:[#allocation3 + $0x92] sm:$0xff]  ;;  %v1063_v47 = vmax.f32 %v878_v42, 0.0  ;;  %916 = vmatmul.bf16.gmra.mxu0 %v8849_v36  ;;  %2383 = vrot.lane.b32.xlu1 %v2316_v43, %s9560_s28  ;;  %v1002_v42 = vpop.f32.mrf.mxu1 }
 0x21c   : > { %v1924_v45 = vld [vmem:[#allocation3 + $0x91] sm:$0xff]  ;;  %2187 = vrot.lane.b32.xlu2 %v2120_v44, %s9561_s29  ;;  %v2651_v1 = vadd.f32 %v2564_v32, %v2455_v59 }
 0x21d   : > { %v1506_v50 = vld [vmem:[#allocation2 + $0x15c] ss:$2 sm:$0xff]  ;;  %1991 = vrot.lane.b32.xlu0 %v1924_v45, %s9562_s30  ;;  %1165 = vst [vmem:[#allocation2 + $0x170] sm:$0xff] %v1063_v47  ;;  %v1653_v54 = vld [vmem:[#allocation2 + $0x15d] ss:$2 sm:$0xff] }
 0x21e   : > { %v1583_v13 = vadd.f32 %v1506_v50, %v1436_v46  ;;  %v2512_v5 = vld [vmem:[#allocation3 + $0x94] sm:$0xff] }
 0x21f   : > { %v1265_v43 = vld [vmem:[#allocation2 + $0x160] ss:$2 sm:$0xff]  ;;  %v1363_v44 = vld [vmem:[#allocation2 + $0x161] ss:$2 sm:$0xff] }
 0x220   : > { %v2174_v53 = vpop.permute.xlu1 %2173  ;;  %v1730_v57 = vadd.f32 %v1653_v54, %v1583_v13  ;;  %v879_v48 = vpop.f32.mrf.mxu0 }
 0x221   : > { %v2260_v55 = vadd.f32 %v2174_v53, %v2064_v15  ;;  %v880_v49 = vadd.f32 %v9860_v41, %v879_v48  ;;  %v1438_v15 = vadd.f32 %v1363_v44, %v1265_v43 }
 0x222   : > { %v2370_v20 = vpop.permute.xlu0 %2369  ;;  %v9972_v0 = vmul.f32 0.25, %v1730_v57 }
 0x223   : > { %v2456_v61 = vadd.f32 %v2370_v20, %v2260_v55  ;;  %v1064_v4 = vmax.f32 %v880_v49, 0.0  ;;  %v1003_v20 = vadd.f32 %v9860_v41, %v1002_v42  ;;  %v1004_v49 = vpop.f32.mrf.mxu1 }
 0x224   : > { %1828 = vst [vmem:[#allocation3 + $0xa0] sm:$0xff] %v9972_v0 }
 0x225   : > { %v2652_v3 = vadd.f32 %v2566_v62, %v2456_v61  ;;  %2579 = vrot.lane.b32.xlu0 %v2512_v5, %s9563_s8  ;;  %1166 = vst [vmem:[#allocation2 + $0x178] sm:$0xff] %v1064_v4  ;;  %v1113_v62 = vmax.f32 %v1003_v20, 0.0  ;;  %v1005_v4 = vadd.f32 %v9860_v41, %v1004_v49 }
 0x226   : > { %v2374_v8 = vpop.permute.xlu2 %2373 }
 0x227   : > { %v9215_v6 = vpack.c.bf16 %v2652_v3, %v2651_v1  ;;  %1215 = vst [vmem:[#allocation2 + $0x300] sm:$0xff] %v1113_v62 }
 0x228   : > { %v882_v10 = vpop.f32.mrf.mxu0 }
 0x229   : > { %9371 = vst [vmem:[#allocation4 + $0x28] sm:$0xff] %v9215_v6   ;;  %3276 = vmatmul.bf16.gmra.mxu2 %v9215_v6  ;;  %v883_v11 = vadd.f32 %v9860_v41, %v882_v10 }
 0x22b   : > { %v1925_v12 = vld [vmem:[#allocation3 + $0x99] sm:$0xff]  ;;  %v1065_v23 = vmax.f32 %v883_v11, 0.0  ;;  %921 = vmatmul.bf16.gmra.mxu0 %v8850_v7  ;;  %v1114_v7 = vmax.f32 %v1005_v4, 0.0 }
 0x22c   : > { %v2317_v14 = vld [vmem:[#allocation3 + $0x9b] sm:$0xff]  ;;  %1993 = vrot.lane.b32.xlu1 %v1925_v12, %s9562_s30 }
 0x22d   : > { %v2121_v60 = vld [vmem:[#allocation3 + $0x9a] sm:$0xff]  ;;  %2385 = vrot.lane.b32.xlu2 %v2317_v14, %s9560_s28  ;;  %1167 = vst [vmem:[#allocation2 + $0x180] sm:$0xff] %v1065_v23  ;;  %v2372_v38 = vpop.permute.xlu1 %2371 }
 0x22e   : > { %v1508_v24 = vld [vmem:[#allocation2 + $0x16c] ss:$2 sm:$0xff]  ;;  %2189 = vrot.lane.b32.xlu0 %v2121_v60, %s9561_s29  ;;  %v1655_v17 = vld [vmem:[#allocation2 + $0x16d] ss:$2 sm:$0xff]  ;;  %1216 = vst [vmem:[#allocation2 + $0x308] sm:$0xff] %v1114_v7 }
 0x22f   : > { %v1584_v21 = vadd.f32 %v1508_v24, %v1437_v19  ;;  %v1980_v28 = vpop.permute.xlu0 %1979  ;;  %v2513_v36 = vld [vmem:[#allocation3 + $0x9c] sm:$0xff] }
 0x230   : > { %v8897_v26 = vld [vmem:[#allocation4 + $0x24] sm:$0xff]  ;;  %v884_v32 = vpop.f32.mrf.mxu0  ;;  %v2065_v13 = vadd.f32 %v1980_v28, %v9813_v22  ;;  %v8852_v19 = vld [vmem:[%s9642_s23 + $0x110] sm:$0xff] }
 0x231   : > { %v9981_v51 = vld [vmem:[#allocation4 + $0x24] sm:$0xff]   ;;  %3560 = vmatmul.bf16.gmra.mxu3 %v8897_v26  ;;  %v1731_v31 = vadd.f32 %v1655_v17, %v1584_v21  ;;  %v885_v33 = vadd.f32 %v9860_v41, %v884_v32 }
 0x232   : > { %v2955_v30 = vrot.slane %v9981_v51, 2  ;;  %v2261_v1 = vadd.f32 %v2176_v25, %v2065_v13  ;;  %v1267_v24 = vld [vmem:[#allocation2 + $0x170] ss:$2 sm:$0xff]  ;;  %v1365_v21 = vld [vmem:[#allocation2 + $0x171] ss:$2 sm:$0xff] }
 0x233   : > { %v9990_v35 = vmul.f32 0.25, %v1731_v31  ;;  %v1066_v58 = vmax.f32 %v885_v33, 0.0 }
 0x234   : > { %v2956_v16 = vsel %vm2949_vm0, %v2953_v37, %v2955_v30  ;;  %2581 = vrot.lane.b32.xlu1 %v2513_v36, %s9563_s8 }
 0x235   : > { %3069 = vmatmul.bf16.gmra.mxu1 %v2956_v16  ;;  %1829 = vst [vmem:[#allocation3 + $0xa8] sm:$0xff] %v9990_v35  ;;  %v1439_v16 = vadd.f32 %v1365_v21, %v1267_v24 }
 0x236   : > { %1168 = vst [vmem:[#allocation2 + $0x188] sm:$0xff] %v1066_v58 }
 0x237   : > { %v2568_v39 = vpop.permute.xlu0 %2567  ;;  %v1984_v58 = vpop.permute.xlu2 %1983 }
 0x238   : > { %v887_v45 = vpop.f32.mrf.mxu0 }
 0x239   : > { %v888_v40 = vadd.f32 %v9860_v41, %v887_v45 }
 0x23b   : > { %v1067_v50 = vmax.f32 %v888_v40, 0.0  ;;  %926 = vmatmul.bf16.gmra.mxu0 %v8851_v2 }
 0x23c   : > { %v2122_v37 = vld [vmem:[#allocation3 + $0xa2] sm:$0xff] }
 0x23d   : > { %v1926_v46 = vld [vmem:[#allocation3 + $0xa1] sm:$0xff]  ;;  %2191 = vrot.lane.b32.xlu1 %v2122_v37, %s9561_s29  ;;  %v1510_v53 = vld [vmem:[#allocation2 + $0x17c] ss:$2 sm:$0xff]  ;;  %1169 = vst [vmem:[#allocation2 + $0x190] sm:$0xff] %v1067_v50  ;;  %v1982_v55 = vpop.permute.xlu1 %1981  ;;  %v1657_v57 = vld [vmem:[#allocation2 + $0x17d] ss:$2 sm:$0xff] }
 0x23e   : > { %v2318_v47 = vld [vmem:[#allocation3 + $0xa3] sm:$0xff]  ;;  %1995 = vrot.lane.b32.xlu2 %v1926_v46, %s9562_s30  ;;  %v1585_v54 = vadd.f32 %v1510_v53, %v1438_v15  ;;  %v2066_v59 = vadd.f32 %v1982_v55, %v9823_v52  ;;  %v2457_v52 = vadd.f32 %v2372_v38, %v2261_v1 }
 0x23f   : > { %2387 = vrot.lane.b32.xlu0 %v2318_v47, %s9560_s28  ;;  %v2178_v61 = vpop.permute.xlu0 %2177  ;;  %v2514_v10 = vld [vmem:[#allocation3 + $0xa4] sm:$0xff]  ;;  %v1007_v23 = vpop.f32.mrf.mxu1 }
 0x240   : > { %v1732_v48 = vadd.f32 %v1657_v57, %v1585_v54  ;;  %v2262_v3 = vadd.f32 %v2178_v61, %v2066_v59  ;;  %v889_v22 = vpop.f32.mrf.mxu0  ;;  %v2653_v14 = vadd.f32 %v2568_v39, %v2457_v52  ;;  %v1008_v2 = vadd.f32 %v9860_v41, %v1007_v23  ;;  %v2572_v20 = vpop.permute.xlu2 %2571  ;;  %v8853_v59 = vld [vmem:[%s9642_s23 + $0x118] sm:$0xff]  ;;  %v1269_v61 = vld [vmem:[#allocation2 + $0x180] ss:$2 sm:$0xff] }
 0x241   : > { %v890_v5 = vadd.f32 %v9860_v41, %v889_v22 }
 0x242   : > { %v10004_v6 = vmul.f32 0.25, %v1732_v48  ;;  %v2458_v11 = vadd.f32 %v2374_v8, %v2262_v3  ;;  %v1115_v44 = vmax.f32 %v1008_v2, 0.0  ;;  %v1367_v48 = vld [vmem:[#allocation2 + $0x181] ss:$2 sm:$0xff] }
 0x243   : > { %v1068_v9 = vmax.f32 %v890_v5, 0.0  ;;  %v1440_v4 = vadd.f32 %v1367_v48, %v1269_v61 }
 0x244   : > { %1830 = vst [vmem:[#allocation3 + $0xb0] sm:$0xff] %v10004_v6 }
 0x245   : > { %1170 = vst [vmem:[#allocation2 + $0x198] sm:$0xff] %v1068_v9  ;;  %v2570_v12 = vpop.permute.xlu1 %2569 }
 0x246   : > { %2583 = vrot.lane.b32.xlu2 %v2514_v10, %s9563_s8  ;;  %v2654_v60 = vadd.f32 %v2570_v12, %v2458_v11  ;;  %1217 = vst [vmem:[#allocation2 + $0x310] sm:$0xff] %v1115_v44 }
 0x247   : > { %v1009_v45 = vpop.f32.mrf.mxu1 }
 0x248   : > { %v9220_v26 = vpack.c.bf16 %v2654_v60, %v2653_v14  ;;  %v892_v17 = vpop.f32.mrf.mxu0  ;;  %v1010_v37 = vadd.f32 %v9860_v41, %v1009_v45  ;;  %v2182_v14 = vpop.permute.xlu2 %2181 }
 0x249   : > { %v893_v28 = vadd.f32 %v9860_v41, %v892_v17 }
 0x24a   : > { %9372 = vst [vmem:[#allocation4 + $0x30] sm:$0xff] %v9220_v26   ;;  %3281 = vmatmul.bf16.gmra.mxu2 %v9220_v26  ;;  %v1116_v50 = vmax.f32 %v1010_v37, 0.0 }
 0x24b   : > { %v2319_v31 = vld [vmem:[#allocation3 + $0xab] sm:$0xff]  ;;  %v1069_v36 = vmax.f32 %v893_v28, 0.0  ;;  %931 = vmatmul.bf16.gmra.mxu0 %v8852_v19 }
 0x24c   : > { %v2123_v32 = vld [vmem:[#allocation3 + $0xaa] sm:$0xff]  ;;  %2389 = vrot.lane.b32.xlu1 %v2319_v31, %s9560_s28  ;;  %1218 = vst [vmem:[#allocation2 + $0x318] sm:$0xff] %v1116_v50 }
 0x24d   : > { %v1927_v33 = vld [vmem:[#allocation3 + $0xa9] sm:$0xff]  ;;  %1171 = vst [vmem:[#allocation2 + $0x1a0] sm:$0xff] %v1069_v36 }
 0x24e   : > { %v1512_v38 = vld [vmem:[#allocation2 + $0x18c] ss:$2 sm:$0xff]  ;;  %2193 = vrot.lane.b32.xlu2 %v2123_v32, %s9561_s29  ;;  %1997 = vrot.lane.b32.xlu0 %v1927_v33, %s9562_s30  ;;  %v1659_v42 = vld [vmem:[#allocation2 + $0x18d] ss:$2 sm:$0xff]  ;;  %v2515_v53 = vld [vmem:[#allocation3 + $0xac] sm:$0xff]  ;;  %v2180_v51 = vpop.permute.xlu1 %2179 }
 0x24f   : > { %v1586_v39 = vadd.f32 %v1512_v38, %v1439_v16  ;;  %v8854_v33 = vld [vmem:[%s9642_s23 + $0x120] sm:$0xff]  ;;  %v1271_v16 = vld [vmem:[#allocation2 + $0x190] ss:$2 sm:$0xff]  ;;  %v1369_v36 = vld [vmem:[#allocation2 + $0x191] ss:$2 sm:$0xff] }
 0x250   : > { %v894_v40 = vpop.f32.mrf.mxu0  ;;  %v2376_v57 = vpop.permute.xlu0 %2375  ;;  %v1441_v44 = vadd.f32 %v1369_v36, %v1271_v16 }
 0x251   : > { %v1733_v43 = vadd.f32 %v1659_v42, %v1586_v39  ;;  %v895_v46 = vadd.f32 %v9860_v41, %v894_v40  ;;  %v8898_v47 = vld [vmem:[#allocation4 + $0x2c] sm:$0xff] }
 0x252   : > { %v10016_v15 = vld [vmem:[#allocation4 + $0x2c] sm:$0xff]   ;;  %3565 = vmatmul.bf16.gmra.mxu3 %v8898_v47 }
 0x253   : > { %v10018_v25 = vmul.f32 0.25, %v1733_v43  ;;  %v1070_v13 = vmax.f32 %v895_v46, 0.0  ;;  %v2957_v54 = vrot.slane %v10016_v15, 2 }
 0x255   : > { %1831 = vst [vmem:[#allocation3 + $0xb8] sm:$0xff] %v10018_v25  ;;  %v2958_v55 = vsel %vm2949_vm0, %v2955_v30, %v2957_v54  ;;  %v2067_v30 = vadd.f32 %v1984_v58, %v9845_v29 }
 0x256   : > { %2585 = vrot.lane.b32.xlu0 %v2515_v53, %s9563_s8  ;;  %1172 = vst [vmem:[#allocation2 + $0x1a8] sm:$0xff] %v1070_v13  ;;  %3074 = vmatmul.bf16.gmra.mxu1 %v2958_v55 }
 0x257   : > { %v2263_v52 = vadd.f32 %v2180_v51, %v2067_v30 }
 0x258   : > { %v897_v62 = vpop.f32.mrf.mxu0 }
 0x259   : > { %v898_v49 = vadd.f32 %v9860_v41, %v897_v62  ;;  %v2459_v26 = vadd.f32 %v2376_v57, %v2263_v52  ;;  %v2380_v50 = vpop.permute.xlu2 %2379 }
 0x25b   : > { %v1071_v5 = vmax.f32 %v898_v49, 0.0  ;;  %936 = vmatmul.bf16.gmra.mxu0 %v8853_v59  ;;  %v2655_v31 = vadd.f32 %v2572_v20, %v2459_v26 }
 0x25c   : > { %v1928_v1 = vld [vmem:[#allocation3 + $0xb1] sm:$0xff] }
 0x25d   : > { %v2320_v3 = vld [vmem:[#allocation3 + $0xb3] sm:$0xff]  ;;  %1999 = vrot.lane.b32.xlu1 %v1928_v1, %s9562_s30  ;;  %1173 = vst [vmem:[#allocation2 + $0x1b0] sm:$0xff] %v1071_v5 }
 0x25e   : > { %v2124_v22 = vld [vmem:[#allocation3 + $0xb2] sm:$0xff]  ;;  %2391 = vrot.lane.b32.xlu2 %v2320_v3, %s9560_s28 }
 0x25f   : > { %v1514_v7 = vld [vmem:[#allocation2 + $0x19c] ss:$2 sm:$0xff]  ;;  %2195 = vrot.lane.b32.xlu0 %v2124_v22, %s9561_s29  ;;  %v1661_v9 = vld [vmem:[#allocation2 + $0x19d] ss:$2 sm:$0xff]  ;;  %v2378_v29 = vpop.permute.xlu1 %2377 }
 0x260   : > { %v1587_v8 = vadd.f32 %v1514_v7, %v1440_v4  ;;  %v899_v60 = vpop.f32.mrf.mxu0  ;;  %v2516_v21 = vld [vmem:[#allocation3 + $0xb4] sm:$0xff] }
 0x261   : > { %v1986_v10 = vpop.permute.xlu0 %1985  ;;  %v900_v23 = vadd.f32 %v9860_v41, %v899_v60  ;;  %v8855_v4 = vld [vmem:[%s9642_s23 + $0x128] sm:$0xff] }
 0x262   : > { %v2068_v11 = vadd.f32 %v1986_v10, %v9873_v63  ;;  %v1734_v12 = vadd.f32 %v1661_v9, %v1587_v8  ;;  %v1273_v5 = vld [vmem:[#allocation2 + $0x1a0] ss:$2 sm:$0xff]  ;;  %v1371_v51 = vld [vmem:[#allocation2 + $0x1a1] ss:$2 sm:$0xff] }
 0x263   : > { %v1072_v17 = vmax.f32 %v900_v23, 0.0 }
 0x264   : > { %v2264_v19 = vadd.f32 %v2182_v14, %v2068_v11  ;;  %v10036_v24 = vmul.f32 0.25, %v1734_v12  ;;  %v1442_v11 = vadd.f32 %v1371_v51, %v1273_v5 }
 0x265   : > { %2587 = vrot.lane.b32.xlu1 %v2516_v21, %s9563_s8  ;;  %1174 = vst [vmem:[#allocation2 + $0x1b8] sm:$0xff] %v1072_v17 }
 0x266   : > { %1832 = vst [vmem:[#allocation3 + $0xc0] sm:$0xff] %v10036_v24  ;;  %v2460_v28 = vadd.f32 %v2378_v29, %v2264_v19  ;;  %v1990_v3 = vpop.permute.xlu2 %1989 }
 0x267   : > { %v2070_v15 = vadd.f32 %v1990_v3, %v9925_v18 }
 0x268   : > { %v902_v58 = vpop.f32.mrf.mxu0 }
 0x269   : > { %v2574_v63 = vpop.permute.xlu0 %2573  ;;  %v903_v39 = vadd.f32 %v9860_v41, %v902_v58 }
 0x26a   : > { %v2656_v32 = vadd.f32 %v2574_v63, %v2460_v28 }
 0x26b   : > { %v1073_v45 = vmax.f32 %v903_v39, 0.0  ;;  %941 = vmatmul.bf16.gmra.mxu0 %v8854_v33 }
 0x26c   : > { %v9225_v38 = vpack.c.bf16 %v2656_v32, %v2655_v31  ;;  %v1516_v40 = vld [vmem:[#allocation2 + $0x1ac] ss:$2 sm:$0xff]  ;;  %v1663_v47 = vld [vmem:[#allocation2 + $0x1ad] ss:$2 sm:$0xff] }
 0x26d   : > { %v2125_v2 = vld [vmem:[#allocation3 + $0xba] sm:$0xff]  ;;  %v1588_v37 = vadd.f32 %v1516_v40, %v1441_v44  ;;  %1175 = vst [vmem:[#allocation2 + $0x1c0] sm:$0xff] %v1073_v45 }
 0x26e   : > { %v1929_v42 = vld [vmem:[#allocation3 + $0xb9] sm:$0xff]  ;;  %9373 = vst [vmem:[#allocation4 + $0x38] sm:$0xff] %v9225_v38   ;;  %2197 = vrot.lane.b32.xlu1 %v2125_v2, %s9561_s29  ;;  %3286 = vmatmul.bf16.gmra.mxu2 %v9225_v38  ;;  %v2578_v63 = vpop.permute.xlu2 %2577  ;;  %v1373_v2 = vld [vmem:[#allocation2 + $0x1b1] ss:$2 sm:$0xff] }
 0x26f   : > { %v2321_v43 = vld [vmem:[#allocation3 + $0xbb] sm:$0xff]  ;;  %2001 = vrot.lane.b32.xlu2 %v1929_v42, %s9562_s30  ;;  %v1735_v13 = vadd.f32 %v1663_v47, %v1588_v37 }
 0x270   : > { %2393 = vrot.lane.b32.xlu0 %v2321_v43, %s9560_s28  ;;  %v1988_v46 = vpop.permute.xlu1 %1987  ;;  %v904_v53 = vpop.f32.mrf.mxu0  ;;  %v2517_v48 = vld [vmem:[#allocation3 + $0xbc] sm:$0xff] }
 0x271   : > { %v905_v55 = vadd.f32 %v9860_v41, %v904_v53  ;;  %v10046_v20 = vmul.f32 0.25, %v1735_v13  ;;  %v2069_v7 = vadd.f32 %v1988_v46, %v9900_v34  ;;  %v8856_v38 = vld [vmem:[%s9642_s23 + $0x130] sm:$0xff] }
 0x272   : > { %v2184_v22 = vpop.permute.xlu0 %2183  ;;  %v1275_v39 = vld [vmem:[#allocation2 + $0x1b0] ss:$2 sm:$0xff] }
 0x273   : > { %v1074_v61 = vmax.f32 %v905_v55, 0.0  ;;  %1833 = vst [vmem:[#allocation3 + $0xc8] sm:$0xff] %v10046_v20  ;;  %v1443_v37 = vadd.f32 %v1373_v2, %v1275_v39  ;;  %v3060_v5 = vpop.f32.mrf.mxu1 }
 0x275   : > { %v8899_v57 = vld [vmem:[#allocation4 + $0x34] sm:$0xff]  ;;  %1176 = vst [vmem:[#allocation2 + $0x1c8] sm:$0xff] %v1074_v61 }
 0x276   : > { %v10048_v59 = vld [vmem:[#allocation4 + $0x34] sm:$0xff]   ;;  %3570 = vmatmul.bf16.gmra.mxu3 %v8899_v57 }
 0x277   : > { %2589 = vrot.lane.b32.xlu2 %v2517_v48, %s9563_s8  ;;  %v2959_v62 = vrot.slane %v10048_v59, 2 }
 0x278   : > { %v2576_v49 = vpop.permute.xlu1 %2575  ;;  %v907_v30 = vpop.f32.mrf.mxu0 }
 0x279   : > { %v2960_v1 = vsel %vm2949_vm0, %v2957_v54, %v2959_v62  ;;  %v908_v8 = vadd.f32 %v9860_v41, %v907_v30  ;;  %v2265_v54 = vadd.f32 %v2184_v22, %v2069_v7  ;;  %v3252_v7 = vpop.f32.mrf.mxu2 }
 0x27a   : > { %3079 = vmatmul.bf16.gmra.mxu1 %v2960_v1  ;;  %v2322_v9 = vld [vmem:[#allocation3 + $0xc3] sm:$0xff] }
 0x27b   : > { %v2126_v10 = vld [vmem:[#allocation3 + $0xc2] sm:$0xff]  ;;  %v1075_v12 = vmax.f32 %v908_v8, 0.0  ;;  %946 = vmatmul.bf16.gmra.mxu0 %v8855_v4  ;;  %2395 = vrot.lane.b32.xlu1 %v2322_v9, %s9560_s28  ;;  %v2461_v17 = vadd.f32 %v2380_v50, %v2265_v54  ;;  %v3253_v8 = vadd.f32 %v3252_v7, %v3060_v5 }
 0x27c   : > { %v1930_v52 = vld [vmem:[#allocation3 + $0xc1] sm:$0xff]  ;;  %v1518_v14 = vld [vmem:[#allocation2 + $0x1bc] ss:$2 sm:$0xff]  ;;  %v1665_v19 = vld [vmem:[#allocation2 + $0x1bd] ss:$2 sm:$0xff] }
 0x27d   : > { %2003 = vrot.lane.b32.xlu0 %v1930_v52, %s9562_s30  ;;  %v1589_v34 = vadd.f32 %v1518_v14, %v1442_v11  ;;  %1177 = vst [vmem:[#allocation2 + $0x1d0] sm:$0xff] %v1075_v12  ;;  %v2657_v32 = vadd.f32 %v2576_v49, %v2461_v17  ;;  %v2518_v36 = vld [vmem:[#allocation3 + $0xc4] sm:$0xff]  ;;  %v1277_v59 = vld [vmem:[#allocation2 + $0x1c0] ss:$2 sm:$0xff]  ;;  %v1375_v11 = vld [vmem:[#allocation2 + $0x1c1] ss:$2 sm:$0xff] }
 0x27e   : > { %v8857_v52 = vld [vmem:[%s9642_s23 + $0x138] sm:$0xff] }
 0x27f   : > { %2199 = vrot.lane.b32.xlu2 %v2126_v10, %s9561_s29  ;;  %v2382_v21 = vpop.permute.xlu0 %2381  ;;  %v1736_v26 = vadd.f32 %v1665_v19, %v1589_v34  ;;  %v2188_v19 = vpop.permute.xlu2 %2187 }
 0x280   : > { %v2186_v60 = vpop.permute.xlu1 %2185  ;;  %v909_v28 = vpop.f32.mrf.mxu0 }
 0x281   : > { %v2266_v23 = vadd.f32 %v2186_v60, %v2070_v15  ;;  %v910_v18 = vadd.f32 %v9860_v41, %v909_v28  ;;  %v10066_v31 = vmul.f32 0.25, %v1736_v26  ;;  %v10074_v41 = vld [vmem:[%s11573_s6] ss:$0 sm:$0xff]  ;;  %v1444_v60 = vadd.f32 %v1375_v11, %v1277_v59 }
 0x283   : > { %v2462_v29 = vadd.f32 %v2382_v21, %v2266_v23  ;;  %v1076_v16 = vmax.f32 %v910_v18, 0.0  ;;  %1834 = vst [vmem:[#allocation3 + $0xd0] sm:$0xff] %v10066_v31 }
 0x285   : > { %v2658_v33 = vadd.f32 %v2578_v63, %v2462_v29  ;;  %2591 = vrot.lane.b32.xlu0 %v2518_v36, %s9563_s8  ;;  %1178 = vst [vmem:[#allocation2 + $0x1d8] sm:$0xff] %v1076_v16 }
 0x287   : > { %v9230_v58 = vpack.c.bf16 %v2658_v33, %v2657_v32 }
 0x288   : > { %v912_v42 = vpop.f32.mrf.mxu0 }
 0x289   : > { %9374 = vst [vmem:[#allocation4 + $0x40] sm:$0xff] %v9230_v58   ;;  %3291 = vmatmul.bf16.gmra.mxu2 %v9230_v58  ;;  %v913_v43 = vadd.f32 %v10074_v41, %v912_v42 }
 0x28a   : > { %v1931_v44 = vld [vmem:[#allocation3 + $0xc9] sm:$0xff] }
 0x28b   : > { %v2323_v45 = vld [vmem:[#allocation3 + $0xcb] sm:$0xff]  ;;  %v1077_v46 = vmax.f32 %v913_v43, 0.0  ;;  %951 = vmatmul.bf16.gmra.mxu0 %v8856_v38  ;;  %2005 = vrot.lane.b32.xlu1 %v1931_v44, %s9562_s30  ;;  %v2386_v38 = vpop.permute.xlu2 %2385  ;;  %v10107_v44 = vpop.f32.mrf.mxu1 }
 0x28c   : > { %v2127_v40 = vld [vmem:[#allocation3 + $0xca] sm:$0xff]  ;;  %2397 = vrot.lane.b32.xlu2 %v2323_v45, %s9560_s28 }
 0x28d   : > { %v1520_v47 = vld [vmem:[#allocation2 + $0x1cc] ss:$2 sm:$0xff]  ;;  %2201 = vrot.lane.b32.xlu0 %v2127_v40, %s9561_s29  ;;  %1179 = vst [vmem:[#allocation2 + $0x1e0] sm:$0xff] %v1077_v46  ;;  %v1667_v55 = vld [vmem:[#allocation2 + $0x1cd] ss:$2 sm:$0xff]  ;;  %v2519_v4 = vld [vmem:[#allocation3 + $0xcc] sm:$0xff]  ;;  %v2384_v30 = vpop.permute.xlu1 %2383  ;;  %v10110_v46 = vpop.f32.mrf.mxu2 }
 0x28e   : > { %v1590_v50 = vadd.f32 %v1520_v47, %v1443_v37  ;;  %v8858_v37 = vld [vmem:[%s9642_s23 + $0x140] sm:$0xff]  ;;  %v1279_v47 = vld [vmem:[#allocation2 + $0x1d0] ss:$2 sm:$0xff] }
 0x28f   : > { %v1992_v57 = vpop.permute.xlu0 %1991 }
 0x290   : > { %v8900_v13 = vld [vmem:[#allocation4 + $0x3c] sm:$0xff]  ;;  %v1737_v48 = vadd.f32 %v1667_v55, %v1590_v50  ;;  %v914_v49 = vpop.f32.mrf.mxu0  ;;  %v2071_v21 = vadd.f32 %v1992_v57, %v9942_v56 }
 0x291   : > { %v10080_v53 = vld [vmem:[#allocation4 + $0x3c] sm:$0xff]   ;;  %3575 = vmatmul.bf16.gmra.mxu3 %v8900_v13  ;;  %v915_v1 = vadd.f32 %v10074_v41, %v914_v49 }
 0x292   : > { %v2961_v61 = vrot.slane %v10080_v53, 2  ;;  %v10089_v22 = vmul.f32 0.25, %v1737_v48  ;;  %v2267_v33 = vadd.f32 %v2188_v19, %v2071_v21  ;;  %v1377_v50 = vld [vmem:[#allocation2 + $0x1d1] ss:$2 sm:$0xff] }
 0x293   : > { %v1078_v51 = vmax.f32 %v915_v1, 0.0  ;;  %2593 = vrot.lane.b32.xlu1 %v2519_v4, %s9563_s8  ;;  %v1445_v4 = vadd.f32 %v1377_v50, %v1279_v47 }
 0x294   : > { %v2962_v3 = vsel %vm2949_vm0, %v2959_v62, %v2961_v61  ;;  %1835 = vst [vmem:[#allocation3 + $0xd8] sm:$0xff] %v10089_v22  ;;  %v2463_v42 = vadd.f32 %v2384_v30, %v2267_v33 }
 0x295   : > { %3084 = vmatmul.bf16.gmra.mxu1 %v2962_v3  ;;  %1180 = vst [vmem:[#allocation2 + $0x1e8] sm:$0xff] %v1078_v51 }
 0x297   : > { %v2580_v9 = vpop.permute.xlu0 %2579 }
 0x298   : > { %v3556_v10 = vpop.f32.mrf.mxu3  ;;  %v917_v12 = vpop.f32.mrf.mxu0  ;;  %v2659_v45 = vadd.f32 %v2580_v9, %v2463_v42 }
 0x299   : > { %v10094_v62 = vadd.f32 %v3556_v10, %v3253_v8  ;;  %v918_v15 = vadd.f32 %v10074_v41, %v917_v12  ;;  %v1996_v51 = vpop.permute.xlu2 %1995  ;;  %v3065_v8 = vpop.f32.mrf.mxu1 }
 0x29b   : > { %v2128_v54 = vld [vmem:[#allocation3 + $0xd2] sm:$0xff]  ;;  %v1079_v23 = vmax.f32 %v918_v15, 0.0  ;;  %956 = vmatmul.bf16.gmra.mxu0 %v8857_v52  ;;  %v3257_v52 = vpop.f32.mrf.mxu2 }
 0x29c   : > { %v1932_v14 = vld [vmem:[#allocation3 + $0xd1] sm:$0xff]  ;;  %2203 = vrot.lane.b32.xlu1 %v2128_v54, %s9561_s29  ;;  %v3258_v11 = vadd.f32 %v3257_v52, %v3065_v8 }
 0x29d   : > { %v2324_v34 = vld [vmem:[#allocation3 + $0xd3] sm:$0xff]  ;;  %2007 = vrot.lane.b32.xlu2 %v1932_v14, %s9562_s30  ;;  %1181 = vst [vmem:[#allocation2 + $0x1f0] sm:$0xff] %v1079_v23 }
 0x29e   : > { %v1522_v26 = vld [vmem:[#allocation2 + $0x1dc] ss:$2 sm:$0xff]  ;;  %2399 = vrot.lane.b32.xlu0 %v2324_v34, %s9560_s28  ;;  %v1994_v29 = vpop.permute.xlu1 %1993  ;;  %v1669_v28 = vld [vmem:[#allocation2 + $0x1dd] ss:$2 sm:$0xff] }
 0x29f   : > { %v1591_v17 = vadd.f32 %v1522_v26, %v1444_v60  ;;  %v2072_v63 = vadd.f32 %v1994_v29, %v9952_v27  ;;  %v2520_v2 = vld [vmem:[#allocation3 + $0xd4] sm:$0xff] }
 0x2a0   : > { %v2190_v18 = vpop.permute.xlu0 %2189  ;;  %v919_v36 = vpop.f32.mrf.mxu0 }
 0x2a1   : > { %v1738_v32 = vadd.f32 %v1669_v28, %v1591_v17  ;;  %v2268_v16 = vadd.f32 %v2190_v18, %v2072_v63  ;;  %v920_v58 = vadd.f32 %v10074_v41, %v919_v36  ;;  %v10113_v48 = vpop.f32.mrf.mxu3  ;;  %v2584_v17 = vpop.permute.xlu2 %2583  ;;  %v8859_v28 = vld [vmem:[%s9642_s23 + $0x148] sm:$0xff] }
 0x2a2   : > { %v1281_v63 = vld [vmem:[#allocation2 + $0x1e0] ss:$2 sm:$0xff]  ;;  %v1379_v18 = vld [vmem:[#allocation2 + $0x1e1] ss:$2 sm:$0xff] }
 0x2a3   : > { %v10103_v56 = vmul.f32 0.25, %v1738_v32  ;;  %v1080_v39 = vmax.f32 %v920_v58, 0.0  ;;  %v2464_v43 = vadd.f32 %v2386_v38, %v2268_v16  ;;  %v1446_v38 = vadd.f32 %v1379_v18, %v1281_v63 }
 0x2a5   : > { %1836 = vst [vmem:[#allocation3 + $0xe0] sm:$0xff] %v10103_v56  ;;  %2595 = vrot.lane.b32.xlu2 %v2520_v2, %s9563_s8 }
 0x2a6   : > { %1182 = vst [vmem:[#allocation2 + $0x1f8] sm:$0xff] %v1080_v39  ;;  %v2582_v27 = vpop.permute.xlu1 %2581 }
 0x2a7   : > { %v2660_v40 = vadd.f32 %v2582_v27, %v2464_v43 }
 0x2a8   : > { %v922_v55 = vpop.f32.mrf.mxu0 }
 0x2a9   : > { %v9235_v13 = vpack.c.bf16 %v2660_v40, %v2659_v45  ;;  %v923_v57 = vadd.f32 %v10074_v41, %v922_v55  ;;  %v2194_v47 = vpop.permute.xlu2 %2193 }
 0x2ab   : > { %9375 = vst [vmem:[#allocation4 + $0x48] sm:$0xff] %v9235_v13   ;;  %3296 = vmatmul.bf16.gmra.mxu2 %v9235_v13  ;;  %v1081_v5 = vmax.f32 %v923_v57, 0.0  ;;  %961 = vmatmul.bf16.gmra.mxu0 %v8858_v37 }
 0x2ac   : > { %v2325_v49 = vld [vmem:[#allocation3 + $0xdb] sm:$0xff] }
 0x2ad   : > { %v2129_v1 = vld [vmem:[#allocation3 + $0xda] sm:$0xff]  ;;  %2401 = vrot.lane.b32.xlu1 %v2325_v49, %s9560_s28  ;;  %1183 = vst [vmem:[#allocation2 + $0x200] sm:$0xff] %v1081_v5 }
 0x2ae   : > { %v1933_v3 = vld [vmem:[#allocation3 + $0xd9] sm:$0xff]  ;;  %2205 = vrot.lane.b32.xlu2 %v2129_v1, %s9561_s29  ;;  %v1381_v8 = vld [vmem:[#allocation2 + $0x1f1] ss:$2 sm:$0xff] }
 0x2af   : > { %v1524_v7 = vld [vmem:[#allocation2 + $0x1ec] ss:$2 sm:$0xff]  ;;  %2009 = vrot.lane.b32.xlu0 %v1933_v3, %s9562_s30  ;;  %v1671_v9 = vld [vmem:[#allocation2 + $0x1ed] ss:$2 sm:$0xff]  ;;  %v2192_v53 = vpop.permute.xlu1 %2191 }
 0x2b0   : > { %v1592_v30 = vadd.f32 %v1524_v7, %v1445_v4  ;;  %v924_v59 = vpop.f32.mrf.mxu0  ;;  %v2521_v19 = vld [vmem:[#allocation3 + $0xdc] sm:$0xff] }
 0x2b1   : > { %v925_v12 = vadd.f32 %v10074_v41, %v924_v59  ;;  %v2388_v29 = vpop.permute.xlu0 %2387  ;;  %v8860_v7 = vld [vmem:[%s9642_s23 + $0x150] sm:$0xff]  ;;  %v10147_v59 = vpop.f32.mrf.mxu2 }
 0x2b2   : > { %v1739_v10 = vadd.f32 %v1671_v9, %v1592_v30  ;;  %v8901_v15 = vld [vmem:[#allocation4 + $0x44] sm:$0xff] }
 0x2b3   : > { %v10119_v54 = vld [vmem:[#allocation4 + $0x44] sm:$0xff]   ;;  %v1082_v60 = vmax.f32 %v925_v12, 0.0  ;;  %3580 = vmatmul.bf16.gmra.mxu3 %v8901_v15 }
 0x2b4   : > { %v10121_v14 = vmul.f32 0.25, %v1739_v10  ;;  %v3561_v34 = vpop.f32.mrf.mxu3  ;;  %v2963_v21 = vrot.slane %v10119_v54, 2  ;;  %v1283_v30 = vld [vmem:[#allocation2 + $0x1f0] ss:$2 sm:$0xff] }
 0x2b5   : > { %v10123_v23 = vadd.f32 %v3561_v34, %v3258_v11  ;;  %1184 = vst [vmem:[#allocation2 + $0x208] sm:$0xff] %v1082_v60  ;;  %v10149_v11 = vpop.f32.mrf.mxu1  ;;  %v1447_v60 = vadd.f32 %v1381_v8, %v1283_v30 }
 0x2b6   : > { %1837 = vst [vmem:[#allocation3 + $0xe8] sm:$0xff] %v10121_v14  ;;  %v2964_v26 = vsel %vm2949_vm0, %v2961_v61, %v2963_v21  ;;  %v2073_v61 = vadd.f32 %v1996_v51, %v9972_v0 }
 0x2b7   : > { %2597 = vrot.lane.b32.xlu0 %v2521_v19, %s9563_s8  ;;  %3089 = vmatmul.bf16.gmra.mxu1 %v2964_v26 }
 0x2b8   : > { %v927_v32 = vpop.f32.mrf.mxu0  ;;  %v2269_v45 = vadd.f32 %v2192_v53, %v2073_v61  ;;  %v2392_v18 = vpop.permute.xlu2 %2391 }
 0x2b9   : > { %v928_v33 = vadd.f32 %v10074_v41, %v927_v32  ;;  %v3262_v61 = vpop.f32.mrf.mxu2 }
 0x2ba   : > { %v2465_v1 = vadd.f32 %v2388_v29, %v2269_v45 }
 0x2bb   : > { %v1083_v39 = vmax.f32 %v928_v33, 0.0  ;;  %966 = vmatmul.bf16.gmra.mxu0 %v8859_v28 }
 0x2bc   : > { %v1526_v2 = vld [vmem:[#allocation2 + $0x1fc] ss:$2 sm:$0xff]  ;;  %v1673_v43 = vld [vmem:[#allocation2 + $0x1fd] ss:$2 sm:$0xff]  ;;  %v2661_v5 = vadd.f32 %v2584_v17, %v2465_v1  ;;  %v10154_v28 = vpop.f32.mrf.mxu3 }
 0x2bd   : > { %v1934_v16 = vld [vmem:[#allocation3 + $0xe1] sm:$0xff]  ;;  %v1593_v42 = vadd.f32 %v1526_v2, %v1446_v38  ;;  %1185 = vst [vmem:[#allocation2 + $0x210] sm:$0xff] %v1083_v39 }
 0x2be   : > { %v2326_v36 = vld [vmem:[#allocation3 + $0xe3] sm:$0xff]  ;;  %2011 = vrot.lane.b32.xlu1 %v1934_v16, %s9562_s30  ;;  %v2390_v0 = vpop.permute.xlu1 %2389 }
 0x2bf   : > { %v2130_v58 = vld [vmem:[#allocation3 + $0xe2] sm:$0xff]  ;;  %2403 = vrot.lane.b32.xlu2 %v2326_v36, %s9560_s28  ;;  %v1740_v37 = vadd.f32 %v1673_v43, %v1593_v42 }
 0x2c0   : > { %2207 = vrot.lane.b32.xlu0 %v2130_v58, %s9561_s29  ;;  %v1998_v27 = vpop.permute.xlu0 %1997  ;;  %v929_v50 = vpop.f32.mrf.mxu0  ;;  %v2522_v49 = vld [vmem:[#allocation3 + $0xe4] sm:$0xff] }
 0x2c1   : > { %v2074_v40 = vadd.f32 %v1998_v27, %v9990_v35  ;;  %v930_v55 = vadd.f32 %v10074_v41, %v929_v50  ;;  %v10141_v57 = vmul.f32 0.25, %v1740_v37  ;;  %v3070_v58 = vpop.f32.mrf.mxu1 }
 0x2c2   : > { %v3263_v43 = vadd.f32 %v3262_v61, %v3070_v58 }
 0x2c3   : > { %v2270_v13 = vadd.f32 %v2194_v47, %v2074_v40  ;;  %v1084_v3 = vmax.f32 %v930_v55, 0.0  ;;  %1838 = vst [vmem:[#allocation3 + $0xf0] sm:$0xff] %v10141_v57  ;;  %v1285_v55 = vld [vmem:[#allocation2 + $0x200] ss:$2 sm:$0xff] }
 0x2c5   : > { %1186 = vst [vmem:[#allocation2 + $0x218] sm:$0xff] %v1084_v3  ;;  %v2466_v4 = vadd.f32 %v2390_v0, %v2270_v13  ;;  %v8861_v13 = vld [vmem:[%s9642_s23 + $0x158] sm:$0xff] }
 0x2c6   : > { %2599 = vrot.lane.b32.xlu1 %v2522_v49, %s9563_s8  ;;  %v1383_v49 = vld [vmem:[#allocation2 + $0x201] ss:$2 sm:$0xff] }
 0x2c7   : > { %v1448_v54 = vadd.f32 %v1383_v49, %v1285_v55 }
 0x2c8   : > { %v2586_v35 = vpop.permute.xlu0 %2585  ;;  %v932_v9 = vpop.f32.mrf.mxu0 }
 0x2c9   : > { %v2662_v51 = vadd.f32 %v2586_v35, %v2466_v4  ;;  %v933_v52 = vadd.f32 %v10074_v41, %v932_v9  ;;  %v2002_v37 = vpop.permute.xlu2 %2001 }
 0x2ca   : > { %v2131_v12 = vld [vmem:[#allocation3 + $0xea] sm:$0xff] }
 0x2cb   : > { %v9240_v10 = vpack.c.bf16 %v2662_v51, %v2661_v5  ;;  %v1935_v15 = vld [vmem:[#allocation3 + $0xe9] sm:$0xff]  ;;  %v1085_v19 = vmax.f32 %v933_v52, 0.0  ;;  %971 = vmatmul.bf16.gmra.mxu0 %v8860_v7 }
 0x2cc   : > { %v2327_v34 = vld [vmem:[#allocation3 + $0xeb] sm:$0xff]  ;;  %v1528_v26 = vld [vmem:[#allocation2 + $0x20c] ss:$2 sm:$0xff]  ;;  %2013 = vrot.lane.b32.xlu2 %v1935_v15, %s9562_s30 }
 0x2cd   : > { %9376 = vst [vmem:[#allocation4 + $0x50] sm:$0xff] %v9240_v10   ;;  %2405 = vrot.lane.b32.xlu0 %v2327_v34, %s9560_s28  ;;  %v1594_v17 = vadd.f32 %v1528_v26, %v1447_v60  ;;  %3301 = vmatmul.bf16.gmra.mxu2 %v9240_v10  ;;  %v1675_v63 = vld [vmem:[#allocation2 + $0x20d] ss:$2 sm:$0xff]  ;;  %v2523_v2 = vld [vmem:[#allocation3 + $0xec] sm:$0xff] }
 0x2ce   : > { %2209 = vrot.lane.b32.xlu1 %v2131_v12, %s9561_s29  ;;  %1187 = vst [vmem:[#allocation2 + $0x220] sm:$0xff] %v1085_v19  ;;  %v1385_v58 = vld [vmem:[#allocation2 + $0x211] ss:$2 sm:$0xff] }
 0x2cf   : > { %v2000_v29 = vpop.permute.xlu1 %1999  ;;  %v1741_v32 = vadd.f32 %v1675_v63, %v1594_v17 }
 0x2d0   : > { %v934_v33 = vpop.f32.mrf.mxu0  ;;  %v2075_v1 = vadd.f32 %v2000_v29, %v10004_v6 }
 0x2d1   : > { %v935_v16 = vadd.f32 %v10074_v41, %v934_v33  ;;  %v10157_v36 = vmul.f32 0.25, %v1741_v32  ;;  %v2196_v47 = vpop.permute.xlu0 %2195  ;;  %v2590_v19 = vpop.permute.xlu2 %2589 }
 0x2d2   : > { %v2271_v7 = vadd.f32 %v2196_v47, %v2075_v1  ;;  %v10190_v47 = vpop.f32.mrf.mxu2 }
 0x2d3   : > { %v1086_v53 = vmax.f32 %v935_v16, 0.0  ;;  %1839 = vst [vmem:[#allocation3 + $0xf8] sm:$0xff] %v10157_v36  ;;  %v1287_v16 = vld [vmem:[#allocation2 + $0x210] ss:$2 sm:$0xff] }
 0x2d4   : > { %v8902_v38 = vld [vmem:[#allocation4 + $0x4c] sm:$0xff]  ;;  %2601 = vrot.lane.b32.xlu2 %v2523_v2, %s9563_s8  ;;  %v2467_v15 = vadd.f32 %v2392_v18, %v2271_v7 }
 0x2d5   : > { %v10159_v39 = vld [vmem:[#allocation4 + $0x4c] sm:$0xff]   ;;  %3585 = vmatmul.bf16.gmra.mxu3 %v8902_v38  ;;  %1188 = vst [vmem:[#allocation2 + $0x228] sm:$0xff] %v1086_v53  ;;  %v3566_v40 = vpop.f32.mrf.mxu3 }
 0x2d6   : > { %v2965_v42 = vrot.slane %v10159_v39, 2  ;;  %v10169_v50 = vadd.f32 %v3566_v40, %v3263_v43  ;;  %v8862_v18 = vld [vmem:[%s9642_s23 + $0x160] sm:$0xff] }
 0x2d7   : > { %v2588_v27 = vpop.permute.xlu1 %2587 }
 0x2d8   : > { %v2966_v45 = vsel %vm2949_vm0, %v2963_v21, %v2965_v42  ;;  %v937_v3 = vpop.f32.mrf.mxu0  ;;  %v2076_v21 = vadd.f32 %v2002_v37, %v10018_v25  ;;  %v2663_v17 = vadd.f32 %v2588_v27, %v2467_v15  ;;  %v10185_v27 = vpop.f32.mrf.mxu1  ;;  %v8863_v15 = vld [vmem:[%s9642_s23 + $0x168] sm:$0xff] }
 0x2d9   : > { %3094 = vmatmul.bf16.gmra.mxu1 %v2966_v45  ;;  %v938_v0 = vadd.f32 %v10074_v41, %v937_v3  ;;  %v1449_v45 = vadd.f32 %v1385_v58, %v1287_v16 }
 0x2da   : > { %v2328_v4 = vld [vmem:[#allocation3 + $0xf3] sm:$0xff] }
 0x2db   : > { %v2132_v35 = vld [vmem:[#allocation3 + $0xf2] sm:$0xff]  ;;  %v1087_v51 = vmax.f32 %v938_v0, 0.0  ;;  %976 = vmatmul.bf16.gmra.mxu0 %v8861_v13  ;;  %2407 = vrot.lane.b32.xlu1 %v2328_v4, %s9560_s28 }
 0x2dc   : > { %v1936_v5 = vld [vmem:[#allocation3 + $0xf1] sm:$0xff]  ;;  %2211 = vrot.lane.b32.xlu2 %v2132_v35, %s9561_s29 }
 0x2dd   : > { %v1530_v30 = vld [vmem:[#allocation2 + $0x21c] ss:$2 sm:$0xff]  ;;  %2015 = vrot.lane.b32.xlu0 %v1936_v5, %s9562_s30  ;;  %1189 = vst [vmem:[#allocation2 + $0x230] sm:$0xff] %v1087_v51  ;;  %v1677_v9 = vld [vmem:[#allocation2 + $0x21d] ss:$2 sm:$0xff]  ;;  %v10194_v0 = vpop.f32.mrf.mxu3 }
 0x2de   : > { %v1595_v6 = vadd.f32 %v1530_v30, %v1448_v54  ;;  %v2524_v32 = vld [vmem:[#allocation3 + $0xf4] sm:$0xff] }
 0x2df   : > { %v1289_v39 = vld [vmem:[#allocation2 + $0x220] ss:$2 sm:$0xff] }
 0x2e0   : > { %v2198_v8 = vpop.permute.xlu1 %2197  ;;  %v1742_v12 = vadd.f32 %v1677_v9, %v1595_v6  ;;  %v939_v60 = vpop.f32.mrf.mxu0 }
 0x2e1   : > { %v2272_v10 = vadd.f32 %v2198_v8, %v2076_v21  ;;  %v940_v25 = vadd.f32 %v10074_v41, %v939_v60  ;;  %v3075_v30 = vpop.f32.mrf.mxu1  ;;  %v3267_v8 = vpop.f32.mrf.mxu2 }
 0x2e2   : > { %v2394_v52 = vpop.permute.xlu0 %2393  ;;  %v10179_v26 = vmul.f32 0.25, %v1742_v12 }
 0x2e3   : > { %v2468_v34 = vadd.f32 %v2394_v52, %v2272_v10  ;;  %v1088_v63 = vmax.f32 %v940_v25, 0.0  ;;  %v3268_v10 = vadd.f32 %v3267_v8, %v3075_v30  ;;  %v8864_v30 = vld [vmem:[%s9642_s23 + $0x170] sm:$0xff] }
 0x2e4   : > { %1840 = vst [vmem:[#allocation3 + $0x100] sm:$0xff] %v10179_v26 }
 0x2e5   : > { %v2664_v29 = vadd.f32 %v2590_v19, %v2468_v34  ;;  %2603 = vrot.lane.b32.xlu0 %v2524_v32, %s9563_s8  ;;  %1190 = vst [vmem:[#allocation2 + $0x238] sm:$0xff] %v1088_v63  ;;  %v1387_v34 = vld [vmem:[#allocation2 + $0x221] ss:$2 sm:$0xff]  ;;  %v2200_v32 = vpop.permute.xlu2 %2199 }
 0x2e6   : > { %v1450_v63 = vadd.f32 %v1387_v34, %v1289_v39 }
 0x2e7   : > { %v9245_v33 = vpack.c.bf16 %v2664_v29, %v2663_v17 }
 0x2e8   : > { %v942_v38 = vpop.f32.mrf.mxu0 }
 0x2e9   : > { %9377 = vst [vmem:[#allocation4 + $0x58] sm:$0xff] %v9245_v33   ;;  %3306 = vmatmul.bf16.gmra.mxu2 %v9245_v33  ;;  %v943_v53 = vadd.f32 %v10074_v41, %v942_v38 }
 0x2eb   : > { %v1937_v2 = vld [vmem:[#allocation3 + $0xf9] sm:$0xff]  ;;  %v1089_v40 = vmax.f32 %v943_v53, 0.0  ;;  %981 = vmatmul.bf16.gmra.mxu0 %v8862_v18 }
 0x2ec   : > { %v2329_v61 = vld [vmem:[#allocation3 + $0xfb] sm:$0xff]  ;;  %2017 = vrot.lane.b32.xlu1 %v1937_v2, %s9562_s30 }
 0x2ed   : > { %v2133_v43 = vld [vmem:[#allocation3 + $0xfa] sm:$0xff]  ;;  %2409 = vrot.lane.b32.xlu2 %v2329_v61, %s9560_s28  ;;  %1191 = vst [vmem:[#allocation2 + $0x240] sm:$0xff] %v1089_v40  ;;  %v2396_v9 = vpop.permute.xlu1 %2395 }
 0x2ee   : > { %v1532_v37 = vld [vmem:[#allocation2 + $0x22c] ss:$2 sm:$0xff]  ;;  %2213 = vrot.lane.b32.xlu0 %v2133_v43, %s9561_s29  ;;  %v1679_v1 = vld [vmem:[#allocation2 + $0x22d] ss:$2 sm:$0xff] }
 0x2ef   : > { %v1596_v13 = vadd.f32 %v1532_v37, %v1449_v45  ;;  %v2004_v3 = vpop.permute.xlu0 %2003  ;;  %v2525_v7 = vld [vmem:[#allocation3 + $0xfc] sm:$0xff] }
 0x2f0   : > { %v8903_v55 = vld [vmem:[#allocation4 + $0x54] sm:$0xff]  ;;  %v944_v5 = vpop.f32.mrf.mxu0  ;;  %v2077_v18 = vadd.f32 %v2004_v3, %v10036_v24 }
 0x2f1   : > { %v10192_v49 = vld [vmem:[#allocation4 + $0x54] sm:$0xff]   ;;  %3590 = vmatmul.bf16.gmra.mxu3 %v8903_v55  ;;  %v1743_v35 = vadd.f32 %v1679_v1, %v1596_v13  ;;  %v945_v54 = vadd.f32 %v10074_v41, %v944_v5  ;;  %v2398_v55 = vpop.permute.xlu2 %2397 }
 0x2f2   : > { %v2967_v4 = vrot.slane %v10192_v49, 2  ;;  %v2273_v45 = vadd.f32 %v2200_v32, %v2077_v18  ;;  %v1291_v8 = vld [vmem:[#allocation2 + $0x230] ss:$2 sm:$0xff] }
 0x2f3   : > { %v10203_v21 = vmul.f32 0.25, %v1743_v35  ;;  %v1090_v6 = vmax.f32 %v945_v54, 0.0  ;;  %v10221_v54 = vpop.f32.mrf.mxu1 }
 0x2f4   : > { %v2968_v51 = vsel %vm2949_vm0, %v2965_v42, %v2967_v4  ;;  %2605 = vrot.lane.b32.xlu1 %v2525_v7, %s9563_s8  ;;  %v2469_v35 = vadd.f32 %v2396_v9, %v2273_v45 }
 0x2f5   : > { %3099 = vmatmul.bf16.gmra.mxu1 %v2968_v51  ;;  %1841 = vst [vmem:[#allocation3 + $0x108] sm:$0xff] %v10203_v21 }
 0x2f6   : > { %1192 = vst [vmem:[#allocation2 + $0x248] sm:$0xff] %v1090_v6  ;;  %v10224_v6 = vpop.f32.mrf.mxu2 }
 0x2f7   : > { %v2592_v52 = vpop.permute.xlu0 %2591 }
 0x2f8   : > { %v947_v60 = vpop.f32.mrf.mxu0  ;;  %v2665_v51 = vadd.f32 %v2592_v52, %v2469_v35 }
 0x2f9   : > { %v3571_v12 = vpop.f32.mrf.mxu3  ;;  %v948_v19 = vadd.f32 %v10074_v41, %v947_v60  ;;  %v2008_v52 = vpop.permute.xlu2 %2007 }
 0x2fa   : > { %v10208_v42 = vadd.f32 %v3571_v12, %v3268_v10  ;;  %v1389_v10 = vld [vmem:[#allocation2 + $0x231] ss:$2 sm:$0xff] }
 0x2fb   : > { %v1091_v33 = vmax.f32 %v948_v19, 0.0  ;;  %986 = vmatmul.bf16.gmra.mxu0 %v8863_v15  ;;  %v3080_v32 = vpop.f32.mrf.mxu1 }
 0x2fc   : > { %v2134_v25 = vld [vmem:[#allocation3 + $0x102] sm:$0xff] }
 0x2fd   : > { %v1938_v17 = vld [vmem:[#allocation3 + $0x101] sm:$0xff]  ;;  %2215 = vrot.lane.b32.xlu1 %v2134_v25, %s9561_s29  ;;  %v1534_v16 = vld [vmem:[#allocation2 + $0x23c] ss:$2 sm:$0xff]  ;;  %1193 = vst [vmem:[#allocation2 + $0x250] sm:$0xff] %v1091_v33  ;;  %v2006_v38 = vpop.permute.xlu1 %2005  ;;  %v1681_v53 = vld [vmem:[#allocation2 + $0x23d] ss:$2 sm:$0xff]  ;;  %v1451_v25 = vadd.f32 %v1389_v10, %v1291_v8 }
 0x2fe   : > { %v2330_v29 = vld [vmem:[#allocation3 + $0x103] sm:$0xff]  ;;  %2019 = vrot.lane.b32.xlu2 %v1938_v17, %s9562_s30  ;;  %v1597_v58 = vadd.f32 %v1534_v16, %v1450_v63  ;;  %v2078_v2 = vadd.f32 %v2006_v38, %v10046_v20  ;;  %v3272_v16 = vpop.f32.mrf.mxu2 }
 0x2ff   : > { %2411 = vrot.lane.b32.xlu0 %v2330_v29, %s9560_s28  ;;  %v2202_v43 = vpop.permute.xlu0 %2201  ;;  %v2526_v3 = vld [vmem:[#allocation3 + $0x104] sm:$0xff]  ;;  %v3273_v38 = vadd.f32 %v3272_v16, %v3080_v32 }
 0x300   : > { %v1744_v61 = vadd.f32 %v1681_v53, %v1597_v58  ;;  %v2274_v40 = vadd.f32 %v2202_v43, %v2078_v2  ;;  %v949_v37 = vpop.f32.mrf.mxu0 }
 0x301   : > { %v950_v13 = vadd.f32 %v10074_v41, %v949_v37  ;;  %v10227_v34 = vpop.f32.mrf.mxu3 }
 0x302   : > { %v10217_v24 = vmul.f32 0.25, %v1744_v61  ;;  %v2470_v5 = vadd.f32 %v2398_v55, %v2274_v40 }
 0x303   : > { %v1092_v1 = vmax.f32 %v950_v13, 0.0 }
 0x304   : > { %1842 = vst [vmem:[#allocation3 + $0x110] sm:$0xff] %v10217_v24 }
 0x305   : > { %1194 = vst [vmem:[#allocation2 + $0x258] sm:$0xff] %v1092_v1  ;;  %v2594_v20 = vpop.permute.xlu1 %2593 }
 0x306   : > { %2607 = vrot.lane.b32.xlu2 %v2526_v3, %s9563_s8  ;;  %v2666_v7 = vadd.f32 %v2594_v20, %v2470_v5  ;;  %v2596_v3 = vpop.permute.xlu2 %2595  ;;  %v8865_v5 = vld [vmem:[%s9642_s23 + $0x178] sm:$0xff]  ;;  %v1293_v20 = vld [vmem:[#allocation2 + $0x240] ss:$2 sm:$0xff]  ;;  %s278_s23 = scalar_lea.vmem %s11574_s7, %s6891_s12 }
 0x308   : > { %v9250_v12 = vpack.c.bf16 %v2666_v7, %v2665_v51  ;;  %v952_v15 = vpop.f32.mrf.mxu0  ;;  %v1391_v51 = vld [vmem:[#allocation2 + $0x241] ss:$2 sm:$0xff] }
 0x309   : > { %v953_v39 = vadd.f32 %v10074_v41, %v952_v15  ;;  %v1452_v15 = vadd.f32 %v1391_v51, %v1293_v20  ;;  %v1317_v20 = vld [vmem:[#allocation2 + $0x300] ss:$2 sm:$0xff]  ;;  %v1415_v51 = vld [vmem:[#allocation2 + $0x301] ss:$2 sm:$0xff] }
 0x30a   : > { %9378 = vst [vmem:[#allocation4 + $0x60] sm:$0xff] %v9250_v12   ;;  %3311 = vmatmul.bf16.gmra.mxu2 %v9250_v12 }
 0x30b   : > { %v2331_v9 = vld [vmem:[#allocation3 + $0x10b] sm:$0xff]  ;;  %v1093_v17 = vmax.f32 %v953_v39, 0.0  ;;  %991 = vmatmul.bf16.gmra.mxu0 %v8864_v30 }
 0x30c   : > { %v2135_v60 = vld [vmem:[#allocation3 + $0x10a] sm:$0xff]  ;;  %2413 = vrot.lane.b32.xlu1 %v2331_v9, %s9560_s28 }
 0x30d   : > { %v1939_v19 = vld [vmem:[#allocation3 + $0x109] sm:$0xff]  ;;  %1195 = vst [vmem:[#allocation2 + $0x260] sm:$0xff] %v1093_v17 }
 0x30e   : > { %v1536_v29 = vld [vmem:[#allocation2 + $0x24c] ss:$2 sm:$0xff]  ;;  %2217 = vrot.lane.b32.xlu2 %v2135_v60, %s9561_s29  ;;  %2021 = vrot.lane.b32.xlu0 %v1939_v19, %s9562_s30  ;;  %v1683_v33 = vld [vmem:[#allocation2 + $0x24d] ss:$2 sm:$0xff]  ;;  %v2527_v37 = vld [vmem:[#allocation3 + $0x10c] sm:$0xff]  ;;  %v2204_v49 = vpop.permute.xlu1 %2203  ;;  %v2206_v32 = vpop.permute.xlu2 %2205 }
 0x30f   : > { %v1598_v63 = vadd.f32 %v1536_v29, %v1451_v25 }
 0x310   : > { %v954_v58 = vpop.f32.mrf.mxu0  ;;  %v2400_v35 = vpop.permute.xlu0 %2399 }
 0x311   : > { %v1745_v18 = vadd.f32 %v1683_v33, %v1598_v63  ;;  %v955_v53 = vadd.f32 %v10074_v41, %v954_v58  ;;  %v8904_v2 = vld [vmem:[#allocation4 + $0x5c] sm:$0xff] }
 0x312   : > { %v10233_v61 = vld [vmem:[#allocation4 + $0x5c] sm:$0xff]   ;;  %3595 = vmatmul.bf16.gmra.mxu3 %v8904_v2 }
 0x313   : > { %v10235_v43 = vmul.f32 0.25, %v1745_v18  ;;  %v1094_v40 = vmax.f32 %v955_v53, 0.0  ;;  %v2969_v55 = vrot.slane %v10233_v61, 2 }
 0x314   : > { %v3576_v45 = vpop.f32.mrf.mxu3 }
 0x315   : > { %v10237_v13 = vadd.f32 %v3576_v45, %v3273_v38  ;;  %1843 = vst [vmem:[#allocation3 + $0x118] sm:$0xff] %v10235_v43  ;;  %v2970_v1 = vsel %vm2949_vm0, %v2967_v4, %v2969_v55  ;;  %v2079_v4 = vadd.f32 %v2008_v52, %v10066_v31 }
 0x316   : > { %2609 = vrot.lane.b32.xlu0 %v2527_v37, %s9563_s8  ;;  %1196 = vst [vmem:[#allocation2 + $0x268] sm:$0xff] %v1094_v40  ;;  %3104 = vmatmul.bf16.gmra.mxu1 %v2970_v1  ;;  %v1295_v37 = vld [vmem:[#allocation2 + $0x250] ss:$2 sm:$0xff]  ;;  %v1393_v1 = vld [vmem:[#allocation2 + $0x251] ss:$2 sm:$0xff] }
 0x317   : > { %v2275_v17 = vadd.f32 %v2204_v49, %v2079_v4 }
 0x318   : > { %v957_v7 = vpop.f32.mrf.mxu0 }
 0x319   : > { %v958_v30 = vadd.f32 %v10074_v41, %v957_v7  ;;  %v2471_v53 = vadd.f32 %v2400_v35, %v2275_v17  ;;  %v10260_v35 = vpop.f32.mrf.mxu1 }
 0x31b   : > { %v1095_v39 = vmax.f32 %v958_v30, 0.0  ;;  %996 = vmatmul.bf16.gmra.mxu0 %v8865_v5  ;;  %v2667_v40 = vadd.f32 %v2596_v3, %v2471_v53  ;;  %v10264_v3 = vpop.f32.mrf.mxu2 }
 0x31c   : > { %v1940_v8 = vld [vmem:[#allocation3 + $0x111] sm:$0xff] }
 0x31d   : > { %v2332_v10 = vld [vmem:[#allocation3 + $0x113] sm:$0xff]  ;;  %2023 = vrot.lane.b32.xlu1 %v1940_v8, %s9562_s30  ;;  %1197 = vst [vmem:[#allocation2 + $0x270] sm:$0xff] %v1095_v39 }
 0x31e   : > { %v2136_v12 = vld [vmem:[#allocation3 + $0x112] sm:$0xff]  ;;  %2415 = vrot.lane.b32.xlu2 %v2332_v10, %s9560_s28 }
 0x31f   : > { %v1538_v9 = vld [vmem:[#allocation2 + $0x25c] ss:$2 sm:$0xff]  ;;  %2219 = vrot.lane.b32.xlu0 %v2136_v12, %s9561_s29  ;;  %v1685_v19 = vld [vmem:[#allocation2 + $0x25d] ss:$2 sm:$0xff]  ;;  %v2402_v31 = vpop.permute.xlu1 %2401 }
 0x320   : > { %v1599_v60 = vadd.f32 %v1538_v9, %v1452_v15  ;;  %v959_v33 = vpop.f32.mrf.mxu0  ;;  %v2528_v38 = vld [vmem:[#allocation3 + $0x114] sm:$0xff]  ;;  %v1453_v15 = vadd.f32 %v1393_v1, %v1295_v37  ;;  %v1464_v9 = vadd.f32 %v1415_v51, %v1317_v20 }
 0x321   : > { %v2010_v25 = vpop.permute.xlu0 %2009  ;;  %v960_v16 = vadd.f32 %v10074_v41, %v959_v33  ;;  %v3085_v53 = vpop.f32.mrf.mxu1 }
 0x322   : > { %v1746_v29 = vadd.f32 %v1685_v19, %v1599_v60  ;;  %v2080_v63 = vadd.f32 %v2010_v25, %v10089_v22  ;;  %v1562_v19 = vld [vmem:[#allocation2 + $0x31c] ss:$2 sm:$0xff]  ;;  %v10267_v25 = vpop.f32.mrf.mxu3 }
 0x323   : > { %v1096_v2 = vmax.f32 %v960_v16, 0.0  ;;  %v1611_v33 = vadd.f32 %v1562_v19, %v1464_v9 }
 0x324   : > { %v2276_v18 = vadd.f32 %v2206_v32, %v2080_v63  ;;  %v10255_v58 = vmul.f32 0.25, %v1746_v29  ;;  %v2404_v29 = vpop.permute.xlu2 %2403 }
 0x325   : > { %2611 = vrot.lane.b32.xlu1 %v2528_v38, %s9563_s8  ;;  %1198 = vst [vmem:[#allocation2 + $0x278] sm:$0xff] %v1096_v2 }
 0x326   : > { %1844 = vst [vmem:[#allocation3 + $0x120] sm:$0xff] %v10255_v58  ;;  %v2472_v52 = vadd.f32 %v2402_v31, %v2276_v18  ;;  %v1709_v18 = vld [vmem:[#allocation2 + $0x31d] ss:$2 sm:$0xff] }
 0x327   : > { %v1758_v37 = vadd.f32 %v1709_v18, %v1611_v33 }
 0x328   : > { %v962_v5 = vpop.f32.mrf.mxu0 }
 0x329   : > { %v2598_v45 = vpop.permute.xlu0 %2597  ;;  %v963_v30 = vadd.f32 %v10074_v41, %v962_v5  ;;  %v1807_v9 = vmul.f32 0.25, %v1758_v37 }
 0x32a   : > { %v2668_v22 = vadd.f32 %v2598_v45, %v2472_v52 }
 0x32b   : > { %v1097_v39 = vmax.f32 %v963_v30, 0.0  ;;  %1856 = vst [vmem:[#allocation3 + $0x180] sm:$0xff] %v1807_v9  ;;  %v10300_v9 = vpop.f32.mrf.mxu1 }
 0x32c   : > { %v9255_v7 = vpack.c.bf16 %v2668_v22, %v2667_v40  ;;  %v1540_v49 = vld [vmem:[#allocation2 + $0x26c] ss:$2 sm:$0xff]  ;;  %v1687_v17 = vld [vmem:[#allocation2 + $0x26d] ss:$2 sm:$0xff]  ;;  %v3277_v40 = vpop.f32.mrf.mxu2 }
 0x32d   : > { %v2137_v8 = vld [vmem:[#allocation3 + $0x11a] sm:$0xff]  ;;  %v1600_v4 = vadd.f32 %v1540_v49, %v1453_v15  ;;  %1199 = vst [vmem:[#allocation2 + $0x280] sm:$0xff] %v1097_v39  ;;  %v3278_v1 = vadd.f32 %v3277_v40, %v3085_v53 }
 0x32e   : > { %v1941_v10 = vld [vmem:[#allocation3 + $0x119] sm:$0xff]  ;;  %9379 = vst [vmem:[#allocation4 + $0x68] sm:$0xff] %v9255_v7   ;;  %2221 = vrot.lane.b32.xlu1 %v2137_v8, %s9561_s29  ;;  %3316 = vmatmul.bf16.gmra.mxu2 %v9255_v7  ;;  %v2014_v7 = vpop.permute.xlu2 %2013 }
 0x32f   : > { %v2333_v12 = vld [vmem:[#allocation3 + $0x11b] sm:$0xff]  ;;  %2025 = vrot.lane.b32.xlu2 %v1941_v10, %s9562_s30  ;;  %v1747_v63 = vadd.f32 %v1687_v17, %v1600_v4 }
 0x330   : > { %2417 = vrot.lane.b32.xlu0 %v2333_v12, %s9560_s28  ;;  %v2012_v60 = vpop.permute.xlu1 %2011  ;;  %v964_v32 = vpop.f32.mrf.mxu0  ;;  %v2529_v2 = vld [vmem:[#allocation3 + $0x11c] sm:$0xff] }
 0x331   : > { %v965_v16 = vadd.f32 %v10074_v41, %v964_v32  ;;  %v10270_v38 = vmul.f32 0.25, %v1747_v63  ;;  %v1297_v10 = vld [vmem:[#allocation2 + $0x260] ss:$2 sm:$0xff]  ;;  %v1395_v12 = vld [vmem:[#allocation2 + $0x261] ss:$2 sm:$0xff]  ;;  %v2081_v15 = vadd.f32 %v2012_v60, %v10103_v56 }
 0x332   : > { %v2208_v30 = vpop.permute.xlu0 %2207  ;;  %v1454_v61 = vadd.f32 %v1395_v12, %v1297_v10  ;;  %v1299_v10 = vld [vmem:[#allocation2 + $0x270] ss:$2 sm:$0xff]  ;;  %v1397_v12 = vld [vmem:[#allocation2 + $0x271] ss:$2 sm:$0xff] }
 0x333   : > { %v1098_v45 = vmax.f32 %v965_v16, 0.0  ;;  %1845 = vst [vmem:[#allocation3 + $0x128] sm:$0xff] %v10270_v38  ;;  %v2277_v32 = vadd.f32 %v2208_v30, %v2081_v15 }
 0x335   : > { %v8905_v31 = vld [vmem:[#allocation4 + $0x64] sm:$0xff]  ;;  %1200 = vst [vmem:[#allocation2 + $0x288] sm:$0xff] %v1098_v45 }
 0x336   : > { %v10272_v52 = vld [vmem:[#allocation4 + $0x64] sm:$0xff]   ;;  %3600 = vmatmul.bf16.gmra.mxu3 %v8905_v31  ;;  %v3581_v51 = vpop.f32.mrf.mxu3  ;;  %v2473_v31 = vadd.f32 %v2404_v29, %v2277_v32  ;;  %v2602_v37 = vpop.permute.xlu2 %2601 }
 0x337   : > { %2613 = vrot.lane.b32.xlu2 %v2529_v2, %s9563_s8  ;;  %v2971_v22 = vrot.slane %v10272_v52, 2  ;;  %v10282_v8 = vadd.f32 %v3581_v51, %v3278_v1  ;;  %v10297_v29 = vld [vmem:[%s11573_s6] ss:$0 sm:$0xff] }
 0x338   : > { %v2600_v5 = vpop.permute.xlu1 %2599  ;;  %v967_v39 = vpop.f32.mrf.mxu0 }
 0x339   : > { %v2972_v20 = vsel %vm2949_vm0, %v2969_v55, %v2971_v22  ;;  %v968_v49 = vadd.f32 %v10074_v41, %v967_v39  ;;  %v2082_v55 = vadd.f32 %v2014_v7, %v10121_v14  ;;  %v2669_v14 = vadd.f32 %v2600_v5, %v2473_v31 }
 0x33a   : > { %3109 = vmatmul.bf16.gmra.mxu1 %v2972_v20  ;;  %v2334_v4 = vld [vmem:[#allocation3 + $0x123] sm:$0xff] }
 0x33b   : > { %v2138_v19 = vld [vmem:[#allocation3 + $0x122] sm:$0xff]  ;;  %v1099_v63 = vmax.f32 %v968_v49, 0.0  ;;  %2419 = vrot.lane.b32.xlu1 %v2334_v4, %s9560_s28  ;;  %v1455_v4 = vadd.f32 %v1397_v12, %v1299_v10 }
 0x33c   : > { %v1942_v17 = vld [vmem:[#allocation3 + $0x121] sm:$0xff]  ;;  %v1542_v33 = vld [vmem:[#allocation2 + $0x27c] ss:$2 sm:$0xff]  ;;  %v1689_v18 = vld [vmem:[#allocation2 + $0x27d] ss:$2 sm:$0xff] }
 0x33d   : > { %2027 = vrot.lane.b32.xlu0 %v1942_v17, %s9562_s30  ;;  %v1601_v56 = vadd.f32 %v1542_v33, %v1454_v61  ;;  %1201 = vst [vmem:[#allocation2 + $0x290] sm:$0xff] %v1099_v63  ;;  %v10305_v61 = vpop.f32.mrf.mxu2 }
 0x33f   : > { %2223 = vrot.lane.b32.xlu2 %v2138_v19, %s9561_s29  ;;  %v1748_v53 = vadd.f32 %v1689_v18, %v1601_v56  ;;  %v2406_v2 = vpop.permute.xlu0 %2405 }
 0x340   : > { %v2210_v60 = vpop.permute.xlu1 %2209  ;;  %v969_v40 = vpop.f32.mrf.mxu0 }
 0x341   : > { %v2278_v16 = vadd.f32 %v2210_v60, %v2082_v55  ;;  %v10290_v1 = vmul.f32 0.25, %v1748_v53  ;;  %v970_v20 = vadd.f32 %v10074_v41, %v969_v40  ;;  %v10309_v60 = vpop.f32.mrf.mxu3 }
 0x343   : > { %v2474_v45 = vadd.f32 %v2406_v2, %v2278_v16  ;;  %1846 = vst [vmem:[#allocation3 + $0x130] sm:$0xff] %v10290_v1  ;;  %v1100_v7 = vmax.f32 %v970_v20, 0.0 }
 0x345   : > { %v2670_v51 = vadd.f32 %v2602_v37, %v2474_v45  ;;  %1202 = vst [vmem:[#allocation2 + $0x298] sm:$0xff] %v1100_v7  ;;  %v3090_v37 = vpop.f32.mrf.mxu1  ;;  %v8945_v7 = vld [vmem:[%s11569_s2 + $0xf8] sm:$0xff]  ;;  %v3282_v52 = vpop.f32.mrf.mxu2 }
 0x346   : > { %3921 = vmatpush.bf16.msra.mxu1 %v8945_v7 }
 0x347   : > { %v9260_v30 = vpack.c.bf16 %v2670_v51, %v2669_v14  ;;  %v2530_v14 = vld [vmem:[#allocation3 + $0x124] sm:$0xff] }
 0x348   : > { %v972_v15 = vpop.f32.mrf.mxu0  ;;  %v8970_v51 = vld [vmem:[%s11569_s2 + $0x138] sm:$0xff] }
 0x349   : > { %9380 = vst [vmem:[#allocation4 + $0x70] sm:$0xff] %v9260_v30   ;;  %3321 = vmatmul.bf16.gmra.mxu2 %v9260_v30  ;;  %v973_v39 = vadd.f32 %v10297_v29, %v972_v15  ;;  %v3283_v30 = vadd.f32 %v3282_v52, %v3090_v37  ;;  %v1301_v15 = vld [vmem:[#allocation2 + $0x280] ss:$2 sm:$0xff] }
 0x34a   : > { %v1943_v41 = vld [vmem:[#allocation3 + $0x129] sm:$0xff]  ;;  %4260 = vmatpush.bf16.msra.mxu2 %v8970_v51 }
 0x34b   : > { %v2335_v5 = vld [vmem:[#allocation3 + $0x12b] sm:$0xff]  ;;  %v1101_v19 = vmax.f32 %v973_v39, 0.0  ;;  %2029 = vrot.lane.b32.xlu1 %v1943_v41, %s9562_s30 }
 0x34c   : > { %v2139_v49 = vld [vmem:[#allocation3 + $0x12a] sm:$0xff]  ;;  %2421 = vrot.lane.b32.xlu2 %v2335_v5, %s9560_s28 }
 0x34d   : > { %v1544_v17 = vld [vmem:[#allocation2 + $0x28c] ss:$2 sm:$0xff]  ;;  %2225 = vrot.lane.b32.xlu0 %v2139_v49, %s9561_s29  ;;  %1203 = vst [vmem:[#allocation2 + $0x2a0] sm:$0xff] %v1101_v19  ;;  %v1691_v33 = vld [vmem:[#allocation2 + $0x28d] ss:$2 sm:$0xff]  ;;  %v2531_v40 = vld [vmem:[#allocation3 + $0x12c] sm:$0xff] }
 0x34e   : > { %v1602_v63 = vadd.f32 %v1544_v17, %v1455_v4  ;;  %v1399_v39 = vld [vmem:[#allocation2 + $0x281] ss:$2 sm:$0xff] }
 0x34f   : > { %v2016_v56 = vpop.permute.xlu0 %2015 }
 0x350   : > { %v8906_v55 = vld [vmem:[#allocation4 + $0x6c] sm:$0xff]  ;;  %v1749_v18 = vadd.f32 %v1691_v33, %v1602_v63  ;;  %v974_v53 = vpop.f32.mrf.mxu0  ;;  %v1456_v63 = vadd.f32 %v1399_v39, %v1301_v15 }
 0x351   : > { %v10307_v32 = vld [vmem:[#allocation4 + $0x6c] sm:$0xff]   ;;  %3605 = vmatmul.bf16.gmra.mxu3 %v8906_v55  ;;  %v975_v31 = vadd.f32 %v10297_v29, %v974_v53  ;;  %v2212_v55 = vpop.permute.xlu2 %2211 }
 0x352   : > { %v2973_v16 = vrot.slane %v10307_v32, 2  ;;  %v10312_v2 = vmul.f32 0.25, %v1749_v18  ;;  %v2083_v18 = vadd.f32 %v2016_v56, %v10141_v57 }
 0x353   : > { %v1102_v20 = vmax.f32 %v975_v31, 0.0  ;;  %2617 = vrot.lane.b32.xlu1 %v2531_v40, %s9563_s8 }
 0x354   : > { %v2974_v45 = vsel %vm2949_vm0, %v2971_v22, %v2973_v16  ;;  %1847 = vst [vmem:[#allocation3 + $0x138] sm:$0xff] %v10312_v2  ;;  %v2408_v22 = vpop.permute.xlu1 %2407  ;;  %v2279_v51 = vadd.f32 %v2212_v55, %v2083_v18  ;;  %v10344_v55 = vpop.f32.mrf.mxu2 }
 0x355   : > { %3114 = vmatmul.bf16.gmra.mxu1 %v2974_v45  ;;  %2615 = vrot.lane.b32.xlu0 %v2530_v14, %s9563_s8  ;;  %1204 = vst [vmem:[#allocation2 + $0x2a8] sm:$0xff] %v1102_v20 }
 0x356   : > { %v2475_v39 = vadd.f32 %v2408_v22, %v2279_v51 }
 0x357   : > { %v2604_v10 = vpop.permute.xlu0 %2603 }
 0x358   : > { %v3586_v12 = vpop.f32.mrf.mxu3  ;;  %v977_v5 = vpop.f32.mrf.mxu0 }
 0x359   : > { %v10329_v41 = vadd.f32 %v3586_v12, %v3283_v30  ;;  %v978_v49 = vadd.f32 %v10297_v29, %v977_v5  ;;  %v2410_v57 = vpop.permute.xlu2 %2409 }
 0x35b   : > { %v2140_v4 = vld [vmem:[#allocation3 + $0x132] sm:$0xff]  ;;  %v1103_v33 = vmax.f32 %v978_v49, 0.0  ;;  %v10342_v49 = vpop.f32.mrf.mxu1 }
 0x35c   : > { %v1944_v19 = vld [vmem:[#allocation3 + $0x131] sm:$0xff]  ;;  %2227 = vrot.lane.b32.xlu1 %v2140_v4, %s9561_s29  ;;  %v1303_v4 = vld [vmem:[#allocation2 + $0x290] ss:$2 sm:$0xff] }
 0x35d   : > { %v2336_v17 = vld [vmem:[#allocation3 + $0x133] sm:$0xff]  ;;  %2031 = vrot.lane.b32.xlu2 %v1944_v19, %s9562_s30  ;;  %1205 = vst [vmem:[#allocation2 + $0x2b0] sm:$0xff] %v1103_v33  ;;  %v1401_v19 = vld [vmem:[#allocation2 + $0x291] ss:$2 sm:$0xff] }
 0x35e   : > { %v1546_v53 = vld [vmem:[#allocation2 + $0x29c] ss:$2 sm:$0xff]  ;;  %2423 = vrot.lane.b32.xlu0 %v2336_v17, %s9560_s28  ;;  %v1693_v45 = vld [vmem:[#allocation2 + $0x29d] ss:$2 sm:$0xff]  ;;  %v2018_v40 = vpop.permute.xlu1 %2017  ;;  %v2671_v17 = vadd.f32 %v2604_v10, %v2475_v39 }
 0x35f   : > { %v1603_v31 = vadd.f32 %v1546_v53, %v1456_v63  ;;  %v2084_v37 = vadd.f32 %v2018_v40, %v10157_v36  ;;  %v2532_v15 = vld [vmem:[#allocation3 + $0x134] sm:$0xff]  ;;  %v1457_v53 = vadd.f32 %v1401_v19, %v1303_v4 }
 0x360   : > { %v2214_v14 = vpop.permute.xlu0 %2213  ;;  %v979_v52 = vpop.f32.mrf.mxu0 }
 0x361   : > { %v1750_v20 = vadd.f32 %v1693_v45, %v1603_v31  ;;  %v2280_v7 = vadd.f32 %v2214_v14, %v2084_v37  ;;  %v980_v12 = vadd.f32 %v10297_v29, %v979_v52  ;;  %v10347_v45 = vpop.f32.mrf.mxu3  ;;  %v2020_v10 = vpop.permute.xlu2 %2019 }
 0x363   : > { %v10337_v30 = vmul.f32 0.25, %v1750_v20  ;;  %v1104_v56 = vmax.f32 %v980_v12, 0.0  ;;  %v2476_v5 = vadd.f32 %v2410_v57, %v2280_v7  ;;  %v3095_v52 = vpop.f32.mrf.mxu1 }
 0x365   : > { %1848 = vst [vmem:[#allocation3 + $0x140] sm:$0xff] %v10337_v30  ;;  %2619 = vrot.lane.b32.xlu2 %v2532_v15, %s9563_s8  ;;  %v3287_v15 = vpop.f32.mrf.mxu2 }
 0x366   : > { %1206 = vst [vmem:[#allocation2 + $0x2b8] sm:$0xff] %v1104_v56  ;;  %v2606_v36 = vpop.permute.xlu1 %2605  ;;  %v3288_v56 = vadd.f32 %v3287_v15, %v3095_v52 }
 0x367   : > { %v2672_v63 = vadd.f32 %v2606_v36, %v2476_v5 }
 0x368   : > { %v982_v18 = vpop.f32.mrf.mxu0 }
 0x369   : > { %v9265_v33 = vpack.c.bf16 %v2672_v63, %v2671_v17  ;;  %v983_v31 = vadd.f32 %v10297_v29, %v982_v18 }
 0x36b   : > { %9381 = vst [vmem:[#allocation4 + $0x78] sm:$0xff] %v9265_v33   ;;  %3326 = vmatmul.bf16.gmra.mxu2 %v9265_v33  ;;  %v1105_v20 = vmax.f32 %v983_v31, 0.0  ;;  %v8944_v31 = vld [vmem:[%s11569_s2 + $0xf0] sm:$0xff] }
 0x36c   : > { %v2337_v22 = vld [vmem:[#allocation3 + $0x13b] sm:$0xff]  ;;  %3922 = vmatpush.bf16.msra.mxu1 %v8944_v31 }
 0x36d   : > { %v2141_v40 = vld [vmem:[#allocation3 + $0x13a] sm:$0xff]  ;;  %2425 = vrot.lane.b32.xlu1 %v2337_v22, %s9560_s28  ;;  %1207 = vst [vmem:[#allocation2 + $0x2c0] sm:$0xff] %v1105_v20  ;;  %v2608_v20 = vpop.permute.xlu2 %2607 }
 0x36e   : > { %v1945_v37 = vld [vmem:[#allocation3 + $0x139] sm:$0xff]  ;;  %2229 = vrot.lane.b32.xlu2 %v2141_v40, %s9561_s29 }
 0x36f   : > { %v1548_v14 = vld [vmem:[#allocation2 + $0x2ac] ss:$2 sm:$0xff]  ;;  %2033 = vrot.lane.b32.xlu0 %v1945_v37, %s9562_s30  ;;  %v1695_v7 = vld [vmem:[#allocation2 + $0x2ad] ss:$2 sm:$0xff]  ;;  %v2216_v32 = vpop.permute.xlu1 %2215 }
 0x370   : > { %v1604_v51 = vadd.f32 %v1548_v14, %v1457_v53  ;;  %v984_v57 = vpop.f32.mrf.mxu0  ;;  %v2533_v63 = vld [vmem:[#allocation3 + $0x13c] sm:$0xff] }
 0x371   : > { %v985_v5 = vadd.f32 %v10297_v29, %v984_v57  ;;  %v8969_v53 = vld [vmem:[%s11569_s2 + $0x130] sm:$0xff]  ;;  %v1305_v40 = vld [vmem:[#allocation2 + $0x2a0] ss:$2 sm:$0xff]  ;;  %v1403_v37 = vld [vmem:[#allocation2 + $0x2a1] ss:$2 sm:$0xff]  ;;  %v2412_v14 = vpop.permute.xlu0 %2411 }
 0x372   : > { %v1751_v12 = vadd.f32 %v1695_v7, %v1604_v51  ;;  %v8907_v36 = vld [vmem:[#allocation4 + $0x74] sm:$0xff]  ;;  %4261 = vmatpush.bf16.msra.mxu2 %v8969_v53  ;;  %v1458_v7 = vadd.f32 %v1403_v37, %v1305_v40 }
 0x373   : > { %v10355_v4 = vld [vmem:[#allocation4 + $0x74] sm:$0xff]   ;;  %v1106_v17 = vmax.f32 %v985_v5, 0.0  ;;  %3610 = vmatmul.bf16.gmra.mxu3 %v8907_v36  ;;  %v2085_v5 = vadd.f32 %v2020_v10, %v10179_v26 }
 0x374   : > { %v10352_v39 = vmul.f32 0.25, %v1751_v12  ;;  %v3591_v19 = vpop.f32.mrf.mxu3  ;;  %v2975_v18 = vrot.slane %v10355_v4, 2 }
 0x375   : > { %v10358_v33 = vadd.f32 %v3591_v19, %v3288_v56  ;;  %1208 = vst [vmem:[#allocation2 + $0x2c8] sm:$0xff] %v1106_v17 }
 0x376   : > { %1849 = vst [vmem:[#allocation3 + $0x148] sm:$0xff] %v10352_v39  ;;  %v2976_v22 = vsel %vm2949_vm0, %v2973_v16, %v2975_v18 }
 0x377   : > { %2621 = vrot.lane.b32.xlu0 %v2533_v63, %s9563_s8  ;;  %3119 = vmatmul.bf16.gmra.mxu1 %v2976_v22  ;;  %v2281_v63 = vadd.f32 %v2216_v32, %v2085_v5  ;;  %v2218_v22 = vpop.permute.xlu2 %2217 }
 0x378   : > { %v987_v51 = vpop.f32.mrf.mxu0 }
 0x379   : > { %v988_v52 = vadd.f32 %v10297_v29, %v987_v51 }
 0x37b   : > { %v1107_v56 = vmax.f32 %v988_v52, 0.0 }
 0x37c   : > { %v1550_v16 = vld [vmem:[#allocation2 + $0x2bc] ss:$2 sm:$0xff]  ;;  %v1697_v19 = vld [vmem:[#allocation2 + $0x2bd] ss:$2 sm:$0xff] }
 0x37d   : > { %v1946_v12 = vld [vmem:[#allocation3 + $0x141] sm:$0xff]  ;;  %v1605_v36 = vadd.f32 %v1550_v16, %v1458_v7  ;;  %1209 = vst [vmem:[#allocation2 + $0x2d0] sm:$0xff] %v1107_v56 }
 0x37e   : > { %v2338_v15 = vld [vmem:[#allocation3 + $0x143] sm:$0xff]  ;;  %2035 = vrot.lane.b32.xlu1 %v1946_v12, %s9562_s30  ;;  %v2414_v10 = vpop.permute.xlu1 %2413 }
 0x37f   : > { %v2142_v57 = vld [vmem:[#allocation3 + $0x142] sm:$0xff]  ;;  %2427 = vrot.lane.b32.xlu2 %v2338_v15, %s9560_s28  ;;  %v1752_v53 = vadd.f32 %v1697_v19, %v1605_v36  ;;  %v2477_v15 = vadd.f32 %v2412_v14, %v2281_v63 }
 0x380   : > { %2231 = vrot.lane.b32.xlu0 %v2142_v57, %s9561_s29  ;;  %v2022_v17 = vpop.permute.xlu0 %2021  ;;  %v989_v40 = vpop.f32.mrf.mxu0  ;;  %v2534_v12 = vld [vmem:[#allocation3 + $0x144] sm:$0xff] }
 0x381   : > { %v2086_v31 = vadd.f32 %v2022_v17, %v10203_v21  ;;  %v10379_v37 = vmul.f32 0.25, %v1752_v53  ;;  %v990_v52 = vadd.f32 %v10297_v29, %v989_v40  ;;  %v1307_v57 = vld [vmem:[#allocation2 + $0x2b0] ss:$2 sm:$0xff]  ;;  %v1405_v56 = vld [vmem:[#allocation2 + $0x2b1] ss:$2 sm:$0xff]  ;;  %v2673_v32 = vadd.f32 %v2608_v20, %v2477_v15  ;;  %v10385_v53 = vpop.f32.mrf.mxu1  ;;  %v8968_v15 = vld [vmem:[%s11569_s2 + $0x128] sm:$0xff] }
 0x382   : > { %v1459_v36 = vadd.f32 %v1405_v56, %v1307_v57  ;;  %4262 = vmatpush.bf16.msra.mxu2 %v8968_v15  ;;  %v8967_v56 = vld [vmem:[%s11569_s2 + $0x120] sm:$0xff] }
 0x383   : > { %v2282_v51 = vadd.f32 %v2218_v22, %v2086_v31  ;;  %1850 = vst [vmem:[#allocation3 + $0x150] sm:$0xff] %v10379_v37  ;;  %v1108_v26 = vmax.f32 %v990_v52, 0.0  ;;  %v10387_v22 = vpop.f32.mrf.mxu2  ;;  %v1407_v15 = vld [vmem:[#allocation2 + $0x2c1] ss:$2 sm:$0xff] }
 0x385   : > { %1210 = vst [vmem:[#allocation2 + $0x2d8] sm:$0xff] %v1108_v26  ;;  %v2478_v7 = vadd.f32 %v2414_v10, %v2282_v51  ;;  %v10395_v26 = vpop.f32.mrf.mxu3  ;;  %v2416_v10 = vpop.permute.xlu2 %2415 }
 0x386   : > { %2623 = vrot.lane.b32.xlu1 %v2534_v12, %s9563_s8  ;;  %11577 = vst [vmem:[#allocation6_spill] sm:$0xff] %v10395_v26  ;;  %4263 = vmatpush.bf16.msra.mxu2 %v8967_v56 }
 0x388   : > { %v2610_v21 = vpop.permute.xlu0 %2609  ;;  %v992_v5 = vpop.f32.mrf.mxu0 }
 0x389   : > { %v2674_v16 = vadd.f32 %v2610_v21, %v2478_v7  ;;  %v993_v17 = vadd.f32 %v10297_v29, %v992_v5  ;;  %v3100_v5 = vpop.f32.mrf.mxu1 }
 0x38a   : > { %v2143_v14 = vld [vmem:[#allocation3 + $0x14a] sm:$0xff] }
 0x38b   : > { %v9270_v19 = vpack.c.bf16 %v2674_v16, %v2673_v32  ;;  %v2339_v63 = vld [vmem:[#allocation3 + $0x14b] sm:$0xff]  ;;  %v1109_v40 = vmax.f32 %v993_v17, 0.0  ;;  %v3292_v17 = vpop.f32.mrf.mxu2 }
 0x38c   : > { %v1947_v31 = vld [vmem:[#allocation3 + $0x149] sm:$0xff]  ;;  %2429 = vrot.lane.b32.xlu0 %v2339_v63, %s9560_s28 }
 0x38d   : > { %9382 = vst [vmem:[#allocation4 + $0x80] sm:$0xff] %v9270_v19   ;;  %v1552_v20 = vld [vmem:[#allocation2 + $0x2cc] ss:$2 sm:$0xff]  ;;  %3331 = vmatmul.bf16.gmra.mxu2 %v9270_v19  ;;  %2037 = vrot.lane.b32.xlu2 %v1947_v31, %s9562_s30  ;;  %v1699_v52 = vld [vmem:[#allocation2 + $0x2cd] ss:$2 sm:$0xff]  ;;  %v2535_v16 = vld [vmem:[#allocation3 + $0x14c] sm:$0xff]  ;;  %v2026_v56 = vpop.permute.xlu2 %2025 }
 0x38e   : > { %2233 = vrot.lane.b32.xlu1 %v2143_v14, %s9561_s29  ;;  %v1606_v51 = vadd.f32 %v1552_v20, %v1459_v36  ;;  %1211 = vst [vmem:[#allocation2 + $0x2e0] sm:$0xff] %v1109_v40  ;;  %v8943_v31 = vld [vmem:[%s11569_s2 + $0xe8] sm:$0xff]  ;;  %v8966_v40 = vld [vmem:[%s11569_s2 + $0x118] sm:$0xff]  ;;  %v3293_v20 = vadd.f32 %v3292_v17, %v3100_v5  ;;  %v8965_v17 = vld [vmem:[%s11569_s2 + $0x110] sm:$0xff] }
 0x38f   : > { %v2024_v12 = vpop.permute.xlu1 %2023  ;;  %3923 = vmatpush.bf16.msra.mxu1 %v8943_v31  ;;  %4264 = vmatpush.bf16.msra.mxu2 %v8966_v40  ;;  %v2088_v40 = vadd.f32 %v2026_v56, %v10235_v43 }
 0x390   : > { %v1753_v7 = vadd.f32 %v1699_v52, %v1606_v51  ;;  %v994_v57 = vpop.f32.mrf.mxu0  ;;  %v1309_v52 = vld [vmem:[#allocation2 + $0x2c0] ss:$2 sm:$0xff]  ;;  %v2087_v5 = vadd.f32 %v2024_v12, %v10217_v24 }
 0x391   : > { %v995_v32 = vadd.f32 %v10297_v29, %v994_v57  ;;  %v8964_v12 = vld [vmem:[%s11569_s2 + $0x108] sm:$0xff] }
 0x392   : > { %v10400_v21 = vmul.f32 0.25, %v1753_v7 }
 0x393   : > { %v1110_v14 = vmax.f32 %v995_v32, 0.0  ;;  %v2220_v32 = vpop.permute.xlu0 %2219  ;;  %4265 = vmatpush.bf16.msra.mxu2 %v8965_v17 }
 0x394   : > { %v8908_v36 = vld [vmem:[#allocation4 + $0x7c] sm:$0xff]  ;;  %1851 = vst [vmem:[#allocation3 + $0x158] sm:$0xff] %v10400_v21 }
 0x395   : > { %v10403_v19 = vld [vmem:[#allocation4 + $0x7c] sm:$0xff]   ;;  %3615 = vmatmul.bf16.gmra.mxu3 %v8908_v36  ;;  %2625 = vrot.lane.b32.xlu2 %v2535_v16, %s9563_s8  ;;  %1212 = vst [vmem:[#allocation2 + $0x2e8] sm:$0xff] %v1110_v14  ;;  %v3596_v57 = vpop.f32.mrf.mxu3  ;;  %v1460_v14 = vadd.f32 %v1407_v15, %v1309_v52  ;;  %v10433_v52 = vpop.f32.mrf.mxu2 }
 0x396   : > { %v11575_v63 = vrot.slane %v10403_v19, 2  ;;  %v10419_v16 = vadd.f32 %v3596_v57, %v3293_v20  ;;  %v2283_v20 = vadd.f32 %v2220_v32, %v2087_v5  ;;  %11579 = vst [vmem:[#allocation8_spill] sm:$0xff] %v10433_v52  ;;  %v8963_v5 = vld [vmem:[%s11569_s2 + $0x100] sm:$0xff]  ;;  %v2614_v17 = vpop.permute.xlu2 %2613 }
 0x397   : > { %v2612_v51 = vpop.permute.xlu1 %2611  ;;  %4266 = vmatpush.bf16.msra.mxu2 %v8964_v12  ;;  %v1311_v12 = vld [vmem:[#allocation2 + $0x2d0] ss:$2 sm:$0xff] }
 0x398   : > { %v2978_v7 = vsel %vm2949_vm0, %v2975_v18, %v11575_v63  ;;  %11578 = vst [vmem:[#allocation7_spill] sm:$0xff] %v10419_v16  ;;  %v997_v36 = vpop.f32.mrf.mxu0  ;;  %v1707_v16 = vld [vmem:[#allocation2 + $0x30d] ss:$2 sm:$0xff] }
 0x399   : > { %3124 = vmatmul.bf16.gmra.mxu1 %v2978_v7  ;;  %v998_v4 = vadd.f32 %v10297_v29, %v997_v36 }
 0x39b   : > { %v1948_v26 = vld [vmem:[#allocation3 + $0x151] sm:$0xff]  ;;  %v1111_v63 = vmax.f32 %v998_v4, 0.0  ;;  %4267 = vmatpush.bf16.msra.mxu2 %v8963_v5  ;;  %v1560_v5 = vld [vmem:[#allocation2 + $0x30c] ss:$2 sm:$0xff] }
 0x39c   : > { %v2340_v18 = vld [vmem:[#allocation3 + $0x153] sm:$0xff]  ;;  %2039 = vrot.lane.b32.xlu0 %v1948_v26, %s9562_s30 }
 0x39d   : > { %2431 = vrot.lane.b32.xlu1 %v2340_v18, %s9560_s28  ;;  %v2144_v31 = vld [vmem:[#allocation3 + $0x152] sm:$0xff]  ;;  %1213 = vst [vmem:[#allocation2 + $0x2f0] sm:$0xff] %v1111_v63  ;;  %v2479_v18 = vadd.f32 %v2416_v10, %v2283_v20  ;;  %v3297_v20 = vpop.f32.mrf.mxu2 }
 0x39e   : > { %v1554_v24 = vld [vmem:[#allocation2 + $0x2dc] ss:$2 sm:$0xff]  ;;  %2235 = vrot.lane.b32.xlu2 %v2144_v31, %s9561_s29  ;;  %v1701_v7 = vld [vmem:[#allocation2 + $0x2dd] ss:$2 sm:$0xff] }
 0x39f   : > { %v1607_v15 = vadd.f32 %v1554_v24, %v1460_v14  ;;  %v2536_v32 = vld [vmem:[#allocation3 + $0x154] sm:$0xff]  ;;  %v2675_v24 = vadd.f32 %v2612_v51, %v2479_v18  ;;  %v10443_v51 = vpop.f32.mrf.mxu1 }
 0x3a0   : > { %v2222_v26 = vpop.permute.xlu1 %2221  ;;  %v999_v56 = vpop.f32.mrf.mxu0  ;;  %11580 = vst [vmem:[#allocation9_spill] sm:$0xff] %v10443_v51 }
 0x3a1   : > { %v2284_v57 = vadd.f32 %v2222_v26, %v2088_v40  ;;  %v1754_v36 = vadd.f32 %v1701_v7, %v1607_v15  ;;  %v1000_v14 = vadd.f32 %v10297_v29, %v999_v56  ;;  %v1409_v15 = vld [vmem:[#allocation2 + $0x2d1] ss:$2 sm:$0xff]  ;;  %v1313_v7 = vld [vmem:[#allocation2 + $0x2e0] ss:$2 sm:$0xff]  ;;  %v1411_v26 = vld [vmem:[#allocation2 + $0x2e1] ss:$2 sm:$0xff] }
 0x3a2   : > { %v2418_v4 = vpop.permute.xlu0 %2417 }
 0x3a3   : > { %v2480_v43 = vadd.f32 %v2418_v4, %v2284_v57  ;;  %v10438_v31 = vmul.f32 0.25, %v1754_v36  ;;  %v1112_v40 = vmax.f32 %v1000_v14, 0.0  ;;  %v1461_v57 = vadd.f32 %v1409_v15, %v1311_v12 }
 0x3a4   : > { %2627 = vrot.lane.b32.xlu0 %v2536_v32, %s9563_s8  ;;  %v1462_v36 = vadd.f32 %v1411_v26, %v1313_v7  ;;  %v10452_v26 = vpop.f32.mrf.mxu3 }
 0x3a5   : > { %v2676_v63 = vadd.f32 %v2614_v17, %v2480_v43  ;;  %1852 = vst [vmem:[#allocation3 + $0x160] sm:$0xff] %v10438_v31  ;;  %v10450_v7 = vpop.f32.mrf.mxu2 }
 0x3a6   : > { %1214 = vst [vmem:[#allocation2 + $0x2f8] sm:$0xff] %v1112_v40 }
 0x3a7   : > { %v9275_v10 = vpack.c.bf16 %v2676_v63, %v2675_v24  ;;  %11581 = vst [vmem:[#allocation10_spill] sm:$0xff] %v10450_v7  ;;  %v11583_v7 = vrot.slane %v10403_v19, 2 }
 0x3a8   : > { %11582 = vst [vmem:[#allocation11_spill] sm:$0xff] %v10452_v26 }
 0x3a9   : > { %9383 = vst [vmem:[#allocation4 + $0x88] sm:$0xff] %v9275_v10  }
 0x3ac   : > { %v1949_v4 = vld [vmem:[#allocation3 + $0x159] sm:$0xff] }
 0x3ad   : > { %v2145_v29 = vld [vmem:[#allocation3 + $0x15a] sm:$0xff]  ;;  %2041 = vrot.lane.b32.xlu1 %v1949_v4, %s9562_s30 }
 0x3ae   : > { %2237 = vrot.lane.b32.xlu0 %v2145_v29, %s9561_s29  ;;  %v2341_v18 = vld [vmem:[#allocation3 + $0x15b] sm:$0xff]  ;;  %v1558_v14 = vld [vmem:[#allocation2 + $0x2fc] ss:$2 sm:$0xff] }
 0x3af   : > { %v1315_v43 = vld [vmem:[#allocation2 + $0x2f0] ss:$2 sm:$0xff]  ;;  %v1413_v56 = vld [vmem:[#allocation2 + $0x2f1] ss:$2 sm:$0xff]  ;;  %2433 = vrot.lane.b32.xlu2 %v2341_v18, %s9560_s28  ;;  %v1609_v40 = vadd.f32 %v1558_v14, %v1462_v36 }
 0x3b0   : > { %v1556_v32 = vld [vmem:[#allocation2 + $0x2ec] ss:$2 sm:$0xff]  ;;  %v1463_v17 = vadd.f32 %v1413_v56, %v1315_v43  ;;  %v1703_v63 = vld [vmem:[#allocation2 + $0x2ed] ss:$2 sm:$0xff]  ;;  %v8909_v10 = vld [vmem:[#allocation4 + $0x84] sm:$0xff] }
 0x3b1   : > { %v1608_v24 = vadd.f32 %v1556_v32, %v1461_v57  ;;  %v2822_v12 = vld [vmem:[#allocation4 + $0x88] sm:$0x3]  ;;  %3620 = vmatmul.bf16.gmra.mxu3 %v8909_v10  ;;  %v2537_v43 = vld [vmem:[#allocation3 + $0x15c] sm:$0xff] }
 0x3b2   : > { %v10448_v15 = vld [vmem:[#allocation4 + $0x84] sm:$0xff]  ;;  %v1610_v4 = vadd.f32 %v1560_v5, %v1463_v17  ;;  %v3158_v51 = vunpack.c.l.b16 %v2822_v12 }
 0x3b3   : > { %v1705_v29 = vld [vmem:[#allocation2 + $0x2fd] ss:$2 sm:$0xff]  ;;  %v1755_v52 = vadd.f32 %v1703_v63, %v1608_v24  ;;  %v11576_v57 = vrot.slane %v10448_v15, 2  ;;  %v3105_v24 = vpop.f32.mrf.mxu1  ;;  %v3302_v63 = vpop.f32.mrf.mxu2 }
 0x3b4   : > { %v1756_v18 = vadd.f32 %v1705_v29, %v1609_v40  ;;  %v3176_v36 = vpack.c.b16 %v3158_v51, %v3158_v51  ;;  %v1757_v32 = vadd.f32 %v1707_v16, %v1610_v4  ;;  %v8942_v17 = vld [vmem:[%s11569_s2 + $0xe0] sm:$0xff]  ;;  %v2420_v16 = vpop.permute.xlu1 %2419  ;;  %v3298_v19 = vadd.f32 %v3297_v20, %v3105_v24  ;;  %v2028_v51 = vpop.permute.xlu0 %2027  ;;  %v8946_v24 = vld [vmem:[#allocation4 + $0x38] sm:$0xff] }
 0x3b5   : > { %v10455_v56 = vmul.f32 0.25, %v1755_v52  ;;  %v2980_v5 = vsel %vm2949_vm0, %v11583_v7, %v11576_v57  ;;  %2629 = vrot.lane.b32.xlu1 %v2537_v43, %s9563_s8  ;;  %3924 = vmatpush.bf16.msra.mxu1 %v8942_v17  ;;  %v2224_v4 = vpop.permute.xlu2 %2223 }
 0x3b6   : > { %v10457_v14 = vmul.f32 0.25, %v1756_v18  ;;  %3336 = vmatmul.bf16.gmra.mxu2 %v3176_v36  ;;  %v10469_v52 = vmul.f32 0.25, %v1757_v32  ;;  %3129 = vmatmul.bf16.gmra.mxu1 %v2980_v5  ;;  %v2089_v18 = vadd.f32 %v2028_v51, %v10255_v58 }
 0x3b7   : > { %1853 = vst [vmem:[#allocation3 + $0x168] sm:$0xff] %v10455_v56 }
 0x3b8   : > { %1854 = vst [vmem:[#allocation3 + $0x170] sm:$0xff] %v10457_v14  ;;  %v2285_v17 = vadd.f32 %v2224_v4, %v2089_v18 }
 0x3b9   : > { %1855 = vst [vmem:[#allocation3 + $0x178] sm:$0xff] %v10469_v52  ;;  %v3601_v40 = vpop.f32.mrf.mxu3 }
 0x3ba   : > { %v10473_v10 = vadd.f32 %v3601_v40, %v3298_v19 }
 0x3bb   : > { %v10480_v5 = vpop.f32.mrf.mxu2 }
 0x3bc   : > { %11584 = vst [vmem:[#allocation12_spill] sm:$0xff] %v10473_v10 }
 0x3bd   : > { %v2030_v43 = vpop.permute.xlu1 %2029  ;;  %11585 = vst [vmem:[#allocation13_spill] sm:$0xff] %v10480_v5  ;;  %v2422_v57 = vpop.permute.xlu2 %2421  ;;  %v8939_v5 = vld [vmem:[%s11569_s2 + $0xc8] sm:$0xff] }
 0x3be   : > { %v2146_v12 = vld [vmem:[#allocation3 + $0x162] sm:$0xff]  ;;  %v2090_v20 = vadd.f32 %v2030_v43, %v10270_v38  ;;  %v2481_v38 = vadd.f32 %v2420_v16, %v2285_v17 }
 0x3bf   : > { %v1950_v7 = vld [vmem:[#allocation3 + $0x161] sm:$0xff]  ;;  %2239 = vrot.lane.b32.xlu1 %v2146_v12, %s9561_s29  ;;  %v1951_v29 = vld [vmem:[#allocation3 + $0x169] sm:$0xff]  ;;  %v2226_v36 = vpop.permute.xlu0 %2225 }
 0x3c0   : > { %2043 = vrot.lane.b32.xlu2 %v1950_v7, %s9562_s30  ;;  %2045 = vrot.lane.b32.xlu0 %v1951_v29, %s9562_s30  ;;  %v2286_v32 = vadd.f32 %v2226_v36, %v2090_v20  ;;  %v2342_v19 = vld [vmem:[#allocation3 + $0x163] sm:$0xff]  ;;  %v2343_v40 = vld [vmem:[#allocation3 + $0x16b] sm:$0xff]  ;;  %v10485_v7 = vpop.f32.mrf.mxu1  ;;  %v2149_v17 = vld [vmem:[#allocation3 + $0x17a] sm:$0xff] }
 0x3c1   : > { %v2147_v12 = vld [vmem:[#allocation3 + $0x16a] sm:$0xff]  ;;  %11586 = vst [vmem:[#allocation14_spill] sm:$0xff] %v10485_v7 }
 0x3c2   : > { %v2482_v58 = vadd.f32 %v2422_v57, %v2286_v32  ;;  %v2538_v36 = vld [vmem:[#allocation3 + $0x164] sm:$0xff] }
 0x3c3   : > { %v10487_v18 = vpop.f32.mrf.mxu2  ;;  %v8947_v32 = vld [vmem:[#allocation4 + $0x40] sm:$0xff] }
 0x3c5   : > { %v2618_v51 = vpop.permute.xlu1 %2617 }
 0x3c6   : > { %4268 = vmatmul.bf16.vlgmr.msra.gmra.mxu2 %v8946_v24  ;;  %v2678_v29 = vadd.f32 %v2618_v51, %v2482_v58  ;;  %v10489_v24 = vpop.f32.mrf.mxu3 }
 0x3c7   : > { %2437 = vrot.lane.b32.xlu1 %v2343_v40, %s9560_s28  ;;  %v2616_v43 = vpop.permute.xlu0 %2615  ;;  %11587 = vst [vmem:[#allocation15_spill] sm:$0xff] %v10489_v24  ;;  %v1952_v40 = vld [vmem:[#allocation3 + $0x171] sm:$0xff] }
 0x3c8   : > { %2241 = vrot.lane.b32.xlu2 %v2147_v12, %s9561_s29  ;;  %2435 = vrot.lane.b32.xlu0 %v2342_v19, %s9560_s28  ;;  %v2677_v4 = vadd.f32 %v2616_v43, %v2481_v38  ;;  %v2539_v12 = vld [vmem:[#allocation3 + $0x16c] sm:$0xff]  ;;  %v2032_v19 = vpop.permute.xlu2 %2031  ;;  %v3110_v57 = vpop.f32.mrf.mxu1  ;;  %v1953_v43 = vld [vmem:[#allocation3 + $0x179] sm:$0xff] }
 0x3c9   : > { %v3303_v16 = vadd.f32 %v3302_v63, %v3110_v57  ;;  %v8941_v63 = vld [vmem:[%s11569_s2 + $0xd8] sm:$0xff]  ;;  %v11590_v57 = vrot.slane %v10448_v15, 2  ;;  %v8940_v15 = vld [vmem:[%s11569_s2 + $0xd0] sm:$0xff] }
 0x3ca   : > { %v9280_v20 = vpack.c.bf16 %v2678_v29, %v2677_v4  ;;  %v2148_v4 = vld [vmem:[#allocation3 + $0x172] sm:$0xff]  ;;  %3925 = vmatpush.bf16.msra.mxu1 %v8941_v63 }
 0x3cb   : > { %v10494_v29 = vpop.f32.mrf.mxu2 }
 0x3cc   : > { %9384 = vst [vmem:[#allocation4 + $0x90] sm:$0xff] %v9280_v20  }
 0x3cd   : > { %11588 = vst [vmem:[#allocation16_spill] sm:$0xff] %v10494_v29 }
 0x3ce   : > { %v2228_v29 = vpop.permute.xlu1 %2227  ;;  %3926 = vmatpush.bf16.msra.mxu1 %v8940_v15 }
 0x3cf   : > { %2047 = vrot.lane.b32.xlu1 %v1952_v40, %s9562_s30 }
 0x3d0   : > { %2631 = vrot.lane.b32.xlu2 %v2538_v36, %s9563_s8  ;;  %2633 = vrot.lane.b32.xlu0 %v2539_v12, %s9563_s8  ;;  %v2620_v40 = vpop.permute.xlu2 %2619  ;;  %v2424_v12 = vpop.permute.xlu0 %2423 }
 0x3d2   : > { %3927 = vmatpush.bf16.msra.mxu1 %v8939_v5 }
 0x3d3   : > { %v8910_v51 = vld [vmem:[#allocation4 + $0x8c] sm:$0xff] }
 0x3d4   : > { %v3606_v58 = vpop.f32.mrf.mxu3  ;;  %v8887_v38 = vld [vmem:[#allocation4 + $0x8c] sm:$0xff]  ;;  %3625 = vmatmul.bf16.gmra.mxu3 %v8910_v51  ;;  %v2091_v51 = vadd.f32 %v2032_v19, %v10290_v1  ;;  %v2541_v1 = vld [vmem:[#allocation3 + $0x17c] sm:$0xff] }
 0x3d5   : > { %v10497_v20 = vadd.f32 %v3606_v58, %v3303_v16  ;;  %v2981_v36 = vrot.slane %v8887_v38, 2  ;;  %v2843_v16 = vld [vmem:[#allocation4 + $0x94] sm:$0xf]  ;;  %v2344_v38 = vld [vmem:[#allocation3 + $0x173] sm:$0xff]  ;;  %v1954_v19 = vld [vmem:[#allocation3 + $0x181] sm:$0xf] }
 0x3d6   : > { %4273 = vmatmul.bf16.gmra.mxu2 %v8947_v32  ;;  %v2930_v58 = vunpack.c.l.b16 %v2843_v16 }
 0x3d7   : > { %2245 = vrot.lane.b32.xlu1 %v2149_v17, %s9561_s29  ;;  %11589 = vst [vmem:[#allocation17_spill] sm:$0xff] %v10497_v20  ;;  %v2982_v32 = vsel %vm2949_vm0, %v11590_v57, %v2981_v36  ;;  %v2540_v17 = vld [vmem:[#allocation3 + $0x174] sm:$0xff] }
 0x3d8   : > { %2049 = vrot.lane.b32.xlu2 %v1953_v43, %s9562_s30  ;;  %2243 = vrot.lane.b32.xlu0 %v2148_v4, %s9561_s29  ;;  %v10507_v43 = vpop.f32.mrf.mxu2  ;;  %v2345_v4 = vld [vmem:[#allocation3 + $0x17b] sm:$0xff]  ;;  %v2948_v57 = vpack.c.b16 %v2930_v58, %v2930_v58  ;;  %v8948_v20 = vld [vmem:[#allocation4 + $0x48] sm:$0xff] }
 0x3d9   : > { %3134 = vmatmul.bf16.gmra.mxu1 %v2982_v32  ;;  %v2287_v32 = vadd.f32 %v2228_v29, %v2091_v51 }
 0x3da   : > { %v2983_v24 = vrot.slane %v2948_v57, 2  ;;  %v10529_v57 = vpop.f32.mrf.mxu1 }
 0x3db   : > { %v2483_v7 = vadd.f32 %v2424_v12, %v2287_v32  ;;  %11592 = vst [vmem:[#allocation19_spill] sm:$0xff] %v10529_v57  ;;  %v2346_v32 = vld [vmem:[#allocation3 + $0x183] sm:$0xf] }
 0x3dc   : > { %v2984_v5 = vsel %vm2949_vm0, %v2981_v36, %v2983_v24  ;;  %v8949_v36 = vld [vmem:[#allocation4 + $0x50] sm:$0xff] }
 0x3df   : > { %2635 = vrot.lane.b32.xlu1 %v2540_v17, %s9563_s8  ;;  %v2230_v17 = vpop.permute.xlu2 %2229  ;;  %v2426_v58 = vpop.permute.xlu1 %2425 }
 0x3e0   : > { %2439 = vrot.lane.b32.xlu2 %v2344_v38, %s9560_s28  ;;  %2441 = vrot.lane.b32.xlu0 %v2345_v4, %s9560_s28  ;;  %v2150_v4 = vld [vmem:[#allocation3 + $0x182] sm:$0xf]  ;;  %v10526_v29 = vpop.f32.mrf.mxu2 }
 0x3e1   : > { %v2034_v63 = vpop.permute.xlu0 %2033  ;;  %11591 = vst [vmem:[#allocation18_spill] sm:$0xff] %v10526_v29 }
 0x3e2   : > { %v2092_v16 = vadd.f32 %v2034_v63, %v10312_v2  ;;  %v8938_v2 = vld [vmem:[%s11569_s2 + $0xc0] sm:$0xff] }
 0x3e3   : > { %3928 = vmatpush.bf16.msra.mxu1 %v8938_v2 }
 0x3e4   : > { %v2288_v38 = vadd.f32 %v2230_v17, %v2092_v16  ;;  %v2542_v16 = vld [vmem:[#allocation3 + $0x184] sm:$0xf] }
 0x3e6   : > { %4278 = vmatmul.bf16.gmra.mxu2 %v8948_v20  ;;  %v2484_v15 = vadd.f32 %v2426_v58, %v2288_v38  ;;  %v2679_v20 = vadd.f32 %v2620_v40, %v2483_v7  ;;  %v3115_v7 = vpop.f32.mrf.mxu1 }
 0x3e7   : > { %2247 = vrot.lane.b32.xlu1 %v2150_v4, %s9561_s29  ;;  %v2428_v4 = vpop.permute.xlu2 %2427 }
 0x3e8   : > { %2637 = vrot.lane.b32.xlu2 %v2541_v1, %s9563_s8  ;;  %2051 = vrot.lane.b32.xlu0 %v1954_v19, %s9562_s30  ;;  %v10533_v17 = vpop.f32.mrf.mxu2  ;;  %v10535_v1 = vpop.f32.mrf.mxu3  ;;  %v3308_v19 = vadd.f32 %v10487_v18, %v3115_v7  ;;  %v8922_v18 = vld [vmem:[#allocation4 + $0x30] sm:$0xff] }
 0x3e9   : > { %v2622_v51 = vpop.permute.xlu0 %2621  ;;  %3139 = vmatmul.bf16.gmra.mxu1 %v2984_v5  ;;  %11593 = vst [vmem:[#allocation20_spill] sm:$0xff] %v10535_v1  ;;  %v3821_v26 = vrot.slane %v8922_v18, 2 }
 0x3ea   : > { %v2680_v12 = vadd.f32 %v2622_v51, %v2484_v15 }
 0x3ec   : > { %v9285_v63 = vpack.c.bf16 %v2680_v12, %v2679_v20 }
 0x3ee   : > { %9385 = vst [vmem:[#allocation4 + $0x98] sm:$0xff] %v9285_v63  }
 0x3ef   : > { %v2038_v15 = vpop.permute.xlu2 %2037 }
 0x3f0   : > { %2443 = vrot.lane.b32.xlu2 %v2346_v32, %s9560_s28  ;;  %2639 = vrot.lane.b32.xlu0 %v2542_v16, %s9563_s8  ;;  %v2036_v38 = vpop.permute.xlu1 %2035  ;;  %v10540_v20 = vpop.f32.mrf.mxu2  ;;  %v2094_v32 = vadd.f32 %v2038_v15, %v10352_v39 }
 0x3f1   : > { %11595 = vst [vmem:[#allocation22_spill] sm:$0xff] %v10540_v20  ;;  %v2093_v12 = vadd.f32 %v2036_v38, %v10337_v30 }
 0x3f2   : > { %v2232_v58 = vpop.permute.xlu0 %2231 }
 0x3f3   : > { %v2289_v63 = vadd.f32 %v2232_v58, %v2093_v12  ;;  %v10549_v12 = vpop.f32.mrf.mxu1 }
 0x3f4   : > { %11597 = vst [vmem:[#allocation24_spill] sm:$0xff] %v10549_v12 }
 0x3f5   : > { %v8911_v40 = vld [vmem:[#allocation4 + $0x94] sm:$0xff]  ;;  %v2485_v57 = vadd.f32 %v2428_v4, %v2289_v63 }
 0x3f6   : > { %4283 = vmatmul.bf16.gmra.mxu2 %v8949_v36  ;;  %3630 = vmatmul.bf16.gmra.mxu3 %v8911_v40  ;;  %v3611_v51 = vpop.f32.mrf.mxu3  ;;  %v7354_v36 = vld [vmem:[#allocation4 + $0x28] sm:$0xc]  ;;  %v8921_v40 = vld [vmem:[#allocation4 + $0x28] sm:$0xf0] }
 0x3f7   : > { %v10538_v5 = vadd.f32 %v3611_v51, %v3308_v19  ;;  %v2626_v10 = vpop.permute.xlu2 %2625  ;;  %v7355_v19 = vor.u32 %v8921_v40, %v7354_v36  ;;  %v8950_v51 = vld [vmem:[#allocation4 + $0x58] sm:$0xff] }
 0x3f8   : > { %v2624_v2 = vpop.permute.xlu1 %2623  ;;  %v10544_v7 = vpop.f32.mrf.mxu2 }
 0x3f9   : > { %3144 = vmatmul.bf16.gmra.mxu1 %v2983_v24  ;;  %11594 = vst [vmem:[#allocation21_spill] sm:$0xff] %v10538_v5  ;;  %v2681_v5 = vadd.f32 %v2624_v2, %v2485_v57  ;;  %v3820_v38 = vrot.slane %v7355_v19, 2 }
 0x3fb   : > { %v3822_v39 = vsel %vm2949_vm0, %v3820_v38, %v3821_v26 }
 0x3fe   : > { %v2430_v29 = vpop.permute.xlu0 %2429 }
 0x3ff   : > { %v2236_v15 = vpop.permute.xlu2 %2235 }
 0x400   : > { %v2234_v16 = vpop.permute.xlu1 %2233  ;;  %v10547_v58 = vpop.f32.mrf.mxu2 }
 0x401   : > { %v2290_v1 = vadd.f32 %v2234_v16, %v2094_v32  ;;  %11596 = vst [vmem:[#allocation23_spill] sm:$0xff] %v10547_v58 }
 0x403   : > { %v2486_v24 = vadd.f32 %v2430_v29, %v2290_v1  ;;  %v8923_v29 = vld [vmem:[#allocation4 + $0x38] sm:$0xff]  ;;  %v10551_v1 = vpop.f32.mrf.mxu3 }
 0x404   : > { %11598 = vst [vmem:[#allocation25_spill] sm:$0xff] %v10551_v1  ;;  %v3823_v2 = vrot.slane %v8923_v29, 2  ;;  %v8924_v1 = vld [vmem:[#allocation4 + $0x40] sm:$0xff] }
 0x405   : > { %v2682_v20 = vadd.f32 %v2626_v10, %v2486_v24  ;;  %v8951_v10 = vld [vmem:[#allocation4 + $0x60] sm:$0xff]  ;;  %v3825_v12 = vrot.slane %v8924_v1, 2 }
 0x406   : > { %4288 = vmatmul.bf16.gmra.mxu2 %v8950_v51  ;;  %v3824_v40 = vsel %vm2949_vm0, %v3821_v26, %v3823_v2 }
 0x407   : > { %v9290_v30 = vpack.c.bf16 %v2682_v20, %v2681_v5  ;;  %v3120_v5 = vpop.f32.mrf.mxu1 }
 0x408   : > { %v10553_v57 = vpop.f32.mrf.mxu2  ;;  %v3313_v36 = vadd.f32 %v10507_v43, %v3120_v5  ;;  %v8952_v5 = vld [vmem:[#allocation4 + $0x68] sm:$0xff] }
 0x409   : > { %9386 = vst [vmem:[#allocation4 + $0xa0] sm:$0xff] %v9290_v30   ;;  %3929 = vmatmul.bf16.vlgmr.msra.gmra.mxu1 %v3822_v39  ;;  %v2434_v20 = vpop.permute.xlu2 %2433 }
 0x40e   : > { %v2040_v4 = vpop.permute.xlu0 %2039 }
 0x40f   : > { %v2432_v32 = vpop.permute.xlu1 %2431  ;;  %v2095_v38 = vadd.f32 %v2040_v4, %v10379_v37  ;;  %v3826_v4 = vsel %vm2949_vm0, %v3823_v2, %v3825_v12  ;;  %v8953_v2 = vld [vmem:[#allocation4 + $0x70] sm:$0xff] }
 0x410   : > { %v8912_v63 = vld [vmem:[#allocation4 + $0x9c] sm:$0xff]  ;;  %v3375_v18 = vld [vmem:[#allocation4 + $0xa4] sm:$0x3]  ;;  %v10559_v30 = vpop.f32.mrf.mxu2 }
 0x411   : > { %3635 = vmatmul.bf16.gmra.mxu3 %v8912_v63  ;;  %v3462_v51 = vunpack.c.l.b16 %v3375_v18  ;;  %11600 = vst [vmem:[#allocation27_spill] sm:$0xff] %v10559_v30  ;;  %v2291_v43 = vadd.f32 %v2236_v15, %v2095_v38  ;;  %v8925_v38 = vld [vmem:[#allocation4 + $0x48] sm:$0xff] }
 0x413   : > { %v3480_v63 = vpack.c.b16 %v3462_v51, %v3462_v51  ;;  %v10566_v51 = vpop.f32.mrf.mxu1 }
 0x414   : > { %11601 = vst [vmem:[#allocation28_spill] sm:$0xff] %v10566_v51 }
 0x416   : > { %4293 = vmatmul.bf16.gmra.mxu2 %v8951_v10  ;;  %v2628_v16 = vpop.permute.xlu0 %2627 }
 0x418   : > { %v3616_v24 = vpop.f32.mrf.mxu3  ;;  %v10563_v18 = vpop.f32.mrf.mxu2 }
 0x419   : > { %3934 = vmatmul.bf16.gmra.mxu1 %v3824_v40  ;;  %v10557_v19 = vadd.f32 %v3616_v24, %v3313_v36  ;;  %v2487_v36 = vadd.f32 %v2432_v32, %v2291_v43  ;;  %v3827_v43 = vrot.slane %v8925_v38, 2 }
 0x41a   : > { %v2044_v10 = vpop.permute.xlu2 %2043 }
 0x41b   : > { %11599 = vst [vmem:[#allocation26_spill] sm:$0xff] %v10557_v19  ;;  %v2683_v30 = vadd.f32 %v2628_v16, %v2487_v36  ;;  %v3125_v16 = vpop.f32.mrf.mxu1 }
 0x41f   : > { %v2042_v39 = vpop.permute.xlu1 %2041 }
 0x420   : > { %v2238_v29 = vpop.permute.xlu0 %2237  ;;  %v2096_v58 = vadd.f32 %v2042_v39, %v10400_v21  ;;  %v8986_v21 = vld [vmem:[%s11570_s3 + $0x78] sm:$0xff]  ;;  %v10571_v1 = vpop.f32.mrf.mxu3 }
 0x421   : > { %3640 = vmatmul.bf16.gmra.mxu3 %v3480_v63  ;;  %11602 = vst [vmem:[#allocation29_spill] sm:$0xff] %v10571_v1  ;;  %v10573_v39 = vpop.f32.mrf.mxu2  ;;  %v3318_v63 = vadd.f32 %v10533_v17, %v3125_v16 }
 0x422   : > { %v2292_v26 = vadd.f32 %v2238_v29, %v2096_v58  ;;  %v2242_v58 = vpop.permute.xlu2 %2241  ;;  %4729 = vmatpush.bf16.msrb.mxu3 %v8986_v21 }
 0x424   : > { %v2488_v40 = vadd.f32 %v2434_v20, %v2292_v26 }
 0x426   : > { %4298 = vmatmul.bf16.gmra.mxu2 %v8952_v5 }
 0x427   : > { %v2630_v24 = vpop.permute.xlu1 %2629 }
 0x428   : > { %v2684_v37 = vadd.f32 %v2630_v24, %v2488_v40  ;;  %v3828_v40 = vsel %vm2949_vm0, %v3825_v12, %v3827_v43  ;;  %v2097_v24 = vadd.f32 %v2044_v10, %v10438_v31  ;;  %v8954_v31 = vld [vmem:[#allocation4 + $0x78] sm:$0xff] }
 0x429   : > { %3939 = vmatmul.bf16.gmra.mxu1 %v3826_v4 }
 0x42a   : > { %v9295_v15 = vpack.c.bf16 %v2684_v37, %v2683_v30  ;;  %v2632_v29 = vpop.permute.xlu2 %2631 }
 0x42c   : > { %9387 = vst [vmem:[#allocation4 + $0xa8] sm:$0xff] %v9295_v15   ;;  %v10583_v15 = vpop.f32.mrf.mxu1 }
 0x431   : > { %v2240_v20 = vpop.permute.xlu1 %2239 }
 0x432   : > { %v2046_v32 = vpop.permute.xlu0 %2045  ;;  %v2293_v21 = vadd.f32 %v2240_v20, %v2097_v24  ;;  %v2050_v16 = vpop.permute.xlu2 %2049 }
 0x433   : > { %v2098_v37 = vadd.f32 %v2046_v32, %v10455_v56 }
 0x434   : > { %v3621_v26 = vpop.f32.mrf.mxu3  ;;  %v3130_v10 = vpop.f32.mrf.mxu1 }
 0x435   : > { %v10576_v5 = vadd.f32 %v3621_v26, %v3318_v63  ;;  %v2294_v17 = vadd.f32 %v2242_v58, %v2098_v37 }
 0x436   : > { %4303 = vmatmul.bf16.gmra.mxu2 %v8953_v2 }
 0x437   : > { %11603 = vst [vmem:[#allocation30_spill] sm:$0xff] %v10576_v5  ;;  %v8926_v5 = vld [vmem:[#allocation4 + $0x50] sm:$0xff] }
 0x438   : > { %v3829_v56 = vrot.slane %v8926_v5, 2 }
 0x439   : > { %v2438_v30 = vpop.permute.xlu1 %2437  ;;  %v10581_v4 = vpop.f32.mrf.mxu2  ;;  %3944 = vmatmul.bf16.gmra.mxu1 %v3828_v40 }
 0x43a   : > { %v2436_v36 = vpop.permute.xlu0 %2435  ;;  %v2490_v2 = vadd.f32 %v2438_v30, %v2294_v17  ;;  %v2440_v20 = vpop.permute.xlu2 %2439  ;;  %v3830_v58 = vsel %vm2949_vm0, %v3827_v43, %v3829_v56  ;;  %v8985_v43 = vld [vmem:[%s11570_s3 + $0x70] sm:$0xff] }
 0x43b   : > { %v2489_v38 = vadd.f32 %v2436_v36, %v2293_v21  ;;  %4730 = vmatpush.bf16.msrb.mxu3 %v8985_v43 }
 0x43c   : > { %v10590_v37 = vpop.f32.mrf.mxu1 }
 0x43d   : > { %v2685_v1 = vadd.f32 %v2632_v29, %v2489_v38  ;;  %v2100_v29 = vadd.f32 %v2050_v16, %v10469_v52  ;;  %v8955_v16 = vld [vmem:[#allocation4 + $0x80] sm:$0xff] }
 0x441   : > { %v2048_v63 = vpop.permute.xlu1 %2047  ;;  %v3339_v12 = vpop.f32.mrf.mxu2 }
 0x442   : > { %v2634_v26 = vpop.permute.xlu0 %2633  ;;  %v2099_v30 = vadd.f32 %v2048_v63, %v10457_v14  ;;  %v2638_v14 = vpop.permute.xlu2 %2637 }
 0x443   : > { %v2686_v51 = vadd.f32 %v2634_v26, %v2490_v2  ;;  %v10597_v2 = vpop.f32.mrf.mxu3 }
 0x445   : > { %v9300_v19 = vpack.c.bf16 %v2686_v51, %v2685_v1 }
 0x446   : > { %4308 = vmatmul.bf16.gmra.mxu2 %v8954_v31 }
 0x447   : > { %9388 = vst [vmem:[#allocation4 + $0xb0] sm:$0xff] %v9300_v19   ;;  %v8927_v19 = vld [vmem:[#allocation4 + $0x58] sm:$0xff] }
 0x448   : > { %v3831_v26 = vrot.slane %v8927_v19, 2 }
 0x449   : > { %v2246_v32 = vpop.permute.xlu1 %2245  ;;  %v10586_v36 = vpop.f32.mrf.mxu2  ;;  %3949 = vmatmul.bf16.gmra.mxu1 %v3830_v58  ;;  %v3323_v58 = vadd.f32 %v10544_v7, %v3130_v10  ;;  %v8956_v7 = vld [vmem:[#allocation4 + $0x88] sm:$0xff] }
 0x44a   : > { %v2244_v40 = vpop.permute.xlu0 %2243  ;;  %v2296_v51 = vadd.f32 %v2246_v32, %v2100_v29  ;;  %v1905_v32 = vld [vmem:[#allocation3 + $0x180] sm:$0xf]  ;;  %v2444_v19 = vpop.permute.xlu2 %2443 }
 0x44b   : > { %v2295_v24 = vadd.f32 %v2244_v40, %v2099_v30  ;;  %v3832_v40 = vsel %vm2949_vm0, %v3829_v56, %v3831_v26 }
 0x44d   : > { %v2491_v21 = vadd.f32 %v2440_v20, %v2295_v24 }
 0x451   : > { %v2636_v1 = vpop.permute.xlu1 %2635  ;;  %v10592_v38 = vpop.f32.mrf.mxu2 }
 0x452   : > { %v2442_v5 = vpop.permute.xlu0 %2441  ;;  %v2687_v63 = vadd.f32 %v2636_v1, %v2491_v21 }
 0x453   : > { %v2492_v17 = vadd.f32 %v2442_v5, %v2296_v51 }
 0x455   : > { %v2688_v52 = vadd.f32 %v2638_v14, %v2492_v17  ;;  %v8928_v14 = vld [vmem:[#allocation4 + $0x60] sm:$0xff] }
 0x456   : > { %4313 = vmatmul.bf16.gmra.mxu2 %v8955_v16  ;;  %v3135_v31 = vpop.f32.mrf.mxu1  ;;  %v3833_v10 = vrot.slane %v8928_v14, 2 }
 0x457   : > { %v9305_v12 = vpack.c.bf16 %v2688_v52, %v2687_v63  ;;  %v3626_v51 = vpop.f32.mrf.mxu3 }
 0x458   : > { %v10603_v5 = vadd.f32 %v3626_v51, %v3323_v58  ;;  %v8929_v58 = vld [vmem:[#allocation4 + $0x68] sm:$0xff]  ;;  %v8957_v51 = vld [vmem:[#allocation4 + $0x90] sm:$0xff] }
 0x459   : > { %9389 = vst [vmem:[#allocation4 + $0xb8] sm:$0xff] %v9305_v12   ;;  %v10601_v29 = vpop.f32.mrf.mxu2  ;;  %3954 = vmatmul.bf16.gmra.mxu1 %v3832_v40  ;;  %v2248_v24 = vpop.permute.xlu1 %2247  ;;  %v3834_v12 = vsel %vm2949_vm0, %v3831_v26, %v3833_v10  ;;  %v8984_v26 = vld [vmem:[%s11570_s3 + $0x68] sm:$0xff] }
 0x45a   : > { %v2052_v20 = vpop.permute.xlu0 %2051  ;;  %4731 = vmatpush.bf16.msrb.mxu3 %v8984_v26 }
 0x45b   : > { %v2101_v30 = vadd.f32 %v2052_v20, %v1905_v32 }
 0x45d   : > { %v2297_v1 = vadd.f32 %v2248_v24, %v2101_v30 }
 0x45e   : > { %v10605_v21 = vpop.f32.mrf.mxu1 }
 0x45f   : > { %v2493_v17 = vadd.f32 %v2444_v19, %v2297_v1  ;;  %v10615_v30 = vpop.f32.mrf.mxu3  ;;  %v3835_v1 = vrot.slane %v8929_v58, 2 }
 0x461   : > { %v10607_v52 = vpop.f32.mrf.mxu2 }
 0x462   : > { %v2640_v43 = vpop.permute.xlu0 %2639 }
 0x463   : > { %v2689_v63 = vadd.f32 %v2640_v43, %v2493_v17  ;;  %v3328_v43 = vadd.f32 %v10553_v57, %v3135_v31  ;;  %v10637_v57 = vld [vmem:[%s11573_s6 + $0x1] ss:$0 sm:$0xff] }
 0x465   : > { %v2738_v56 = vpack.c.bf16 %v2689_v63, %v2689_v63 }
 0x466   : > { %4318 = vmatmul.bf16.gmra.mxu2 %v8956_v7  ;;  %v3140_v16 = vpop.f32.mrf.mxu1 }
 0x467   : > { %2787 = vst [vmem:[#allocation4 + $0xc0] sm:$0x3] %v2738_v56 }
 0x469   : > { %v10610_v32 = vpop.f32.mrf.mxu2  ;;  %3959 = vmatmul.bf16.gmra.mxu1 %v3834_v12  ;;  %v8930_v12 = vld [vmem:[#allocation4 + $0x70] sm:$0xff] }
 0x46a   : > { %v3837_v58 = vrot.slane %v8930_v12, 2 }
 0x46c   : > { %v3838_v31 = vsel %vm2949_vm0, %v3835_v1, %v3837_v58 }
 0x46e   : > { %v3142_v20 = vpop.f32.mrf.mxu1 }
 0x46f   : > { %v10613_v40 = vadd.f32 %v10573_v39, %v3142_v20  ;;  %v3836_v39 = vsel %vm2949_vm0, %v3833_v10, %v3835_v1 }
 0x471   : > { %v10617_v24 = vpop.f32.mrf.mxu2 }
 0x476   : > { %4323 = vmatmul.bf16.gmra.mxu2 %v8957_v51  ;;  %v3145_v19 = vpop.f32.mrf.mxu1 }
 0x477   : > { %v10620_v17 = vadd.f32 %v10581_v4, %v3145_v19  ;;  %v8958_v4 = vld [vmem:[#allocation4 + $0x98] sm:$0xff] }
 0x479   : > { %v10627_v14 = vpop.f32.mrf.mxu2  ;;  %v3631_v63 = vpop.f32.mrf.mxu3  ;;  %3964 = vmatmul.bf16.gmra.mxu1 %v3836_v39 }
 0x47a   : > { %v10629_v56 = vadd.f32 %v3631_v63, %v3328_v43  ;;  %v3255_v43 = vadd.f32 %v10110_v46, %v10107_v44  ;;  %v3333_v44 = vadd.f32 %v10563_v18, %v3140_v16 }
 0x47e   : > { %v3147_v7 = vpop.f32.mrf.mxu1 }
 0x481   : > { %v10631_v20 = vpop.f32.mrf.mxu2  ;;  %v10646_v63 = vpop.f32.mrf.mxu3 }
 0x486   : > { %4328 = vmatmul.bf16.gmra.mxu2 %v8958_v4  ;;  %v3930_v51 = vpop.f32.mrf.mxu1 }
 0x487   : > { %v4019_v19 = vadd.f32 %v3930_v51, %v10094_v62  ;;  %v3646_v62 = vadd.f32 %v10113_v48, %v3255_v43  ;;  %v8931_v51 = vld [vmem:[#allocation4 + $0x78] sm:$0xff] }
 0x489   : > { %v4358_v10 = vadd.f32 %v10586_v36, %v4019_v19  ;;  %v10641_v26 = vpop.f32.mrf.mxu2  ;;  %3969 = vmatmul.bf16.gmra.mxu1 %v3838_v31  ;;  %v8983_v19 = vld [vmem:[%s11570_s3 + $0x60] sm:$0xff]  ;;  %v8959_v31 = vld [vmem:[#allocation4 + $0xa0] sm:$0xff] }
 0x48a   : > { %4732 = vmatpush.bf16.msrb.mxu3 %v8983_v19 }
 0x48b   : > { %v4395_v39 = vadd.f32 %v10637_v57, %v4358_v10  ;;  %v3839_v10 = vrot.slane %v8931_v51, 2  ;;  %v3260_v51 = vadd.f32 %v10147_v59, %v10149_v11  ;;  %v8979_v11 = vld [vmem:[%s11570_s3 + $0x40] sm:$0xff] }
 0x48d   : > { %v4430_v7 = vmax.f32 %v4395_v39, 0.0  ;;  %v3840_v18 = vsel %vm2949_vm0, %v3837_v58, %v3839_v10 }
 0x48e   : > { %v3932_v12 = vpop.f32.mrf.mxu1 }
 0x48f   : > { %4465 = vst [vmem:[#allocation2] sm:$0xff] %v4430_v7  ;;  %v4020_v4 = vadd.f32 %v3932_v12, %v3646_v62 }
 0x491   : > { %v4359_v1 = vadd.f32 %v10592_v38, %v4020_v4  ;;  %v10650_v36 = vpop.f32.mrf.mxu2  ;;  %v8982_v38 = vld [vmem:[%s11570_s3 + $0x58] sm:$0xff]  ;;  %v8981_v4 = vld [vmem:[%s11570_s3 + $0x50] sm:$0xff] }
 0x492   : > { %4733 = vmatpush.bf16.msrb.mxu3 %v8982_v38  ;;  %v8960_v38 = vld [vmem:[#allocation4 + $0xa8] sm:$0xff] }
 0x493   : > { %v4396_v46 = vadd.f32 %v10637_v57, %v4359_v1 }
 0x494   : > { %v3636_v48 = vpop.f32.mrf.mxu3 }
 0x495   : > { %v4431_v43 = vmax.f32 %v4396_v46, 0.0  ;;  %v10657_v39 = vadd.f32 %v3636_v48, %v3333_v44 }
 0x496   : > { %4333 = vmatmul.bf16.gmra.mxu2 %v8959_v31  ;;  %v3935_v62 = vpop.f32.mrf.mxu1  ;;  %4734 = vmatpush.bf16.msrb.mxu3 %v8981_v4  ;;  %v8932_v31 = vld [vmem:[#allocation4 + $0x80] sm:$0xff]  ;;  %v8977_v4 = vld [vmem:[%s11570_s3 + $0x30] sm:$0xff] }
 0x497   : > { %4466 = vst [vmem:[#allocation2 + $0x8] sm:$0xff] %v4431_v43  ;;  %v4021_v7 = vadd.f32 %v3935_v62, %v10123_v23  ;;  %v3648_v23 = vadd.f32 %v10154_v28, %v3260_v51  ;;  %v8978_v28 = vld [vmem:[%s11570_s3 + $0x38] sm:$0xff] }
 0x499   : > { %v4360_v16 = vadd.f32 %v10601_v29, %v4021_v7  ;;  %v10665_v12 = vpop.f32.mrf.mxu2  ;;  %3974 = vmatmul.bf16.gmra.mxu1 %v3840_v18  ;;  %v8980_v29 = vld [vmem:[%s11570_s3 + $0x48] sm:$0xff]  ;;  %v3841_v7 = vrot.slane %v8932_v31, 2 }
 0x49a   : > { %4735 = vmatpush.bf16.msrb.mxu3 %v8980_v29  ;;  %v3265_v29 = vadd.f32 %v10190_v47, %v10185_v27  ;;  %v8974_v27 = vld [vmem:[%s11570_s3 + $0x18] sm:$0xff] }
 0x49b   : > { %v4397_v1 = vadd.f32 %v10637_v57, %v4360_v16 }
 0x49c   : > { %v10673_v19 = vpop.f32.mrf.mxu3 }
 0x49d   : > { %v4432_v58 = vmax.f32 %v4397_v1, 0.0  ;;  %v3842_v1 = vsel %vm2949_vm0, %v3839_v10, %v3841_v7 }
 0x49e   : > { %v3937_v44 = vpop.f32.mrf.mxu1  ;;  %4736 = vmatpush.bf16.msrb.mxu3 %v8979_v11  ;;  %v8933_v11 = vld [vmem:[#allocation4 + $0x88] sm:$0xff] }
 0x49f   : > { %4467 = vst [vmem:[#allocation2 + $0x10] sm:$0xff] %v4432_v58  ;;  %v4022_v46 = vadd.f32 %v3937_v44, %v3648_v23 }
 0x4a1   : > { %v4361_v48 = vadd.f32 %v10607_v52, %v4022_v46  ;;  %v10680_v59 = vpop.f32.mrf.mxu2 }
 0x4a2   : > { %4790 = vmatpush.bf16.msra.mxu3 %v8978_v28 }
 0x4a3   : > { %v4398_v43 = vadd.f32 %v10637_v57, %v4361_v48 }
 0x4a4   : > { %v3641_v62 = vpop.f32.mrf.mxu3 }
 0x4a5   : > { %v4433_v18 = vmax.f32 %v4398_v43, 0.0  ;;  %v10690_v52 = vadd.f32 %v3641_v62, %v10620_v17  ;;  %v8976_v17 = vld [vmem:[%s11570_s3 + $0x28] sm:$0xff] }
 0x4a6   : > { %4338 = vmatmul.bf16.gmra.mxu2 %v8960_v38  ;;  %v3940_v16 = vpop.f32.mrf.mxu1  ;;  %4791 = vmatpush.bf16.msra.mxu3 %v8977_v4  ;;  %v3843_v38 = vrot.slane %v8933_v11, 2 }
 0x4a7   : > { %4468 = vst [vmem:[#allocation2 + $0x18] sm:$0xff] %v4433_v18  ;;  %v4023_v51 = vadd.f32 %v3940_v16, %v10169_v50  ;;  %v3650_v50 = vadd.f32 %v10194_v0, %v3265_v29  ;;  %v8961_v0 = vld [vmem:[#allocation4 + $0xb0] sm:$0xff]  ;;  %v8973_v16 = vld [vmem:[%s11570_s3 + $0x10] sm:$0xff] }
 0x4a8   : > { %v3844_v4 = vsel %vm2949_vm0, %v3841_v7, %v3843_v38 }
 0x4a9   : > { %v4362_v23 = vadd.f32 %v10610_v32, %v4023_v51  ;;  %v10698_v58 = vpop.f32.mrf.mxu2  ;;  %3979 = vmatmul.bf16.gmra.mxu1 %v3842_v1  ;;  %v8975_v32 = vld [vmem:[%s11570_s3 + $0x20] sm:$0xff] }
 0x4aa   : > { %4792 = vmatpush.bf16.msra.mxu3 %v8976_v17  ;;  %v3270_v17 = vadd.f32 %v10224_v6, %v10221_v54 }
 0x4ab   : > { %v4399_v44 = vadd.f32 %v10637_v57, %v4362_v23  ;;  %v8972_v23 = vld [vmem:[%s11570_s3 + $0x8] sm:$0xff] }
 0x4ac   : > { %v3643_v46 = vpop.f32.mrf.mxu3 }
 0x4ad   : > { %v4434_v10 = vmax.f32 %v4399_v44, 0.0  ;;  %v4500_v44 = vld [vmem:[#allocation2] ss:$2 sm:$0xff]  ;;  %v4516_v46 = vld [vmem:[#allocation2 + $0x1] ss:$2 sm:$0xff] }
 0x4ae   : > { %v3942_v31 = vpop.f32.mrf.mxu1  ;;  %4793 = vmatpush.bf16.msra.mxu3 %v8975_v32 }
 0x4af   : > { %4469 = vst [vmem:[#allocation2 + $0x20] sm:$0xff] %v4434_v10  ;;  %v4024_v48 = vadd.f32 %v3942_v31, %v3650_v50  ;;  %v4532_v10 = vadd.f32 %v4516_v46, %v4500_v44  ;;  %v4517_v44 = vld [vmem:[#allocation2 + $0x11] ss:$2 sm:$0xff]  ;;  %v3275_v46 = vadd.f32 %v10264_v3, %v10260_v35 }
 0x4b1   : > { %v4363_v28 = vadd.f32 %v10617_v24, %v4024_v48  ;;  %v10711_v43 = vpop.f32.mrf.mxu2  ;;  %v8934_v48 = vld [vmem:[#allocation4 + $0x90] sm:$0xff] }
 0x4b2   : > { %4794 = vmatpush.bf16.msra.mxu3 %v8974_v27 }
 0x4b3   : > { %v4400_v47 = vadd.f32 %v10637_v57, %v4363_v28 }
 0x4b5   : > { %v4435_v62 = vmax.f32 %v4400_v47, 0.0  ;;  %v8962_v47 = vld [vmem:[#allocation4 + $0xb8] sm:$0xff] }
 0x4b6   : > { %4343 = vmatmul.bf16.gmra.mxu2 %v8961_v0  ;;  %v3945_v18 = vpop.f32.mrf.mxu1  ;;  %4795 = vmatpush.bf16.msra.mxu3 %v8973_v16  ;;  %v3845_v0 = vrot.slane %v8934_v48, 2  ;;  %v9050_v16 = vld [vmem:[%s11570_s3 + $0x278] sm:$0xff]  ;;  %v8935_v48 = vld [vmem:[#allocation4 + $0x98] sm:$0xff] }
 0x4b7   : > { %4470 = vst [vmem:[#allocation2 + $0x28] sm:$0xff] %v4435_v62  ;;  %v4025_v24 = vadd.f32 %v3945_v18, %v10208_v42  ;;  %v3652_v42 = vadd.f32 %v10227_v34, %v3270_v17  ;;  %5437 = vmatpush.bf16.msrb.mxu1 %v9050_v16 }
 0x4b9   : > { %v4364_v51 = vadd.f32 %v10627_v14, %v4025_v24  ;;  %v10723_v1 = vpop.f32.mrf.mxu2  ;;  %3984 = vmatmul.bf16.gmra.mxu1 %v3844_v4  ;;  %v8971_v14 = vld [vmem:[%s11570_s3] sm:$0xff] }
 0x4ba   : > { %4796 = vmatpush.bf16.msra.mxu3 %v8972_v23 }
 0x4bb   : > { %v4401_v29 = vadd.f32 %v10637_v57, %v4364_v51  ;;  %v3846_v51 = vsel %vm2949_vm0, %v3843_v38, %v3845_v0 }
 0x4bd   : > { %v4436_v7 = vmax.f32 %v4401_v29, 0.0  ;;  %v4501_v29 = vld [vmem:[#allocation2 + $0x10] ss:$2 sm:$0xff] }
 0x4be   : > { %v3947_v50 = vpop.f32.mrf.mxu1  ;;  %v4548_v32 = vld [vmem:[#allocation2 + $0x1c] ss:$2 sm:$0xff]  ;;  %4797 = vmatpush.bf16.msra.mxu3 %v8971_v14  ;;  %v4580_v28 = vld [vmem:[#allocation2 + $0x1d] ss:$2 sm:$0xff]  ;;  %v4533_v14 = vadd.f32 %v4517_v44, %v4501_v29 }
 0x4bf   : > { %4471 = vst [vmem:[#allocation2 + $0x30] sm:$0xff] %v4436_v7  ;;  %v4026_v31 = vadd.f32 %v3947_v50, %v3652_v42  ;;  %v4564_v54 = vadd.f32 %v4548_v32, %v4532_v10  ;;  %v4088_v7 = vld [vmem:[#allocation4 + $0xc0] sm:$0x3]  ;;  %v3654_v50 = vadd.f32 %v10267_v25, %v3275_v46  ;;  %v3847_v25 = vrot.slane %v8935_v48, 2 }
 0x4c0   : > { %v8994_v29 = vld [vmem:[%s11570_s3 + $0xb8] sm:$0xff] }
 0x4c1   : > { %v4365_v6 = vadd.f32 %v10631_v20, %v4026_v31  ;;  %v10736_v11 = vpop.f32.mrf.mxu2  ;;  %v4596_v27 = vadd.f32 %v4580_v28, %v4564_v54  ;;  %v9058_v20 = vld [vmem:[%s11570_s3 + $0x2b8] sm:$0xff] }
 0x4c2   : > { %5518 = vmatpush.bf16.msrb.mxu2 %v9058_v20  ;;  %v3848_v20 = vsel %vm2949_vm0, %v3845_v0, %v3847_v25 }
 0x4c3   : > { %v4402_v34 = vadd.f32 %v10637_v57, %v4365_v6  ;;  %v10739_v62 = vmul.f32 0.25, %v4596_v27 }
 0x4c5   : > { %v4437_v18 = vmax.f32 %v4402_v34, 0.0  ;;  %4628 = vst [vmem:[#allocation5] sm:$0xff] %v10739_v62 }
 0x4c6   : > { %4348 = vmatmul.bf16.gmra.mxu2 %v8962_v47  ;;  %v3950_v24 = vpop.f32.mrf.mxu1 }
 0x4c7   : > { %4472 = vst [vmem:[#allocation2 + $0x38] sm:$0xff] %v4437_v18  ;;  %v4027_v4 = vadd.f32 %v3950_v24, %v10237_v13 }
 0x4c9   : > { %v4366_v23 = vadd.f32 %v10641_v26, %v4027_v4  ;;  %v10751_v17 = vpop.f32.mrf.mxu2  ;;  %3989 = vmatmul.bf16.gmra.mxu1 %v3846_v51  ;;  %v4175_v26 = vunpack.c.l.b16 %v4088_v7  ;;  %v3280_v4 = vadd.f32 %v10305_v61, %v10300_v9  ;;  %v8993_v9 = vld [vmem:[%s11570_s3 + $0xb0] sm:$0xff]  ;;  %v8936_v61 = vld [vmem:[#allocation4 + $0xa0] sm:$0xff] }
 0x4cb   : > { %v4403_v42 = vadd.f32 %v10637_v57, %v4366_v23  ;;  %v4193_v27 = vpack.c.b16 %v4175_v26, %v4175_v26  ;;  %v3656_v44 = vadd.f32 %v10309_v60, %v3280_v4 }
 0x4cd   : > { %v4438_v13 = vmax.f32 %v4403_v42, 0.0  ;;  %v9049_v42 = vld [vmem:[%s11570_s3 + $0x270] sm:$0xff] }
 0x4ce   : > { %v3952_v10 = vpop.f32.mrf.mxu1  ;;  %v4549_v31 = vld [vmem:[#allocation2 + $0x2c] ss:$2 sm:$0xff]  ;;  %v4581_v54 = vld [vmem:[#allocation2 + $0x2d] ss:$2 sm:$0xff]  ;;  %5438 = vmatpush.bf16.msrb.mxu1 %v9049_v42 }
 0x4cf   : > { %4473 = vst [vmem:[#allocation2 + $0x40] sm:$0xff] %v4438_v13  ;;  %v4028_v38 = vadd.f32 %v3952_v10, %v3654_v50  ;;  %v4565_v32 = vadd.f32 %v4549_v31, %v4533_v14  ;;  %v8992_v13 = vld [vmem:[%s11570_s3 + $0xa8] sm:$0xff]  ;;  %v3849_v14 = vrot.slane %v8936_v61, 2  ;;  %v8987_v61 = vld [vmem:[%s11570_s3 + $0x80] sm:$0xff] }
 0x4d1   : > { %v4367_v6 = vadd.f32 %v10650_v36, %v4028_v38  ;;  %v10758_v28 = vpop.f32.mrf.mxu2  ;;  %v4597_v35 = vadd.f32 %v4581_v54, %v4565_v32  ;;  %v3850_v26 = vsel %vm2949_vm0, %v3847_v25, %v3849_v14  ;;  %v4503_v54 = vld [vmem:[#allocation2 + $0x30] ss:$2 sm:$0xff] }
 0x4d3   : > { %v4404_v3 = vadd.f32 %v10637_v57, %v4367_v6  ;;  %v4613_v34 = vmul.f32 0.25, %v4597_v35  ;;  %v4519_v6 = vld [vmem:[#allocation2 + $0x31] ss:$2 sm:$0xff]  ;;  %v3285_v35 = vadd.f32 %v10344_v55, %v10342_v49 }
 0x4d4   : > { %v4535_v25 = vadd.f32 %v4519_v6, %v4503_v54  ;;  %v8989_v55 = vld [vmem:[%s11570_s3 + $0x90] sm:$0xff]  ;;  %v11604_v54 = vld [vmem:[#allocation6_spill] sm:$0xff] }
 0x4d5   : > { %v4439_v47 = vmax.f32 %v4404_v3, 0.0  ;;  %4629 = vst [vmem:[#allocation5 + $0x8] sm:$0xff] %v4613_v34 }
 0x4d6   : > { %4353 = vmatmul.bf16.gmra.mxu2 %v4193_v27  ;;  %v3955_v18 = vpop.f32.mrf.mxu1  ;;  %v3658_v27 = vadd.f32 %v10347_v45, %v3285_v35 }
 0x4d7   : > { %4474 = vst [vmem:[#allocation2 + $0x48] sm:$0xff] %v4439_v47  ;;  %v4029_v16 = vadd.f32 %v3955_v18, %v10282_v8 }
 0x4d9   : > { %v4368_v24 = vadd.f32 %v10665_v12, %v4029_v16  ;;  %v10764_v36 = vpop.f32.mrf.mxu2  ;;  %3994 = vmatmul.bf16.gmra.mxu1 %v3848_v20  ;;  %v10806_v20 = vld [vmem:[#allocation4 + $0xa8] sm:$0xff] }
 0x4db   : > { %v4405_v51 = vadd.f32 %v10637_v57, %v4368_v24 }
 0x4dc   : > { %v4662_v23 = vld [vmem:[#allocation5 + $0x1] sm:$0xff] }
 0x4dd   : > { %v4440_v8 = vmax.f32 %v4405_v51, 0.0  ;;  %v4663_v46 = vpack.c.bf16 %v4662_v23, %v4662_v23  ;;  %v9048_v51 = vld [vmem:[%s11570_s3 + $0x268] sm:$0xff] }
 0x4de   : > { %v3957_v0 = vpop.f32.mrf.mxu1  ;;  %5439 = vmatpush.bf16.msrb.mxu1 %v9048_v51 }
 0x4df   : > { %4475 = vst [vmem:[#allocation2 + $0x50] sm:$0xff] %v4440_v8  ;;  %v4030_v12 = vadd.f32 %v3957_v0, %v3656_v44  ;;  %4737 = vmatmul.bf16.vlgmr.msrb.gmra.mxu3 %v4663_v46  ;;  %v8988_v44 = vld [vmem:[%s11570_s3 + $0x88] sm:$0xff]  ;;  %v3851_v8 = vrot.slane %v10806_v20, 2 }
 0x4e0   : > { %4870 = vmatpush.bf16.msrb.mxu3 %v8994_v29  ;;  %v9052_v20 = vld [vmem:[%s11570_s3 + $0x288] sm:$0xff] }
 0x4e1   : > { %v4369_v7 = vadd.f32 %v10680_v59, %v4030_v12  ;;  %v10780_v50 = vpop.f32.mrf.mxu2  ;;  %v8991_v59 = vld [vmem:[%s11570_s3 + $0xa0] sm:$0xff] }
 0x4e2   : > { %v9047_v12 = vld [vmem:[%s11570_s3 + $0x260] sm:$0xff] }
 0x4e3   : > { %v4406_v60 = vadd.f32 %v10637_v57, %v4369_v7  ;;  %5440 = vmatpush.bf16.msrb.mxu1 %v9047_v12  ;;  %v11605_v12 = vld [vmem:[#allocation7_spill] sm:$0xff] }
 0x4e4   : > { %4871 = vmatpush.bf16.msrb.mxu3 %v8993_v9  ;;  %v3852_v9 = vsel %vm2949_vm0, %v3849_v14, %v3851_v8  ;;  %v9046_v14 = vld [vmem:[%s11570_s3 + $0x258] sm:$0xff] }
 0x4e5   : > { %v4441_v10 = vmax.f32 %v4406_v60, 0.0 }
 0x4e6   : > { %v3960_v31 = vpop.f32.mrf.mxu1 }
 0x4e7   : > { %4476 = vst [vmem:[#allocation2 + $0x58] sm:$0xff] %v4441_v10  ;;  %v4031_v38 = vadd.f32 %v3960_v31, %v10329_v41  ;;  %v8990_v41 = vld [vmem:[%s11570_s3 + $0x98] sm:$0xff]  ;;  %v3290_v31 = vadd.f32 %v10387_v22, %v10385_v53  ;;  %5441 = vmatpush.bf16.msrb.mxu1 %v9046_v14  ;;  %v9001_v53 = vld [vmem:[%s11570_s3 + $0xf0] sm:$0xff] }
 0x4e8   : > { %4872 = vmatpush.bf16.msrb.mxu3 %v8992_v13  ;;  %v3714_v13 = vld [vmem:[#allocation4 + $0xb0] sm:$0xf]  ;;  %v4803_v10 = vld [vmem:[#allocation5 + $0x2] sm:$0xff]  ;;  %v11607_v14 = vld [vmem:[#allocation8_spill] sm:$0xff] }
 0x4e9   : > { %v4370_v32 = vadd.f32 %v10698_v58, %v4031_v38  ;;  %v10792_v48 = vpop.f32.mrf.mxu2  ;;  %3999 = vmatmul.bf16.gmra.mxu1 %v3850_v26  ;;  %v4645_v58 = vpack.c.bf16 %v10739_v62, %v10739_v62  ;;  %v4504_v26 = vld [vmem:[#allocation2 + $0x40] ss:$2 sm:$0xff]  ;;  %v3660_v6 = vadd.f32 %v11604_v54, %v3290_v31 }
 0x4ea   : > { %v9051_v54 = vld [vmem:[%s11570_s3 + $0x280] sm:$0xff] }
 0x4eb   : > { %v4407_v3 = vadd.f32 %v10637_v57, %v4370_v32  ;;  %v3801_v32 = vunpack.c.l.b16 %v3714_v13  ;;  %v8998_v13 = vld [vmem:[%s11570_s3 + $0xd8] sm:$0xff] }
 0x4ec   : > { %4873 = vmatpush.bf16.msrb.mxu3 %v8991_v59  ;;  %v4520_v59 = vld [vmem:[#allocation2 + $0x41] ss:$2 sm:$0xff] }
 0x4ed   : > { %v4442_v34 = vmax.f32 %v4407_v3, 0.0  ;;  %v4804_v3 = vpack.c.bf16 %v4803_v10, %v4803_v10  ;;  %v11606_v10 = vld [vmem:[#allocation9_spill] sm:$0xff] }
 0x4ee   : > { %v3962_v47 = vpop.f32.mrf.mxu1  ;;  %v4551_v18 = vld [vmem:[#allocation2 + $0x4c] ss:$2 sm:$0xff]  ;;  %v4583_v24 = vld [vmem:[#allocation2 + $0x4d] ss:$2 sm:$0xff]  ;;  %v3295_v31 = vadd.f32 %v11607_v14, %v11606_v10 }
 0x4ef   : > { %4477 = vst [vmem:[#allocation2 + $0x60] sm:$0xff] %v4442_v34  ;;  %v4032_v16 = vadd.f32 %v3962_v47, %v3658_v27  ;;  %4798 = vmatmul.bf16.vlgmr.msra.gmra.mxu3 %v4645_v58  ;;  %v4567_v49 = vadd.f32 %v4551_v18, %v4535_v25  ;;  %v4536_v27 = vadd.f32 %v4520_v59, %v4504_v26  ;;  %v9055_v58 = vld [vmem:[%s11570_s3 + $0x2a0] sm:$0xff]  ;;  %v8997_v26 = vld [vmem:[%s11570_s3 + $0xd0] sm:$0xff]  ;;  %v9070_v14 = vld [vmem:[%s11570_s3 + $0x318] sm:$0xff] }
 0x4f0   : > { %4874 = vmatpush.bf16.msrb.mxu3 %v8990_v41  ;;  %v9045_v41 = vld [vmem:[%s11570_s3 + $0x250] sm:$0xff]  ;;  %v10857_v47 = vpack.c.b16 %v3801_v32, %v3801_v32 }
 0x4f1   : > { %v4371_v45 = vadd.f32 %v10711_v43, %v4032_v16  ;;  %v10809_v4 = vpop.f32.mrf.mxu2  ;;  %v4599_v62 = vadd.f32 %v4583_v24, %v4567_v49  ;;  %v9057_v43 = vld [vmem:[%s11570_s3 + $0x2b0] sm:$0xff]  ;;  %5442 = vmatpush.bf16.msrb.mxu1 %v9045_v41 }
 0x4f2   : > { %5519 = vmatpush.bf16.msrb.mxu2 %v9057_v43 }
 0x4f3   : > { %v4408_v23 = vadd.f32 %v10637_v57, %v4371_v45  ;;  %v4615_v29 = vmul.f32 0.25, %v4599_v62  ;;  %v9044_v45 = vld [vmem:[%s11570_s3 + $0x248] sm:$0xff] }
 0x4f4   : > { %4875 = vmatpush.bf16.msrb.mxu3 %v8989_v55  ;;  %v9000_v55 = vld [vmem:[%s11570_s3 + $0xe8] sm:$0xff] }
 0x4f5   : > { %v4443_v46 = vmax.f32 %v4408_v23, 0.0  ;;  %4631 = vst [vmem:[#allocation5 + $0x18] sm:$0xff] %v4615_v29  ;;  %v3853_v23 = vrot.slane %v10857_v47, 2  ;;  %5443 = vmatpush.bf16.msrb.mxu1 %v9044_v45  ;;  %v9010_v47 = vld [vmem:[%s11570_s3 + $0x138] sm:$0xff]  ;;  %v9080_v45 = vld [vmem:[%s11570_s3 + $0x368] sm:$0xff] }
 0x4f6   : > { %v3965_v0 = vpop.f32.mrf.mxu1 }
 0x4f7   : > { %4478 = vst [vmem:[#allocation2 + $0x68] sm:$0xff] %v4443_v46  ;;  %v4033_v42 = vadd.f32 %v3965_v0, %v10358_v33  ;;  %v9002_v33 = vld [vmem:[%s11570_s3 + $0xf8] sm:$0xff]  ;;  %v8999_v46 = vld [vmem:[%s11570_s3 + $0xe0] sm:$0xff] }
 0x4f8   : > { %4876 = vmatpush.bf16.msrb.mxu3 %v8988_v44  ;;  %v9043_v0 = vld [vmem:[%s11570_s3 + $0x240] sm:$0xff] }
 0x4f9   : > { %v4372_v7 = vadd.f32 %v10723_v1, %v4033_v42  ;;  %v10833_v60 = vpop.f32.mrf.mxu2  ;;  %4004 = vmatmul.bf16.gmra.mxu1 %v3852_v9  ;;  %v9056_v1 = vld [vmem:[%s11570_s3 + $0x2a8] sm:$0xff]  ;;  %v9053_v9 = vld [vmem:[%s11570_s3 + $0x290] sm:$0xff] }
 0x4fa   : > { %5520 = vmatpush.bf16.msrb.mxu2 %v9056_v1  ;;  %5444 = vmatpush.bf16.msrb.mxu1 %v9043_v0 }
 0x4fb   : > { %v4409_v38 = vadd.f32 %v10637_v57, %v4372_v7 }
 0x4fc   : > { %4877 = vmatpush.bf16.msrb.mxu3 %v8987_v61  ;;  %v3854_v61 = vsel %vm2949_vm0, %v3851_v8, %v3853_v23  ;;  %v11608_v8 = vld [vmem:[#allocation11_spill] sm:$0xff] }
 0x4fd   : > { %v4444_v35 = vmax.f32 %v4409_v38, 0.0 }
 0x4fe   : > { %v3967_v22 = vpop.f32.mrf.mxu1  ;;  %v4552_v25 = vld [vmem:[#allocation2 + $0x5c] ss:$2 sm:$0xff]  ;;  %5521 = vmatpush.bf16.msrb.mxu2 %v9055_v58  ;;  %v4584_v24 = vld [vmem:[#allocation2 + $0x5d] ss:$2 sm:$0xff] }
 0x4ff   : > { %4479 = vst [vmem:[#allocation2 + $0x70] sm:$0xff] %v4444_v35  ;;  %v4034_v34 = vadd.f32 %v3967_v22, %v3660_v6  ;;  %4878 = vmatmul.bf16.vlgmr.msrb.gmra.mxu3 %v4804_v3  ;;  %v4568_v18 = vadd.f32 %v4552_v25, %v4536_v27  ;;  %v9074_v6 = vld [vmem:[%s11570_s3 + $0x338] sm:$0xff]  ;;  %v8996_v22 = vld [vmem:[%s11570_s3 + $0xc8] sm:$0xff]  ;;  %v9073_v27 = vld [vmem:[%s11570_s3 + $0x330] sm:$0xff] }
 0x500   : > { %4951 = vmatpush.bf16.msra.mxu3 %v9002_v33  ;;  %v9082_v35 = vld [vmem:[%s11570_s3 + $0x378] sm:$0xff]  ;;  %5680 = vmatpush.bf16.msra.mxu1 %v9074_v6  ;;  %v8995_v58 = vld [vmem:[%s11570_s3 + $0xc0] sm:$0xff] }
 0x501   : > { %v4373_v16 = vadd.f32 %v10736_v11, %v4034_v34  ;;  %v10860_v49 = vpop.f32.mrf.mxu2  ;;  %v4600_v62 = vadd.f32 %v4584_v24, %v4568_v18  ;;  %v9054_v11 = vld [vmem:[%s11570_s3 + $0x298] sm:$0xff]  ;;  %v11609_v18 = vld [vmem:[#allocation12_spill] sm:$0xff] }
 0x502   : > { %5522 = vmatpush.bf16.msrb.mxu2 %v9054_v11  ;;  %v9072_v24 = vld [vmem:[%s11570_s3 + $0x328] sm:$0xff] }
 0x503   : > { %v4410_v51 = vadd.f32 %v10637_v57, %v4373_v16  ;;  %v10873_v29 = vmul.f32 0.25, %v4600_v62 }
 0x504   : > { %4952 = vmatpush.bf16.msra.mxu3 %v9001_v53  ;;  %5681 = vmatpush.bf16.msra.mxu1 %v9073_v27 }
 0x505   : > { %v4445_v44 = vmax.f32 %v4410_v51, 0.0  ;;  %4632 = vst [vmem:[#allocation5 + $0x20] sm:$0xff] %v10873_v29 }
 0x506   : > { %v3970_v43 = vpop.f32.mrf.mxu1  ;;  %5523 = vmatpush.bf16.msrb.mxu2 %v9053_v9 }
 0x507   : > { %4480 = vst [vmem:[#allocation2 + $0x78] sm:$0xff] %v4445_v44  ;;  %v4035_v42 = vadd.f32 %v3970_v43, %v11605_v12  ;;  %v9009_v44 = vld [vmem:[%s11570_s3 + $0x130] sm:$0xff]  ;;  %v11611_v43 = vld [vmem:[#allocation10_spill] sm:$0xff] }
 0x508   : > { %4953 = vmatpush.bf16.msra.mxu3 %v9000_v55  ;;  %v4884_v55 = vld [vmem:[#allocation5 + $0x3] sm:$0xff]  ;;  %5682 = vmatpush.bf16.msra.mxu1 %v9072_v24 }
 0x509   : > { %v4374_v7 = vadd.f32 %v10751_v17, %v4035_v42  ;;  %v10890_v33 = vpop.f32.mrf.mxu2  ;;  %4009 = vmatmul.bf16.gmra.mxu1 %v3854_v61  ;;  %v3662_v17 = vadd.f32 %v11608_v8, %v3295_v31  ;;  %v4885_v11 = vpack.c.bf16 %v4884_v55, %v4884_v55  ;;  %v11612_v42 = vld [vmem:[#allocation15_spill] sm:$0xff]  ;;  %v9078_v31 = vld [vmem:[%s11570_s3 + $0x358] sm:$0xff]  ;;  %v11616_v55 = vld [vmem:[#allocation20_spill] sm:$0xff] }
 0x50a   : > { %5524 = vmatpush.bf16.msrb.mxu2 %v9052_v20  ;;  %v9007_v8 = vld [vmem:[%s11570_s3 + $0x120] sm:$0xff] }
 0x50b   : > { %v4411_v38 = vadd.f32 %v10637_v57, %v4374_v7 }
 0x50c   : > { %4954 = vmatpush.bf16.msra.mxu3 %v8999_v46  ;;  %v11610_v46 = vld [vmem:[#allocation14_spill] sm:$0xff] }
 0x50d   : > { %v4446_v1 = vmax.f32 %v4411_v38, 0.0  ;;  %v3300_v0 = vadd.f32 %v11611_v43, %v11610_v46 }
 0x50e   : > { %v3972_v59 = vpop.f32.mrf.mxu1  ;;  %5525 = vmatpush.bf16.msrb.mxu2 %v9051_v54  ;;  %v11613_v54 = vld [vmem:[#allocation17_spill] sm:$0xff] }
 0x50f   : > { %4481 = vst [vmem:[#allocation2 + $0x80] sm:$0xff] %v4446_v1  ;;  %v4036_v32 = vadd.f32 %v3972_v59, %v3662_v17  ;;  %v3664_v9 = vadd.f32 %v11612_v42, %v3300_v0  ;;  %v9069_v1 = vld [vmem:[%s11570_s3 + $0x310] sm:$0xff] }
 0x510   : > { %4955 = vmatpush.bf16.msra.mxu3 %v8998_v13  ;;  %v9008_v13 = vld [vmem:[%s11570_s3 + $0x128] sm:$0xff] }
 0x511   : > { %v4375_v3 = vadd.f32 %v10758_v28, %v4036_v32  ;;  %v10915_v53 = vpop.f32.mrf.mxu2  ;;  %v9081_v28 = vld [vmem:[%s11570_s3 + $0x370] sm:$0xff]  ;;  %v9006_v32 = vld [vmem:[%s11570_s3 + $0x118] sm:$0xff] }
 0x512   : > { %5761 = vmatpush.bf16.msra.mxu2 %v9082_v35  ;;  %v5371_v35 = vpack.c.bf16 %v10873_v29, %v10873_v29  ;;  %v4507_v29 = vld [vmem:[#allocation2 + $0x70] ss:$2 sm:$0xff] }
 0x513   : > { %v4412_v41 = vadd.f32 %v10637_v57, %v4375_v3  ;;  %v9068_v3 = vld [vmem:[%s11570_s3 + $0x308] sm:$0xff] }
 0x514   : > { %4956 = vmatpush.bf16.msra.mxu3 %v8997_v26  ;;  %v9077_v26 = vld [vmem:[%s11570_s3 + $0x350] sm:$0xff] }
 0x515   : > { %v4447_v34 = vmax.f32 %v4412_v41, 0.0 }
 0x516   : > { %v3975_v25 = vpop.f32.mrf.mxu1  ;;  %5762 = vmatpush.bf16.msra.mxu2 %v9081_v28  ;;  %v9005_v28 = vld [vmem:[%s11570_s3 + $0x110] sm:$0xff] }
 0x517   : > { %4482 = vst [vmem:[#allocation2 + $0x88] sm:$0xff] %v4447_v34  ;;  %v4037_v16 = vadd.f32 %v3975_v25, %v11609_v18  ;;  %v4523_v34 = vld [vmem:[#allocation2 + $0x71] ss:$2 sm:$0xff] }
 0x518   : > { %4957 = vmatpush.bf16.msra.mxu3 %v8996_v22  ;;  %v9076_v22 = vld [vmem:[%s11570_s3 + $0x348] sm:$0xff]  ;;  %v11615_v25 = vld [vmem:[#allocation13_spill] sm:$0xff] }
 0x519   : > { %v4376_v62 = vadd.f32 %v10764_v36, %v4037_v16  ;;  %v10941_v51 = vpop.f32.mrf.mxu2  ;;  %4014 = vmatmul.bf16.gmra.mxu1 %v3853_v23  ;;  %v9071_v36 = vld [vmem:[%s11570_s3 + $0x320] sm:$0xff] }
 0x51a   : > { %5763 = vmatpush.bf16.msra.mxu2 %v9080_v45  ;;  %v9079_v23 = vld [vmem:[%s11570_s3 + $0x360] sm:$0xff]  ;;  %5683 = vmatpush.bf16.msra.mxu1 %v9071_v36 }
 0x51b   : > { %v4413_v12 = vadd.f32 %v10637_v57, %v4376_v62  ;;  %v9075_v16 = vld [vmem:[%s11570_s3 + $0x340] sm:$0xff]  ;;  %v4539_v62 = vadd.f32 %v4523_v34, %v4507_v29 }
 0x51c   : > { %4958 = vmatpush.bf16.msra.mxu3 %v8995_v58  ;;  %v11614_v58 = vld [vmem:[#allocation19_spill] sm:$0xff] }
 0x51d   : > { %v4448_v61 = vmax.f32 %v4413_v12, 0.0 }
 0x51e   : > { %v3977_v7 = vpop.f32.mrf.mxu1  ;;  %5764 = vmatpush.bf16.msra.mxu2 %v9079_v23  ;;  %5684 = vmatpush.bf16.msra.mxu1 %v9070_v14  ;;  %v9106_v14 = vld [vmem:[%s11570_s3 + $0x438] sm:$0xff] }
 0x51f   : > { %4959 = vmatmul.bf16.vlgmr.msra.gmra.mxu3 %v4885_v11  ;;  %4483 = vst [vmem:[#allocation2 + $0x90] sm:$0xff] %v4448_v61  ;;  %v4038_v10 = vadd.f32 %v3977_v7, %v3664_v9  ;;  %v9098_v9 = vld [vmem:[%s11570_s3 + $0x3f8] sm:$0xff]  ;;  %v9003_v61 = vld [vmem:[%s11570_s3 + $0x100] sm:$0xff] }
 0x520   : > { %5032 = vmatpush.bf16.msrb.mxu3 %v9010_v47  ;;  %v3305_v47 = vadd.f32 %v11615_v25, %v11614_v58  ;;  %v9016_v58 = vld [vmem:[%s11570_s3 + $0x168] sm:$0xff]  ;;  %v11620_v25 = vld [vmem:[#allocation25_spill] sm:$0xff] }
 0x521   : > { %v4377_v38 = vadd.f32 %v10780_v50, %v4038_v10  ;;  %v10966_v20 = vpop.f32.mrf.mxu2 }
 0x522   : > { %5765 = vmatpush.bf16.msra.mxu2 %v9078_v31  ;;  %5685 = vmatpush.bf16.msra.mxu1 %v9069_v1  ;;  %v3666_v24 = vadd.f32 %v11616_v55, %v3305_v47  ;;  %v11617_v1 = vld [vmem:[#allocation21_spill] sm:$0xff] }
 0x523   : > { %v4414_v17 = vadd.f32 %v10637_v57, %v4377_v38 }
 0x524   : > { %5033 = vmatpush.bf16.msrb.mxu3 %v9009_v44  ;;  %v9004_v44 = vld [vmem:[%s11570_s3 + $0x108] sm:$0xff] }
 0x525   : > { %v4449_v50 = vmax.f32 %v4414_v17, 0.0 }
 0x526   : > { %v3980_v59 = vpop.f32.mrf.mxu1  ;;  %5766 = vmatpush.bf16.msra.mxu2 %v9077_v26  ;;  %5686 = vmatpush.bf16.msra.mxu1 %v9068_v3  ;;  %v4508_v3 = vld [vmem:[#allocation2 + $0x80] ss:$2 sm:$0xff] }
 0x527   : > { %4484 = vst [vmem:[#allocation2 + $0x98] sm:$0xff] %v4449_v50  ;;  %v4039_v6 = vadd.f32 %v3980_v59, %v11613_v54  ;;  %v9017_v59 = vld [vmem:[%s11570_s3 + $0x170] sm:$0xff] }
 0x528   : > { %5034 = vmatpush.bf16.msrb.mxu3 %v9008_v13  ;;  %v9018_v13 = vld [vmem:[%s11570_s3 + $0x178] sm:$0xff] }
 0x529   : > { %v4378_v41 = vadd.f32 %v10792_v48, %v4039_v6  ;;  %v10991_v27 = vpop.f32.mrf.mxu2  ;;  %5445 = vmatmul.bf16.vlgmr.msrb.gmra.mxu1 %v5371_v35  ;;  %v9067_v48 = vld [vmem:[%s11570_s3 + $0x300] sm:$0xff]  ;;  %v9096_v35 = vld [vmem:[%s11570_s3 + $0x3e8] sm:$0xff] }
 0x52a   : > { %5767 = vmatpush.bf16.msra.mxu2 %v9076_v22  ;;  %5687 = vmatpush.bf16.msra.mxu1 %v9067_v48  ;;  %v4524_v22 = vld [vmem:[#allocation2 + $0x81] ss:$2 sm:$0xff] }
 0x52b   : > { %v4415_v18 = vadd.f32 %v10637_v57, %v4378_v41  ;;  %v11618_v41 = vld [vmem:[#allocation24_spill] sm:$0xff]  ;;  %v4540_v48 = vadd.f32 %v4524_v22, %v4508_v3 }
 0x52c   : > { %5035 = vmatpush.bf16.msrb.mxu3 %v9007_v8  ;;  %v9097_v8 = vld [vmem:[%s11570_s3 + $0x3f0] sm:$0xff] }
 0x52d   : > { %v4450_v45 = vmax.f32 %v4415_v18, 0.0 }
 0x52e   : > { %v3982_v11 = vpop.f32.mrf.mxu1  ;;  %v4555_v46 = vld [vmem:[#allocation2 + $0x8c] ss:$2 sm:$0xff]  ;;  %5768 = vmatpush.bf16.msra.mxu2 %v9075_v16  ;;  %v4587_v12 = vld [vmem:[#allocation2 + $0x8d] ss:$2 sm:$0xff]  ;;  %5923 = vmatpush.bf16.msrb.mxu1 %v9098_v9  ;;  %v9095_v16 = vld [vmem:[%s11570_s3 + $0x3e0] sm:$0xff] }
 0x52f   : > { %4485 = vst [vmem:[#allocation2 + $0xa0] sm:$0xff] %v4450_v45  ;;  %v4040_v43 = vadd.f32 %v3982_v11, %v3666_v24  ;;  %v4571_v0 = vadd.f32 %v4555_v46, %v4539_v62  ;;  %v9015_v62 = vld [vmem:[%s11570_s3 + $0x160] sm:$0xff]  ;;  %v9014_v9 = vld [vmem:[%s11570_s3 + $0x158] sm:$0xff] }
 0x530   : > { %5036 = vmatpush.bf16.msrb.mxu3 %v9006_v32  ;;  %v9105_v32 = vld [vmem:[%s11570_s3 + $0x430] sm:$0xff]  ;;  %v9103_v46 = vld [vmem:[%s11570_s3 + $0x420] sm:$0xff] }
 0x531   : > { %v4379_v36 = vadd.f32 %v10809_v4, %v4040_v43  ;;  %v11010_v23 = vpop.f32.mrf.mxu2  ;;  %v4603_v42 = vadd.f32 %v4587_v12, %v4571_v0  ;;  %v4965_v4 = vld [vmem:[#allocation5 + $0x4] sm:$0xff] }
 0x532   : > { %v4966_v50 = vpack.c.bf16 %v4965_v4, %v4965_v4  ;;  %5924 = vmatpush.bf16.msrb.mxu1 %v9097_v8 }
 0x533   : > { %v4416_v7 = vadd.f32 %v10637_v57, %v4379_v36  ;;  %v4619_v10 = vmul.f32 0.25, %v4603_v42  ;;  %v9094_v36 = vld [vmem:[%s11570_s3 + $0x3d8] sm:$0xff] }
 0x534   : > { %5037 = vmatpush.bf16.msrb.mxu3 %v9005_v28  ;;  %v11619_v28 = vld [vmem:[#allocation16_spill] sm:$0xff] }
 0x535   : > { %v4451_v31 = vmax.f32 %v4416_v7, 0.0  ;;  %4635 = vst [vmem:[#allocation5 + $0x38] sm:$0xff] %v4619_v10  ;;  %v5452_v38 = vpack.c.bf16 %v4619_v10, %v4619_v10  ;;  %v3310_v29 = vadd.f32 %v11619_v28, %v11618_v41 }
 0x536   : > { %v3985_v17 = vpop.f32.mrf.mxu1  ;;  %5925 = vmatpush.bf16.msrb.mxu1 %v9096_v35 }
 0x537   : > { %4486 = vst [vmem:[#allocation2 + $0xa8] sm:$0xff] %v4451_v31  ;;  %v4041_v26 = vadd.f32 %v3985_v17, %v11617_v1  ;;  %5526 = vmatmul.bf16.vlgmr.msrb.gmra.mxu2 %v5452_v38  ;;  %v3668_v47 = vadd.f32 %v11620_v25, %v3310_v29  ;;  %v9101_v31 = vld [vmem:[%s11570_s3 + $0x410] sm:$0xff]  ;;  %v9092_v17 = vld [vmem:[%s11570_s3 + $0x3c8] sm:$0xff]  ;;  %v9122_v25 = vld [vmem:[%s11570_s3 + $0x4b8] sm:$0xff] }
 0x538   : > { %5038 = vmatpush.bf16.msrb.mxu3 %v9004_v44  ;;  %6004 = vmatpush.bf16.msrb.mxu2 %v9106_v14  ;;  %v9013_v14 = vld [vmem:[%s11570_s3 + $0x150] sm:$0xff] }
 0x539   : > { %v4380_v54 = vadd.f32 %v10833_v60, %v4041_v26  ;;  %v11036_v6 = vpop.f32.mrf.mxu2  ;;  %v9104_v60 = vld [vmem:[%s11570_s3 + $0x428] sm:$0xff]  ;;  %v11623_v26 = vld [vmem:[#allocation18_spill] sm:$0xff] }
 0x53a   : > { %5926 = vmatpush.bf16.msrb.mxu1 %v9095_v16  ;;  %v11622_v1 = vld [vmem:[#allocation28_spill] sm:$0xff] }
 0x53b   : > { %v4417_v34 = vadd.f32 %v10637_v57, %v4380_v54  ;;  %v11624_v54 = vld [vmem:[#allocation29_spill] sm:$0xff] }
 0x53c   : > { %5039 = vmatpush.bf16.msrb.mxu3 %v9003_v61  ;;  %6005 = vmatpush.bf16.msrb.mxu2 %v9105_v32 }
 0x53d   : > { %v4452_v18 = vmax.f32 %v4417_v34, 0.0  ;;  %v9100_v34 = vld [vmem:[%s11570_s3 + $0x408] sm:$0xff] }
 0x53e   : > { %v3987_v55 = vpop.f32.mrf.mxu1  ;;  %v4556_v24 = vld [vmem:[#allocation2 + $0x9c] ss:$2 sm:$0xff]  ;;  %v4588_v44 = vld [vmem:[#allocation2 + $0x9d] ss:$2 sm:$0xff]  ;;  %5927 = vmatpush.bf16.msrb.mxu1 %v9094_v36  ;;  %v9129_v36 = vld [vmem:[%s11570_s3 + $0x4f0] sm:$0xff] }
 0x53f   : > { %5040 = vmatmul.bf16.vlgmr.msrb.gmra.mxu3 %v4966_v50  ;;  %4487 = vst [vmem:[#allocation2 + $0xb0] sm:$0xff] %v4452_v18  ;;  %v4042_v45 = vadd.f32 %v3987_v55, %v3668_v47  ;;  %v4572_v11 = vadd.f32 %v4556_v24, %v4540_v48  ;;  %v3315_v50 = vadd.f32 %v11623_v26, %v11622_v1  ;;  %v9011_v18 = vld [vmem:[%s11570_s3 + $0x140] sm:$0xff]  ;;  %v9026_v48 = vld [vmem:[%s11570_s3 + $0x1b8] sm:$0xff] }
 0x540   : > { %5113 = vmatpush.bf16.msra.mxu3 %v9018_v13  ;;  %6006 = vmatpush.bf16.msrb.mxu2 %v9104_v60  ;;  %v9093_v13 = vld [vmem:[%s11570_s3 + $0x3d0] sm:$0xff]  ;;  %v5046_v24 = vld [vmem:[#allocation5 + $0x1c] sm:$0xff] }
 0x541   : > { %v4381_v43 = vadd.f32 %v10860_v49, %v4042_v45  ;;  %v11061_v0 = vpop.f32.mrf.mxu2  ;;  %v4604_v12 = vadd.f32 %v4588_v44, %v4572_v11  ;;  %v9102_v49 = vld [vmem:[%s11570_s3 + $0x418] sm:$0xff]  ;;  %v3670_v35 = vadd.f32 %v11624_v54, %v3315_v50  ;;  %v9099_v45 = vld [vmem:[%s11570_s3 + $0x400] sm:$0xff]  ;;  %v9121_v11 = vld [vmem:[%s11570_s3 + $0x4b0] sm:$0xff] }
 0x542   : > { %5928 = vmatpush.bf16.msrb.mxu1 %v9093_v13 }
 0x543   : > { %v4418_v42 = vadd.f32 %v10637_v57, %v4381_v43  ;;  %v4620_v61 = vmul.f32 0.25, %v4604_v12  ;;  %v11621_v57 = vld [vmem:[#allocation26_spill] sm:$0xff] }
 0x544   : > { %5114 = vmatpush.bf16.msra.mxu3 %v9017_v59  ;;  %6007 = vmatpush.bf16.msrb.mxu2 %v9103_v46  ;;  %v11094_v59 = vld [vmem:[%s11573_s6 + $0x1] ss:$0 sm:$0xff]  ;;  %v9025_v46 = vld [vmem:[%s11570_s3 + $0x1b0] sm:$0xff] }
 0x545   : > { %v4453_v7 = vmax.f32 %v4418_v42, 0.0  ;;  %4636 = vst [vmem:[#allocation5 + $0x40] sm:$0xff] %v4620_v61  ;;  %v9120_v42 = vld [vmem:[%s11570_s3 + $0x4a8] sm:$0xff] }
 0x546   : > { %v3990_v10 = vpop.f32.mrf.mxu1  ;;  %5929 = vmatpush.bf16.msrb.mxu1 %v9092_v17  ;;  %v4526_v17 = vld [vmem:[#allocation2 + $0xa1] ss:$2 sm:$0xff] }
 0x547   : > { %4488 = vst [vmem:[#allocation2 + $0xb8] sm:$0xff] %v4453_v7  ;;  %v4043_v4 = vadd.f32 %v3990_v10, %v11621_v57  ;;  %v9128_v10 = vld [vmem:[%s11570_s3 + $0x4e8] sm:$0xff]  ;;  %v9119_v57 = vld [vmem:[%s11570_s3 + $0x4a0] sm:$0xff] }
 0x548   : > { %5115 = vmatpush.bf16.msra.mxu3 %v9016_v58  ;;  %6008 = vmatpush.bf16.msrb.mxu2 %v9102_v49  ;;  %v9091_v58 = vld [vmem:[%s11570_s3 + $0x3c0] sm:$0xff]  ;;  %v9024_v49 = vld [vmem:[%s11570_s3 + $0x1a8] sm:$0xff] }
 0x549   : > { %v4382_v38 = vadd.f32 %v10890_v33, %v4043_v4  ;;  %v11084_v8 = vpop.f32.mrf.mxu2  ;;  %v9012_v33 = vld [vmem:[%s11570_s3 + $0x148] sm:$0xff]  ;;  %v11626_v4 = vld [vmem:[#allocation22_spill] sm:$0xff] }
 0x54a   : > { %5930 = vmatpush.bf16.msrb.mxu1 %v9091_v58  ;;  %v9126_v58 = vld [vmem:[%s11570_s3 + $0x4d8] sm:$0xff] }
 0x54b   : > { %v4419_v32 = vadd.f32 %v11094_v59, %v4382_v38  ;;  %v4510_v38 = vld [vmem:[#allocation2 + $0xa0] ss:$2 sm:$0xff] }
 0x54c   : > { %5116 = vmatpush.bf16.msra.mxu3 %v9015_v62  ;;  %v5613_v3 = vld [vmem:[#allocation5 + $0x3a] sm:$0xff]  ;;  %6009 = vmatpush.bf16.msrb.mxu2 %v9101_v31 }
 0x54d   : > { %v5694_v22 = vld [vmem:[#allocation5 + $0x3b] sm:$0xff]  ;;  %v4454_v41 = vmax.f32 %v4419_v32, 0.0  ;;  %v5614_v28 = vpack.c.bf16 %v5613_v3, %v5613_v3  ;;  %v9127_v32 = vld [vmem:[%s11570_s3 + $0x4e0] sm:$0xff] }
 0x54e   : > { %v5695_v29 = vpack.c.bf16 %v5694_v22, %v5694_v22  ;;  %v3992_v60 = vpop.f32.mrf.mxu1  ;;  %v9130_v62 = vld [vmem:[%s11570_s3 + $0x4f8] sm:$0xff] }
 0x54f   : > { %4489 = vst [vmem:[#allocation2 + $0xc0] sm:$0xff] %v4454_v41  ;;  %v4044_v47 = vadd.f32 %v3992_v60, %v3670_v35  ;;  %5688 = vmatmul.bf16.vlgmr.msra.gmra.mxu1 %v5614_v28  ;;  %v9117_v60 = vld [vmem:[%s11570_s3 + $0x490] sm:$0xff] }
 0x550   : > { %5117 = vmatpush.bf16.msra.mxu3 %v9014_v9  ;;  %5769 = vmatmul.bf16.vlgmr.msra.gmra.mxu2 %v5695_v29  ;;  %v11625_v9 = vld [vmem:[#allocation30_spill] sm:$0xff] }
 0x551   : > { %v4383_v16 = vadd.f32 %v10915_v53, %v4044_v47  ;;  %v11117_v55 = vpop.f32.mrf.mxu2  ;;  %6010 = vmatpush.bf16.msrb.mxu2 %v9100_v34  ;;  %6166 = vmatpush.bf16.msra.mxu1 %v9122_v25  ;;  %v5047_v53 = vpack.c.bf16 %v5046_v24, %v5046_v24  ;;  %v9116_v24 = vld [vmem:[%s11570_s3 + $0x488] sm:$0xff] }
 0x553   : > { %v4420_v44 = vadd.f32 %v11094_v59, %v4383_v16  ;;  %v9125_v16 = vld [vmem:[%s11570_s3 + $0x4d0] sm:$0xff] }
 0x554   : > { %5118 = vmatpush.bf16.msra.mxu3 %v9013_v14  ;;  %v3320_v14 = vadd.f32 %v11626_v4, %v10583_v15  ;;  %v9118_v15 = vld [vmem:[%s11570_s3 + $0x498] sm:$0xff] }
 0x555   : > { %v4455_v43 = vmax.f32 %v4420_v44, 0.0  ;;  %6011 = vmatpush.bf16.msrb.mxu2 %v9099_v45  ;;  %6167 = vmatpush.bf16.msra.mxu1 %v9121_v11  ;;  %v4511_v44 = vld [vmem:[#allocation2 + $0xb0] ss:$2 sm:$0xff] }
 0x556   : > { %v3995_v12 = vpop.f32.mrf.mxu1  ;;  %v3672_v1 = vadd.f32 %v10597_v2, %v3320_v14  ;;  %v9022_v2 = vld [vmem:[%s11570_s3 + $0x198] sm:$0xff] }
 0x557   : > { %4490 = vst [vmem:[#allocation2 + $0xc8] sm:$0xff] %v4455_v43  ;;  %v4045_v61 = vadd.f32 %v3995_v12, %v11625_v9  ;;  %v9124_v43 = vld [vmem:[%s11570_s3 + $0x4c8] sm:$0xff] }
 0x558   : > { %5119 = vmatpush.bf16.msra.mxu3 %v9012_v33  ;;  %v4542_v33 = vadd.f32 %v4526_v17, %v4510_v38  ;;  %v11627_v12 = vld [vmem:[#allocation23_spill] sm:$0xff] }
 0x559   : > { %6247 = vmatpush.bf16.msra.mxu2 %v9130_v62  ;;  %v4384_v7 = vadd.f32 %v10941_v51, %v4045_v61  ;;  %v11143_v13 = vpop.f32.mrf.mxu2  ;;  %6168 = vmatpush.bf16.msra.mxu1 %v9120_v42  ;;  %v9023_v51 = vld [vmem:[%s11570_s3 + $0x1a0] sm:$0xff]  ;;  %v9020_v62 = vld [vmem:[%s11570_s3 + $0x188] sm:$0xff] }
 0x55b   : > { %v4421_v31 = vadd.f32 %v11094_v59, %v4384_v7 }
 0x55c   : > { %5120 = vmatpush.bf16.msra.mxu3 %v9011_v18 }
 0x55d   : > { %6248 = vmatpush.bf16.msra.mxu2 %v9129_v36  ;;  %v4456_v26 = vmax.f32 %v4421_v31, 0.0  ;;  %6169 = vmatpush.bf16.msra.mxu1 %v9119_v57  ;;  %v3325_v36 = vadd.f32 %v11627_v12, %v10590_v37  ;;  %v5127_v57 = vld [vmem:[#allocation5 + $0x1d] sm:$0xff] }
 0x55e   : > { %v3997_v50 = vpop.f32.mrf.mxu1  ;;  %v4558_v35 = vld [vmem:[#allocation2 + $0xbc] ss:$2 sm:$0xff]  ;;  %v4590_v28 = vld [vmem:[#allocation2 + $0xbd] ss:$2 sm:$0xff]  ;;  %v5128_v17 = vpack.c.bf16 %v5127_v57, %v5127_v57  ;;  %v3678_v57 = vadd.f32 %v10673_v19, %v10613_v40  ;;  %v9041_v40 = vld [vmem:[%s11570_s3 + $0x230] sm:$0xff] }
 0x55f   : > { %5121 = vmatmul.bf16.vlgmr.msra.gmra.mxu3 %v5047_v53  ;;  %4491 = vst [vmem:[#allocation2 + $0xd0] sm:$0xff] %v4456_v26  ;;  %v4046_v54 = vadd.f32 %v3997_v50, %v3672_v1  ;;  %v4574_v3 = vadd.f32 %v4558_v35, %v4542_v33  ;;  %v3674_v9 = vadd.f32 %v10615_v30, %v3325_v36  ;;  %v9123_v37 = vld [vmem:[%s11570_s3 + $0x4c0] sm:$0xff] }
 0x560   : > { %5194 = vmatpush.bf16.msrb.mxu3 %v9026_v48  ;;  %v9143_v36 = vld [vmem:[%s11570_s3 + $0x560] sm:$0xff] }
 0x561   : > { %6249 = vmatpush.bf16.msra.mxu2 %v9128_v10  ;;  %v4385_v22 = vadd.f32 %v10966_v20, %v4046_v54  ;;  %v4356_v41 = vpop.f32.mrf.mxu2  ;;  %6170 = vmatpush.bf16.msra.mxu1 %v9118_v15  ;;  %v4606_v34 = vadd.f32 %v4590_v28, %v4574_v3  ;;  %v9021_v20 = vld [vmem:[%s11570_s3 + $0x190] sm:$0xff]  ;;  %v9031_v3 = vld [vmem:[%s11570_s3 + $0x1e0] sm:$0xff] }
 0x562   : > { %v4738_v29 = vpop.f32.mrf.mxu3 }
 0x563   : > { %v4422_v25 = vadd.f32 %v11094_v59, %v4385_v22  ;;  %v4622_v47 = vmul.f32 0.25, %v4606_v34  ;;  %v11628_v22 = vld [vmem:[#allocation27_spill] sm:$0xff]  ;;  %v9146_v34 = vld [vmem:[%s11570_s3 + $0x578] sm:$0xff] }
 0x564   : > { %5195 = vmatpush.bf16.msrb.mxu3 %v9025_v46  ;;  %v4527_v46 = vld [vmem:[#allocation2 + $0xb1] ss:$2 sm:$0xff]  ;;  %v3330_v41 = vadd.f32 %v11628_v22, %v10605_v21  ;;  %v9147_v22 = vld [vmem:[%s11570_s3 + $0x580] sm:$0xff] }
 0x565   : > { %6250 = vmatpush.bf16.msra.mxu2 %v9127_v32  ;;  %v4457_v18 = vmax.f32 %v4422_v25, 0.0  ;;  %6171 = vmatpush.bf16.msra.mxu1 %v9117_v60  ;;  %4638 = vst [vmem:[#allocation5 + $0x50] sm:$0xff] %v4622_v47  ;;  %v4543_v7 = vadd.f32 %v4527_v46, %v4511_v44  ;;  %v9030_v21 = vld [vmem:[%s11570_s3 + $0x1d8] sm:$0xff] }
 0x566   : > { %v4000_v48 = vpop.f32.mrf.mxu1 }
 0x567   : > { %4492 = vst [vmem:[#allocation2 + $0xd8] sm:$0xff] %v4457_v18  ;;  %v4047_v45 = vadd.f32 %v4000_v48, %v10603_v5  ;;  %v9115_v5 = vld [vmem:[%s11570_s3 + $0x480] sm:$0xff] }
 0x568   : > { %5196 = vmatpush.bf16.msrb.mxu3 %v9024_v49  ;;  %v9034_v49 = vld [vmem:[%s11570_s3 + $0x1f8] sm:$0xff] }
 0x569   : > { %6251 = vmatpush.bf16.msra.mxu2 %v9126_v58  ;;  %v4386_v11 = vadd.f32 %v10991_v27, %v4047_v45  ;;  %6172 = vmatpush.bf16.msra.mxu1 %v9116_v24  ;;  %v9019_v27 = vld [vmem:[%s11570_s3 + $0x180] sm:$0xff]  ;;  %v3676_v58 = vadd.f32 %v10646_v63, %v3330_v41  ;;  %v9145_v63 = vld [vmem:[%s11570_s3 + $0x570] sm:$0xff] }
 0x56a   : > { %v4740_v53 = vpop.f32.mrf.mxu3  ;;  %v9029_v45 = vld [vmem:[%s11570_s3 + $0x1d0] sm:$0xff] }
 0x56b   : > { %v4423_v42 = vadd.f32 %v11094_v59, %v4386_v11  ;;  %v9144_v53 = vld [vmem:[%s11570_s3 + $0x568] sm:$0xff] }
 0x56c   : > { %5197 = vmatpush.bf16.msrb.mxu3 %v9023_v51  ;;  %v9033_v51 = vld [vmem:[%s11570_s3 + $0x1f0] sm:$0xff] }
 0x56d   : > { %6252 = vmatpush.bf16.msra.mxu2 %v9125_v16  ;;  %v4458_v61 = vmax.f32 %v4423_v42, 0.0  ;;  %6173 = vmatpush.bf16.msra.mxu1 %v9115_v5  ;;  %v9153_v16 = vld [vmem:[%s11570_s3 + $0x5b0] sm:$0xff]  ;;  %v9151_v42 = vld [vmem:[%s11570_s3 + $0x5a0] sm:$0xff] }
 0x56e   : > { %v4002_v10 = vpop.f32.mrf.mxu1  ;;  %v4559_v4 = vld [vmem:[#allocation2 + $0xcc] ss:$2 sm:$0xff]  ;;  %v4591_v30 = vld [vmem:[#allocation2 + $0xcd] ss:$2 sm:$0xff] }
 0x56f   : > { %4493 = vst [vmem:[#allocation2 + $0xe0] sm:$0xff] %v4458_v61  ;;  %v4048_v14 = vadd.f32 %v4002_v10, %v3674_v9  ;;  %v4575_v31 = vadd.f32 %v4559_v4, %v4543_v7  ;;  %v9027_v9 = vld [vmem:[%s11570_s3 + $0x1c0] sm:$0xff] }
 0x570   : > { %5198 = vmatpush.bf16.msrb.mxu3 %v9022_v2  ;;  %v5208_v10 = vld [vmem:[#allocation5 + $0x1e] sm:$0xff] }
 0x571   : > { %6253 = vmatpush.bf16.msra.mxu2 %v9124_v43  ;;  %v4387_v38 = vadd.f32 %v11010_v23, %v4048_v14  ;;  %v4607_v1 = vadd.f32 %v4591_v30, %v4575_v31  ;;  %v9032_v23 = vld [vmem:[%s11570_s3 + $0x1e8] sm:$0xff]  ;;  %v9150_v31 = vld [vmem:[%s11570_s3 + $0x598] sm:$0xff] }
 0x572   : > { %v4799_v26 = vpop.f32.mrf.mxu3  ;;  %v9028_v43 = vld [vmem:[%s11570_s3 + $0x1c8] sm:$0xff] }
 0x573   : > { %v4424_v50 = vadd.f32 %v11094_v59, %v4387_v38  ;;  %v4800_v32 = vadd.f32 %v4799_v26, %v4738_v29  ;;  %v11213_v15 = vmul.f32 0.25, %v4607_v1  ;;  %v5209_v38 = vpack.c.bf16 %v5208_v10, %v5208_v10  ;;  %v9149_v1 = vld [vmem:[%s11570_s3 + $0x590] sm:$0xff]  ;;  %v9040_v26 = vld [vmem:[%s11570_s3 + $0x228] sm:$0xff] }
 0x574   : > { %5199 = vmatpush.bf16.msrb.mxu3 %v9021_v20  ;;  %v9164_v10 = vld [vmem:[%s11570_s3 + $0x608] sm:$0xff] }
 0x575   : > { %6254 = vmatpush.bf16.msra.mxu2 %v9123_v37  ;;  %v4459_v33 = vmax.f32 %v4424_v50, 0.0  ;;  %4639 = vst [vmem:[#allocation5 + $0x58] sm:$0xff] %v11213_v15  ;;  %v6181_v14 = vpack.c.bf16 %v11213_v15, %v11213_v15 }
 0x576   : > { %v4005_v54 = vpop.f32.mrf.mxu1 }
 0x577   : > { %4494 = vst [vmem:[#allocation2 + $0xe8] sm:$0xff] %v4459_v33  ;;  %v4049_v35 = vadd.f32 %v4005_v54, %v10629_v56 }
 0x578   : > { %5200 = vmatpush.bf16.msrb.mxu3 %v9020_v62 }
 0x579   : > { %v4388_v2 = vadd.f32 %v11036_v6, %v4049_v35  ;;  %v9154_v6 = vld [vmem:[%s11570_s3 + $0x5b8] sm:$0xff]  ;;  %v9139_v35 = vld [vmem:[%s11570_s3 + $0x540] sm:$0xff] }
 0x57a   : > { %v4801_v28 = vpop.f32.mrf.mxu3 }
 0x57b   : > { %v4425_v29 = vadd.f32 %v11094_v59, %v4388_v2 }
 0x57c   : > { %5201 = vmatpush.bf16.msrb.mxu3 %v9019_v27  ;;  %v5856_v56 = vld [vmem:[#allocation5 + $0x54] sm:$0xff] }
 0x57d   : > { %v5937_v60 = vld [vmem:[#allocation5 + $0x55] sm:$0xff]  ;;  %v4460_v25 = vmax.f32 %v4425_v29, 0.0  ;;  %v5857_v20 = vpack.c.bf16 %v5856_v56, %v5856_v56 }
 0x57e   : > { %v5938_v47 = vpack.c.bf16 %v5937_v60, %v5937_v60  ;;  %v4007_v18 = vpop.f32.mrf.mxu1  ;;  %v4514_v41 = vld [vmem:[#allocation2 + $0xe0] ss:$2 sm:$0xff]  ;;  %v4530_v28 = vld [vmem:[#allocation2 + $0xe1] ss:$2 sm:$0xff]  ;;  %v9037_v60 = vld [vmem:[%s11570_s3 + $0x210] sm:$0xff] }
 0x57f   : > { %5202 = vmatmul.bf16.vlgmr.msrb.gmra.mxu3 %v5128_v17  ;;  %4495 = vst [vmem:[#allocation2 + $0xf0] sm:$0xff] %v4460_v25  ;;  %v4050_v48 = vadd.f32 %v4007_v18, %v3676_v58  ;;  %5931 = vmatmul.bf16.vlgmr.msrb.gmra.mxu1 %v5857_v20  ;;  %v9141_v17 = vld [vmem:[%s11570_s3 + $0x550] sm:$0xff]  ;;  %v4546_v58 = vadd.f32 %v4530_v28, %v4514_v41  ;;  %v9168_v18 = vld [vmem:[%s11570_s3 + $0x628] sm:$0xff]  ;;  %v9086_v41 = vld [vmem:[%s11570_s3 + $0x398] sm:$0xff] }
 0x580   : > { %5275 = vmatpush.bf16.msra.mxu3 %v9034_v49  ;;  %6012 = vmatmul.bf16.vlgmr.msrb.gmra.mxu2 %v5938_v47  ;;  %v6099_v49 = vld [vmem:[#allocation5 + $0x57] sm:$0xff] }
 0x581   : > { %6409 = vmatpush.bf16.msrb.mxu1 %v9146_v34  ;;  %6490 = vmatpush.bf16.msrb.mxu2 %v9154_v6  ;;  %v4389_v24 = vadd.f32 %v11061_v0, %v4050_v48  ;;  %v9152_v0 = vld [vmem:[%s11570_s3 + $0x5a8] sm:$0xff]  ;;  %v6100_v37 = vpack.c.bf16 %v6099_v49, %v6099_v49  ;;  %v9169_v34 = vld [vmem:[%s11570_s3 + $0x630] sm:$0xff] }
 0x582   : > { %v4879_v62 = vpop.f32.mrf.mxu3  ;;  %v9085_v28 = vld [vmem:[%s11570_s3 + $0x390] sm:$0xff] }
 0x583   : > { %v4426_v11 = vadd.f32 %v11094_v59, %v4389_v24  ;;  %v11248_v44 = vadd.f32 %v4879_v62, %v4800_v32  ;;  %v9140_v32 = vld [vmem:[%s11570_s3 + $0x548] sm:$0xff] }
 0x584   : > { %5276 = vmatpush.bf16.msra.mxu3 %v9033_v51 }
 0x585   : > { %6410 = vmatpush.bf16.msrb.mxu1 %v9145_v63  ;;  %6491 = vmatpush.bf16.msrb.mxu2 %v9153_v16  ;;  %v4461_v46 = vmax.f32 %v4426_v11, 0.0 }
 0x586   : > { %v4010_v5 = vpop.f32.mrf.mxu1  ;;  %v4515_v63 = vld [vmem:[#allocation2 + $0xf0] ss:$2 sm:$0xf]  ;;  %v4531_v16 = vld [vmem:[#allocation2 + $0xf1] ss:$2 sm:$0xf] }
 0x587   : > { %4496 = vst [vmem:[#allocation2 + $0xf8] sm:$0xff] %v4461_v46  ;;  %v4051_v12 = vadd.f32 %v4010_v5, %v10657_v39  ;;  %v9042_v39 = vld [vmem:[%s11570_s3 + $0x238] sm:$0xff]  ;;  %v4547_v62 = vadd.f32 %v4531_v16, %v4515_v63 }
 0x588   : > { %5277 = vmatpush.bf16.msra.mxu3 %v9032_v23  ;;  %v9039_v23 = vld [vmem:[%s11570_s3 + $0x220] sm:$0xff]  ;;  %v9066_v46 = vld [vmem:[%s11570_s3 + $0x2f8] sm:$0xff] }
 0x589   : > { %6411 = vmatpush.bf16.msrb.mxu1 %v9144_v53  ;;  %6492 = vmatpush.bf16.msrb.mxu2 %v9152_v0  ;;  %v4390_v27 = vadd.f32 %v11084_v8, %v4051_v12  ;;  %v9142_v8 = vld [vmem:[%s11570_s3 + $0x558] sm:$0xff] }
 0x58a   : > { %v4881_v61 = vpop.f32.mrf.mxu3  ;;  %v5289_v5 = vld [vmem:[#allocation5 + $0x1f] sm:$0xff] }
 0x58b   : > { %v4427_v7 = vadd.f32 %v11094_v59, %v4390_v27  ;;  %v5290_v27 = vpack.c.bf16 %v5289_v5, %v5289_v5  ;;  %v9165_v61 = vld [vmem:[%s11570_s3 + $0x610] sm:$0xff] }
 0x58c   : > { %5278 = vmatpush.bf16.msra.mxu3 %v9031_v3  ;;  %v9170_v3 = vld [vmem:[%s11570_s3 + $0x638] sm:$0xff] }
 0x58d   : > { %6412 = vmatpush.bf16.msrb.mxu1 %v9143_v36  ;;  %6493 = vmatpush.bf16.msrb.mxu2 %v9151_v42  ;;  %v4462_v4 = vmax.f32 %v4427_v7, 0.0  ;;  %v9166_v42 = vld [vmem:[%s11570_s3 + $0x618] sm:$0xff]  ;;  %v9064_v7 = vld [vmem:[%s11570_s3 + $0x2e8] sm:$0xff] }
 0x58e   : > { %v4012_v30 = vpop.f32.mrf.mxu1 }
 0x58f   : > { %4497 = vst [vmem:[#allocation2 + $0x100] sm:$0xff] %v4462_v4  ;;  %v4052_v19 = vadd.f32 %v4012_v30, %v3678_v57  ;;  %6174 = vmatmul.bf16.vlgmr.msra.gmra.mxu1 %v6100_v37  ;;  %v9063_v57 = vld [vmem:[%s11570_s3 + $0x2e0] sm:$0xff]  ;;  %v9062_v30 = vld [vmem:[%s11570_s3 + $0x2d8] sm:$0xff] }
 0x590   : > { %5279 = vmatpush.bf16.msra.mxu3 %v9030_v21  ;;  %6255 = vmatmul.bf16.vlgmr.msra.gmra.mxu2 %v6181_v14  ;;  %v9036_v21 = vld [vmem:[%s11570_s3 + $0x208] sm:$0xff] }
 0x591   : > { %6413 = vmatpush.bf16.msrb.mxu1 %v9142_v8  ;;  %v4391_v51 = vadd.f32 %v11117_v55, %v4052_v19  ;;  %6494 = vmatpush.bf16.msrb.mxu2 %v9150_v31  ;;  %v9148_v55 = vld [vmem:[%s11570_s3 + $0x588] sm:$0xff]  ;;  %v9163_v31 = vld [vmem:[%s11570_s3 + $0x600] sm:$0xff] }
 0x593   : > { %v4428_v50 = vadd.f32 %v11094_v59, %v4391_v51  ;;  %v9060_v51 = vld [vmem:[%s11570_s3 + $0x2c8] sm:$0xff] }
 0x594   : > { %5280 = vmatpush.bf16.msra.mxu3 %v9029_v45  ;;  %v9167_v45 = vld [vmem:[%s11570_s3 + $0x620] sm:$0xff] }
 0x595   : > { %6414 = vmatpush.bf16.msrb.mxu1 %v9141_v17  ;;  %v4463_v15 = vmax.f32 %v4428_v50, 0.0  ;;  %6495 = vmatpush.bf16.msrb.mxu2 %v9149_v1  ;;  %v9059_v50 = vld [vmem:[%s11570_s3 + $0x2c0] sm:$0xff] }
 0x596   : > { %v4015_v33 = vpop.f32.mrf.mxu1 }
 0x597   : > { %4498 = vst [vmem:[#allocation2 + $0x108] sm:$0xff] %v4463_v15  ;;  %v4053_v54 = vadd.f32 %v4015_v33, %v10690_v52  ;;  %v9038_v52 = vld [vmem:[%s11570_s3 + $0x218] sm:$0xff] }
 0x598   : > { %5281 = vmatpush.bf16.msra.mxu3 %v9028_v43  ;;  %v9090_v15 = vld [vmem:[%s11570_s3 + $0x3b8] sm:$0xff] }
 0x599   : > { %6415 = vmatpush.bf16.msrb.mxu1 %v9140_v32  ;;  %v4392_v2 = vadd.f32 %v11143_v13, %v4053_v54  ;;  %6496 = vmatpush.bf16.msrb.mxu2 %v9148_v55  ;;  %v5532_v33 = vld [vmem:[#allocation5 + $0x39] sm:$0xff] }
 0x59a   : > { %v9089_v54 = vld [vmem:[%s11570_s3 + $0x3b0] sm:$0xff] }
 0x59b   : > { %v4429_v29 = vadd.f32 %v11094_v59, %v4392_v2  ;;  %v9088_v2 = vld [vmem:[%s11570_s3 + $0x3a8] sm:$0xff] }
 0x59c   : > { %5282 = vmatpush.bf16.msra.mxu3 %v9027_v9  ;;  %v9065_v9 = vld [vmem:[%s11570_s3 + $0x2f0] sm:$0xff] }
 0x59d   : > { %6416 = vmatpush.bf16.msrb.mxu1 %v9139_v35  ;;  %v4464_v13 = vmax.f32 %v4429_v29, 0.0  ;;  %6497 = vmatpush.bf16.msrb.mxu2 %v9147_v22 }
 0x59e   : > { %v4017_v56 = vpop.f32.mrf.mxu1  ;;  %v4562_v6 = vld [vmem:[#allocation2 + $0xfc] ss:$2 sm:$0xff]  ;;  %v4594_v47 = vld [vmem:[#allocation2 + $0xfd] ss:$2 sm:$0xff] }
 0x59f   : > { %5283 = vmatmul.bf16.vlgmr.msra.gmra.mxu3 %v5209_v38  ;;  %4499 = vst [vmem:[#allocation2 + $0x110] sm:$0xf] %v4464_v13  ;;  %v4578_v20 = vadd.f32 %v4562_v6, %v4546_v58  ;;  %v9084_v58 = vld [vmem:[%s11570_s3 + $0x388] sm:$0xff]  ;;  %v9083_v56 = vld [vmem:[%s11570_s3 + $0x380] sm:$0xff]  ;;  %v9114_v6 = vld [vmem:[%s11570_s3 + $0x478] sm:$0xff] }
 0x5a0   : > { %5356 = vmatpush.bf16.msrb.mxu3 %v9042_v39 }
 0x5a1   : > { %6652 = vmatpush.bf16.msra.mxu1 %v9170_v3  ;;  %v4610_v48 = vadd.f32 %v4594_v47, %v4578_v20  ;;  %v9087_v3 = vld [vmem:[%s11570_s3 + $0x3a0] sm:$0xff]  ;;  %v9112_v47 = vld [vmem:[%s11570_s3 + $0x468] sm:$0xff] }
 0x5a2   : > { %v4960_v25 = vpop.f32.mrf.mxu3 }
 0x5a3   : > { %v4964_v59 = vadd.f32 %v4960_v25, %v11248_v44  ;;  %v11335_v24 = vmul.f32 0.25, %v4610_v48  ;;  %v9035_v44 = vld [vmem:[%s11570_s3 + $0x200] sm:$0xff]  ;;  %v5775_v25 = vld [vmem:[#allocation5 + $0x3c] sm:$0xff]  ;;  %v9109_v48 = vld [vmem:[%s11570_s3 + $0x450] sm:$0xff] }
 0x5a4   : > { %5357 = vmatpush.bf16.msrb.mxu3 %v9041_v40  ;;  %v9061_v40 = vld [vmem:[%s11570_s3 + $0x2d0] sm:$0xff]  ;;  %v5776_v20 = vpack.c.bf16 %v5775_v25, %v5775_v25 }
 0x5a5   : > { %6653 = vmatpush.bf16.msra.mxu1 %v9169_v34  ;;  %4642 = vst [vmem:[#allocation5 + $0x70] sm:$0xff] %v11335_v24 }
 0x5a6   : > { %v11341_v11 = vpop.f32.mrf.mxu1  ;;  %v4563_v53 = vld [vmem:[#allocation2 + $0x10c] ss:$2 sm:$0xf]  ;;  %v4595_v12 = vld [vmem:[#allocation2 + $0x10d] ss:$2 sm:$0xf] }
 0x5a7   : > { %v4579_v43 = vadd.f32 %v4563_v53, %v4547_v62 }
 0x5a8   : > { %5358 = vmatpush.bf16.msrb.mxu3 %v9040_v26 }
 0x5a9   : > { %6654 = vmatpush.bf16.msra.mxu1 %v9168_v18  ;;  %v4611_v36 = vadd.f32 %v4595_v12, %v4579_v43  ;;  %v9110_v18 = vld [vmem:[%s11570_s3 + $0x458] sm:$0xff]  ;;  %v9137_v12 = vld [vmem:[%s11570_s3 + $0x530] sm:$0xff] }
 0x5aa   : > { %v4962_v0 = vpop.f32.mrf.mxu3 }
 0x5ab   : > { %v4627_v39 = vmul.f32 0.25, %v4611_v36  ;;  %v9138_v0 = vld [vmem:[%s11570_s3 + $0x538] sm:$0xff] }
 0x5ac   : > { %5359 = vmatpush.bf16.msrb.mxu3 %v9039_v23  ;;  %v5533_v23 = vpack.c.bf16 %v5532_v33, %v5532_v33 }
 0x5ad   : > { %6655 = vmatpush.bf16.msra.mxu1 %v9167_v45  ;;  %4643 = vst [vmem:[#allocation5 + $0x78] sm:$0xf] %v4627_v39  ;;  %v9108_v45 = vld [vmem:[%s11570_s3 + $0x448] sm:$0xff] }
 0x5ae   : > { %v5448_v49 = vpop.f32.mrf.mxu1 }
 0x5b0   : > { %5360 = vmatpush.bf16.msrb.mxu3 %v9038_v52 }
 0x5b1   : > { %6656 = vmatpush.bf16.msra.mxu1 %v9166_v42  ;;  %v9136_v42 = vld [vmem:[%s11570_s3 + $0x528] sm:$0xff] }
 0x5b4   : > { %5361 = vmatpush.bf16.msrb.mxu3 %v9037_v60  ;;  %v6342_v8 = vld [vmem:[#allocation5 + $0x71] sm:$0xff] }
 0x5b5   : > { %6657 = vmatpush.bf16.msra.mxu1 %v9165_v61  ;;  %v6423_v4 = vld [vmem:[#allocation5 + $0x72] sm:$0xff]  ;;  %v6343_v37 = vpack.c.bf16 %v6342_v8, %v6342_v8  ;;  %v9134_v61 = vld [vmem:[%s11570_s3 + $0x518] sm:$0xff] }
 0x5b6   : > { %v6424_v14 = vpack.c.bf16 %v6423_v4, %v6423_v4  ;;  %v6585_v1 = vld [vmem:[#allocation5 + $0x74] sm:$0xff]  ;;  %v9132_v4 = vld [vmem:[%s11570_s3 + $0x508] sm:$0xff] }
 0x5b7   : > { %6417 = vmatmul.bf16.vlgmr.msrb.gmra.mxu1 %v6343_v37  ;;  %v6586_v55 = vpack.c.bf16 %v6585_v1, %v6585_v1  ;;  %v9157_v1 = vld [vmem:[%s11570_s3 + $0x5d0] sm:$0xff] }
 0x5b8   : > { %5362 = vmatpush.bf16.msrb.mxu3 %v9036_v21  ;;  %6498 = vmatmul.bf16.vlgmr.msrb.gmra.mxu2 %v6424_v14  ;;  %v9111_v21 = vld [vmem:[%s11570_s3 + $0x460] sm:$0xff] }
 0x5b9   : > { %6658 = vmatpush.bf16.msra.mxu1 %v9164_v10  ;;  %v9131_v14 = vld [vmem:[%s11570_s3 + $0x500] sm:$0xff] }
 0x5ba   : > { %v11373_v38 = vpop.f32.mrf.mxu2 }
 0x5bc   : > { %5363 = vmatpush.bf16.msrb.mxu3 %v9035_v44  ;;  %v9107_v44 = vld [vmem:[%s11570_s3 + $0x440] sm:$0xff] }
 0x5bd   : > { %6659 = vmatpush.bf16.msra.mxu1 %v9163_v31 }
 0x5bf   : > { %5364 = vmatmul.bf16.vlgmr.msrb.gmra.mxu3 %v5290_v27 }
 0x5c0   : > { %5599 = vmatpush.bf16.msra.mxu3 %v9066_v46  ;;  %v6018_v46 = vld [vmem:[#allocation5 + $0x56] sm:$0xff] }
 0x5c1   : > { %v6019_v5 = vpack.c.bf16 %v6018_v46, %v6018_v46  ;;  %v9186_v46 = vld [vmem:[%s11572_s5 + $0x38] sm:$0xff] }
 0x5c2   : > { %v5041_v19 = vpop.f32.mrf.mxu3  ;;  %v5529_v26 = vpop.f32.mrf.mxu2 }
 0x5c3   : > { %v5045_v17 = vadd.f32 %v5041_v19, %v4964_v59  ;;  %v9113_v59 = vld [vmem:[%s11570_s3 + $0x470] sm:$0xff] }
 0x5c4   : > { %5600 = vmatpush.bf16.msra.mxu3 %v9065_v9  ;;  %v9135_v9 = vld [vmem:[%s11570_s3 + $0x520] sm:$0xff]  ;;  %v9161_v19 = vld [vmem:[%s11570_s3 + $0x5f0] sm:$0xff] }
 0x5c7   : > { %6660 = vmatmul.bf16.vlgmr.msra.gmra.mxu1 %v6586_v55  ;;  %v9155_v55 = vld [vmem:[%s11570_s3 + $0x5c0] sm:$0xff] }
 0x5c8   : > { %5601 = vmatpush.bf16.msra.mxu3 %v9064_v7  ;;  %v9133_v7 = vld [vmem:[%s11570_s3 + $0x510] sm:$0xff] }
 0x5ca   : > { %v5043_v32 = vpop.f32.mrf.mxu3 }
 0x5cb   : > { %v9156_v32 = vld [vmem:[%s11570_s3 + $0x5c8] sm:$0xff] }
 0x5cc   : > { %5602 = vmatpush.bf16.msra.mxu3 %v9063_v57  ;;  %v11390_v35 = vpop.f32.mrf.mxu1 }
 0x5d0   : > { %5603 = vmatpush.bf16.msra.mxu3 %v9062_v30  ;;  %v9162_v30 = vld [vmem:[%s11570_s3 + $0x5f8] sm:$0xff] }
 0x5d3   : > { %v11398_v22 = vpop.f32.mrf.mxu2 }
 0x5d4   : > { %5604 = vmatpush.bf16.msra.mxu3 %v9061_v40  ;;  %v5691_v52 = vpop.f32.mrf.mxu1  ;;  %v6262_v40 = vpack.c.bf16 %v11335_v24, %v11335_v24  ;;  %v9158_v24 = vld [vmem:[%s11570_s3 + $0x5d8] sm:$0xff] }
 0x5d8   : > { %5605 = vmatpush.bf16.msra.mxu3 %v9060_v51  ;;  %v9159_v51 = vld [vmem:[%s11570_s3 + $0x5e0] sm:$0xff] }
 0x5db   : > { %v5772_v34 = vpop.f32.mrf.mxu2 }
 0x5dc   : > { %5606 = vmatpush.bf16.msra.mxu3 %v9059_v50 }
 0x5df   : > { %5607 = vmatmul.bf16.vlgmr.msra.gmra.mxu3 %v5533_v23  ;;  %v6504_v23 = vld [vmem:[#allocation5 + $0x73] sm:$0xff] }
 0x5e0   : > { %5842 = vmatpush.bf16.msrb.mxu3 %v9090_v15 }
 0x5e2   : > { %v5122_v29 = vpop.f32.mrf.mxu3 }
 0x5e3   : > { %v5126_v13 = vadd.f32 %v5122_v29, %v5045_v17  ;;  %v9160_v17 = vld [vmem:[%s11570_s3 + $0x5e8] sm:$0xff] }
 0x5e4   : > { %5843 = vmatpush.bf16.msrb.mxu3 %v9089_v54 }
 0x5e8   : > { %5844 = vmatpush.bf16.msrb.mxu3 %v9088_v2 }
 0x5ea   : > { %v5124_v60 = vpop.f32.mrf.mxu3 }
 0x5ec   : > { %5845 = vmatpush.bf16.msrb.mxu3 %v9087_v3  ;;  %v6505_v3 = vpack.c.bf16 %v6504_v23, %v6504_v23 }
 0x5f0   : > { %5846 = vmatpush.bf16.msrb.mxu3 %v9086_v41 }
 0x5f4   : > { %5847 = vmatpush.bf16.msrb.mxu3 %v9085_v28 }
 0x5f8   : > { %5848 = vmatpush.bf16.msrb.mxu3 %v9084_v58 }
 0x5fc   : > { %5849 = vmatpush.bf16.msrb.mxu3 %v9083_v56  ;;  %v11433_v62 = vpop.f32.mrf.mxu1 }
 0x5ff   : > { %5850 = vmatmul.bf16.vlgmr.msrb.gmra.mxu3 %v5776_v20 }
 0x600   : > { %6085 = vmatpush.bf16.msra.mxu3 %v9114_v6 }
 0x602   : > { %v5203_v63 = vpop.f32.mrf.mxu3 }
 0x603   : > { %v5207_v16 = vadd.f32 %v5203_v63, %v5126_v13  ;;  %v11441_v43 = vpop.f32.mrf.mxu2 }
 0x604   : > { %6086 = vmatpush.bf16.msra.mxu3 %v9113_v59  ;;  %v5934_v36 = vpop.f32.mrf.mxu1 }
 0x605   : > { %v9184_v36 = vld [vmem:[%s11572_s5 + $0x28] sm:$0xff] }
 0x608   : > { %6087 = vmatpush.bf16.msra.mxu3 %v9112_v47 }
 0x60a   : > { %v5205_v53 = vpop.f32.mrf.mxu3 }
 0x60b   : > { %v6015_v27 = vpop.f32.mrf.mxu2 }
 0x60c   : > { %6088 = vmatpush.bf16.msra.mxu3 %v9111_v21  ;;  %v11452_v39 = vpop.f32.mrf.mxu1  ;;  %v9178_v21 = vld [vmem:[%s11571_s4 + $0x38] sm:$0xff] }
 0x60d   : > { %6737 = vmatpush.bf16.msra.mxu2 %v9178_v21 }
 0x610   : > { %6089 = vmatpush.bf16.msra.mxu3 %v9110_v18  ;;  %v9174_v18 = vld [vmem:[%s11571_s4 + $0x18] sm:$0xff] }
 0x613   : > { %v11457_v49 = vpop.f32.mrf.mxu2 }
 0x614   : > { %6090 = vmatpush.bf16.msra.mxu3 %v9109_v48  ;;  %v6177_v8 = vpop.f32.mrf.mxu1  ;;  %v9173_v48 = vld [vmem:[%s11571_s4 + $0x10] sm:$0xff] }
 0x618   : > { %6091 = vmatpush.bf16.msra.mxu3 %v9108_v45 }
 0x61b   : > { %v6258_v37 = vpop.f32.mrf.mxu2 }
 0x61c   : > { %6092 = vmatpush.bf16.msra.mxu3 %v9107_v44  ;;  %v9171_v44 = vld [vmem:[%s11571_s4] sm:$0xff] }
 0x61f   : > { %6093 = vmatmul.bf16.vlgmr.msra.gmra.mxu3 %v6019_v5 }
 0x620   : > { %6328 = vmatpush.bf16.msrb.mxu3 %v9138_v0 }
 0x622   : > { %v5284_v10 = vpop.f32.mrf.mxu3 }
 0x623   : > { %v5288_v57 = vadd.f32 %v5284_v10, %v5207_v16  ;;  %v9172_v16 = vld [vmem:[%s11571_s4 + $0x8] sm:$0xff] }
 0x624   : > { %6329 = vmatpush.bf16.msrb.mxu3 %v9137_v12  ;;  %v9185_v12 = vld [vmem:[%s11572_s5 + $0x30] sm:$0xff] }
 0x628   : > { %6330 = vmatpush.bf16.msrb.mxu3 %v9136_v42  ;;  %v9183_v42 = vld [vmem:[%s11572_s5 + $0x20] sm:$0xff] }
 0x62a   : > { %v5286_v31 = vpop.f32.mrf.mxu3 }
 0x62c   : > { %6331 = vmatpush.bf16.msrb.mxu3 %v9135_v9  ;;  %v9182_v9 = vld [vmem:[%s11572_s5 + $0x18] sm:$0xff] }
 0x630   : > { %6332 = vmatpush.bf16.msrb.mxu3 %v9134_v61 }
 0x634   : > { %6333 = vmatpush.bf16.msrb.mxu3 %v9133_v7  ;;  %v6418_v15 = vpop.f32.mrf.mxu1 }
 0x638   : > { %6334 = vmatpush.bf16.msrb.mxu3 %v9132_v4 }
 0x63b   : > { %v6499_v54 = vpop.f32.mrf.mxu2 }
 0x63c   : > { %6335 = vmatpush.bf16.msrb.mxu3 %v9131_v14  ;;  %v6420_v2 = vpop.f32.mrf.mxu1 }
 0x63f   : > { %6336 = vmatmul.bf16.vlgmr.msrb.gmra.mxu3 %v6262_v40  ;;  %v9179_v40 = vld [vmem:[%s11572_s5] sm:$0xff] }
 0x640   : > { %6571 = vmatpush.bf16.msra.mxu3 %v9162_v30  ;;  %v9180_v30 = vld [vmem:[%s11572_s5 + $0x8] sm:$0xff] }
 0x642   : > { %v5365_v26 = vpop.f32.mrf.mxu3 }
 0x643   : > { %v5369_v50 = vadd.f32 %v5365_v26, %v5288_v57  ;;  %v6501_v52 = vpop.f32.mrf.mxu2  ;;  %v9545_v57 = vld [vmem:[%s11573_s6 + $0x2] ss:$0 sm:$0xff] }
 0x644   : > { %6572 = vmatpush.bf16.msra.mxu3 %v9161_v19  ;;  %v6661_v41 = vpop.f32.mrf.mxu1  ;;  %v9546_v19 = vld [vmem:[%s11573_s6 + $0x3] ss:$0 sm:$0xff] }
 0x645   : > { %v5450_v28 = vadd.f32 %v11341_v11, %v5369_v50  ;;  %v9177_v11 = vld [vmem:[%s11571_s4 + $0x30] sm:$0xff]  ;;  %v9547_v50 = vld [vmem:[%s11573_s6 + $0x4] ss:$0 sm:$0xff] }
 0x646   : > { %6738 = vmatpush.bf16.msra.mxu2 %v9177_v11 }
 0x647   : > { %v5531_v29 = vadd.f32 %v11373_v38, %v5450_v28 }
 0x648   : > { %6573 = vmatpush.bf16.msra.mxu3 %v9160_v17 }
 0x64a   : > { %v5367_v33 = vpop.f32.mrf.mxu3 }
 0x64c   : > { %6574 = vmatpush.bf16.msra.mxu3 %v9159_v51  ;;  %v6663_v13 = vpop.f32.mrf.mxu1 }
 0x650   : > { %6575 = vmatpush.bf16.msra.mxu3 %v9158_v24 }
 0x654   : > { %6576 = vmatpush.bf16.msra.mxu3 %v9157_v1 }
 0x658   : > { %6577 = vmatpush.bf16.msra.mxu3 %v9156_v32 }
 0x65c   : > { %6578 = vmatpush.bf16.msra.mxu3 %v9155_v55 }
 0x65f   : > { %6579 = vmatmul.bf16.vlgmr.msra.gmra.mxu3 %v6505_v3 }
 0x660   : > { %6818 = vmatpush.bf16.msrb.mxu3 %v9186_v46 }
 0x662   : > { %v5608_v34 = vpop.f32.mrf.mxu3 }
 0x663   : > { %v5612_v58 = vadd.f32 %v5608_v34, %v5531_v29 }
 0x664   : > { %6819 = vmatpush.bf16.msrb.mxu3 %v9185_v12 }
 0x665   : > { %v5693_v60 = vadd.f32 %v11390_v35, %v5612_v58  ;;  %v9176_v35 = vld [vmem:[%s11571_s4 + $0x28] sm:$0xff] }
 0x666   : > { %6739 = vmatpush.bf16.msra.mxu2 %v9176_v35 }
 0x667   : > { %v5774_v6 = vadd.f32 %v11398_v22, %v5693_v60  ;;  %v9175_v22 = vld [vmem:[%s11571_s4 + $0x20] sm:$0xff] }
 0x668   : > { %6820 = vmatpush.bf16.msrb.mxu3 %v9184_v36 }
 0x66a   : > { %v5610_v56 = vpop.f32.mrf.mxu3  ;;  %6740 = vmatpush.bf16.msra.mxu2 %v9175_v22 }
 0x66c   : > { %6821 = vmatpush.bf16.msrb.mxu3 %v9183_v42 }
 0x66e   : > { %6741 = vmatpush.bf16.msra.mxu2 %v9174_v18 }
 0x670   : > { %6822 = vmatpush.bf16.msrb.mxu3 %v9182_v9 }
 0x672   : > { %6742 = vmatpush.bf16.msra.mxu2 %v9173_v48 }
 0x676   : > { %6743 = vmatpush.bf16.msra.mxu2 %v9172_v16 }
 0x67a   : > { %6744 = vmatpush.bf16.msra.mxu2 %v9171_v44 }
 0x682   : > { %v5851_v25 = vpop.f32.mrf.mxu3 }
 0x683   : > { %v5855_v20 = vadd.f32 %v5851_v25, %v5774_v6 }
 0x685   : > { %v5936_v45 = vadd.f32 %v11433_v62, %v5855_v20 }
 0x687   : > { %v6017_v53 = vadd.f32 %v11441_v43, %v5936_v45 }
 0x68a   : > { %v5853_v59 = vpop.f32.mrf.mxu3 }
 0x6a2   : > { %v6094_v47 = vpop.f32.mrf.mxu3 }
 0x6a3   : > { %v6098_v5 = vadd.f32 %v6094_v47, %v6017_v53 }
 0x6a5   : > { %v6179_v62 = vadd.f32 %v11452_v39, %v6098_v5  ;;  %v9181_v39 = vld [vmem:[%s11572_s5 + $0x10] sm:$0xff] }
 0x6a6   : > { %6823 = vmatpush.bf16.msrb.mxu3 %v9181_v39 }
 0x6a7   : > { %v6260_v43 = vadd.f32 %v11457_v49, %v6179_v62 }
 0x6aa   : > { %v6096_v38 = vpop.f32.mrf.mxu3  ;;  %6824 = vmatpush.bf16.msrb.mxu3 %v9180_v30 }
 0x6ae   : > { %6825 = vmatpush.bf16.msrb.mxu3 %v9179_v40 }
 0x6c2   : > { %v6337_v63 = vpop.f32.mrf.mxu3 }
 0x6c3   : > { %v6341_v27 = vadd.f32 %v6337_v63, %v6260_v43 }
 0x6c5   : > { %v6422_v61 = vadd.f32 %v6418_v15, %v6341_v27 }
 0x6c7   : > { %v6503_v7 = vadd.f32 %v6499_v54, %v6422_v61 }
 0x6ca   : > { %v6339_v0 = vpop.f32.mrf.mxu3 }
 0x6e2   : > { %v6580_v10 = vpop.f32.mrf.mxu3 }
 0x6e3   : > { %v6584_v49 = vadd.f32 %v6580_v10, %v6503_v7 }
 0x6e5   : > { %v6665_v8 = vadd.f32 %v6661_v41, %v6584_v49 }
 0x6e7   : > { %v6668_v4 = vadd.f32 %v9545_v57, %v6665_v8 }
 0x6e9   : > { %v6669_v37 = vmax.f32 %v6668_v4, 0.0 }
 0x6ea   : > { %v6582_v14 = vpop.f32.mrf.mxu3 }
 0x6eb   : > { %v6670_v31 = vpack.c.bf16 %v6669_v37, %v6669_v37 }
 0x6ed   : > { %6745 = vmatmul.bf16.vlgmr.msra.gmra.mxu2 %v6670_v31 }
 0x770   : > { %v6746_v17 = vpop.f32.mrf.mxu2 }
 0x771   : > { %v6747_v51 = vadd.f32 %v9546_v19, %v6746_v17 }
 0x773   : > { %v6750_v24 = vmax.f32 %v6747_v51, 0.0 }
 0x775   : > { %v6751_v1 = vpack.c.bf16 %v6750_v24, %v6750_v24 }
 0x777   : > { %6826 = vmatmul.bf16.vlgmr.msrb.gmra.mxu3 %v6751_v1 }
 0x778   : > { %v6748_v26 = vpop.f32.mrf.mxu2 }
 0x7fa   : > { %v6827_v32 = vpop.f32.mrf.mxu3 }
 0x7fb   : > { %v6828_v15 = vadd.f32 %v9547_v50, %v6827_v32 }
 0x7fd   : > { %6831 = vst [vmem:[%s278_s23] sm:$0xff] %v6828_v15 }
 0x802   : > { %v6829_v55 = vpop.f32.mrf.mxu3 }
 0x803 PF: > { %s17_s24 = sadd.s32 1, %s9558_s24  }
 0x804   : > { %p14_p5 = scmp.ge.s32.totalorder %s17_s24, 4  }
 0x806   :  { %16 = sbr.rel (!%p14_p5) target bundleno = 1 (0x1), region = 301 }

</bundles_post_ra>
